<compile_context>
chip_gen: v7x
topology: tpu7x:2x2x1
jax: 0.10.0
libtpu: 0.0.40
codegen_flags: <defaults>
</compile_context>

<pallas_src>
import functools

import numpy as np
import jax
import jax.numpy as jnp
from jax import lax
from jax.experimental import pallas as pl
from jax.experimental.pallas import tpu as pltpu

EPS = 1e-5  # nn.GroupNorm default eps (instancenorm == GroupNorm(C, C))


def _round_up(v, m):
    return ((v + m - 1) // m) * m


# -----------------------------------------------------------------------------
# Host-side per-sample 2x2 average-pooling matrices, packed into one operand
# -----------------------------------------------------------------------------
def _pool_matrices(H0, W0, depth):
    """Returns (packed, row_offsets): packed[off_l:off_l+N_l/4, :N_l] is the
    per-sample (N_l/4, N_l) matrix with 0.25 at the 4 inputs of each window."""
    mats = []
    for l in range(depth):
        H, W = H0 >> l, W0 >> l
        H2, W2 = H // 2, W // 2
        P = np.zeros((H2 * W2, H * W), np.float32)
        for y2 in range(H2):
            for x2 in range(W2):
                m = y2 * W2 + x2
                for dy in range(2):
                    for dx in range(2):
                        P[m, (2 * y2 + dy) * W + (2 * x2 + dx)] = 0.25
        mats.append(P)
    rows = sum(m.shape[0] for m in mats)
    packed = np.zeros((rows, H0 * W0), np.float32)
    offs, off = [], 0
    for m in mats:
        offs.append(off)
        packed[off:off + m.shape[0], :m.shape[1]] = m
        off += m.shape[0]
    return jnp.asarray(packed, jnp.bfloat16), offs


# -----------------------------------------------------------------------------
# The fused per-sample kernel
# -----------------------------------------------------------------------------
def make_convnet_kernel(im_hw, width, depth, num_classes, pool_offs):
    H0, W0 = im_hw
    hw = [(H0 >> l, W0 >> l) for l in range(depth)]
    N0 = H0 * W0
    PADT = _round_up(W0 + 1, 16)          # bf16-sublane-aligned zero gutter
    S = (H0 >> depth) * (W0 >> depth)     # final spatial positions per sample
    K = num_classes
    f32, bf16 = jnp.float32, jnp.bfloat16

    def kernel(x_ref, w_ref, aff_ref, pool_ref, clsw_ref, clsb_ref, out_ref,
               pad_ref, col_ref):
        # Top zero gutter (written once per program; never overwritten below).
        pad_ref[pl.ds(0, PADT), :] = jnp.zeros((PADT, width), bf16)

        h = None
        for l in range(depth):
            H, W = hw[l]
            N = H * W
            PB = _round_up(W + 1, 16)     # bottom gutter rows needed this layer

            # ---- stage bf16 activation + bottom zero gutter -----------------
            if l == 0:
                pad_ref[pl.ds(PADT, N), :] = x_ref[...]          # already bf16
            else:
                pad_ref[pl.ds(PADT, N), :] = h.astype(bf16)      # one cast/layer
            pad_ref[pl.ds(PADT + N, PB), :] = jnp.zeros((PB, width), bf16)

            # ---- horizontal boundary masks (vertical handled by gutters) ----
            # NOTE: W is a power of two in this config so % is cheap.
            x_id = lax.broadcasted_iota(jnp.int32, (N, 1), 0) % W
            m_left = (x_id > 0).astype(bf16)        # dx = -1 invalid at x == 0
            m_right = (x_id < W - 1).astype(bf16)   # dx = +1 invalid at x == W-1

            # ---- im2col: 9 shifted taps -> (N, 9*width) bf16 scratch --------
            for ky in range(3):
                for kx in range(3):
                    t = ky * 3 + kx
                    shift = (ky - 1) * W + (kx - 1)
                    tap = pad_ref[pl.ds(PADT + shift, N), :]
                    if kx == 0:
                        tap = tap * m_left
                    elif kx == 2:
                        tap = tap * m_right
                    col_ref[pl.ds(0, N), pl.ds(t * width, width)] = tap

            # ---- conv as ONE MXU matmul: (N, 9C) @ (9C, C), f32 accumulate --
            acc = jnp.dot(col_ref[pl.ds(0, N), :], w_ref[l],
                          preferred_element_type=f32)
            acc = acc + aff_ref[pl.ds(3 * l + 0, 1), :]          # conv bias

            # ---- instance norm: plain per-block (this sample only) ----------
            mu = jnp.mean(acc, axis=0, keepdims=True)
            var = jnp.mean((acc - mu) ** 2, axis=0, keepdims=True)
            normed = (acc - mu) * lax.rsqrt(var + EPS)

            # ---- affine + ReLU ----------------------------------------------
            h = jnp.maximum(normed * aff_ref[pl.ds(3 * l + 1, 1), :]
                            + aff_ref[pl.ds(3 * l + 2, 1), :], 0.0)

            # ---- 2x2 avg pool: per-sample (N/4, N) 0.25-matrix matmul -------
            P = pool_ref[pl.ds(pool_offs[l], N // 4), pl.ds(0, N)]
            h = jnp.dot(P, h.astype(bf16), preferred_element_type=f32)

        # ---- classifier: one matmul + block-diagonal reduction --------------
        # T[s, s*K + k] = sum_c h[s, c] * W[s, c, k]
        T = jnp.dot(h.astype(bf16), clsw_ref[...], preferred_element_type=f32)
        logits = clsb_ref[...]                                   # (1, K)
        for s in range(S):
            logits = logits + T[s:s + 1, s * K:(s + 1) * K]
        # Output block is (8, K) rows (sublane-tile aligned); replicate the
        # logits row, wrapper keeps row 0 of each block.
        out_ref[...] = jnp.broadcast_to(logits, (8, K)).astype(out_ref.dtype)

    scratch_shapes = [
        pltpu.VMEM((PADT + N0 + PADT, width), jnp.bfloat16),     # padded stage
        pltpu.VMEM((N0, 9 * width), jnp.bfloat16),               # im2col
    ]
    return kernel, scratch_shapes


# -----------------------------------------------------------------------------
# Wrapper
# -----------------------------------------------------------------------------
def convnet_forward(x_nhwc, params, *, width, depth, num_classes):
    B, H0, W0, Cin = x_nhwc.shape
    assert H0 % (2 ** depth) == 0 and W0 % (2 ** depth) == 0
    assert Cin <= width
    N0 = H0 * W0

    # Zero-pad input channels to `width` (layer-0 weights padded to match), bf16.
    x_pad = jnp.zeros((B, H0, W0, width), jnp.float32).at[..., :Cin].set(x_nhwc)
    x_flat = x_pad.reshape(B * N0, width).astype(jnp.bfloat16)

    pool_packed, pool_offs = _pool_matrices(H0, W0, depth)
    kernel, scratch_shapes = make_convnet_kernel((H0, W0), width, depth,
                                                 num_classes, pool_offs)

    full = lambda arr, nd: pl.BlockSpec(tuple(arr.shape), lambda b: (0,) * nd)
    out = pl.pallas_call(
        kernel,
        out_shape=jax.ShapeDtypeStruct((B * 8, num_classes), jnp.float32),
        grid=(B,),
        in_specs=[
            pl.BlockSpec((N0, width), lambda b: (b, 0)),        # one sample
            full(params["conv_w"], 3),                           # (L, 9C, C)
            full(params["affine"], 2),                           # (3L, C)
            full(pool_packed, 2),                                # packed pools
            full(params["cls_w_cat"], 2),                        # (C, S*K)
            full(params["cls_b"], 2),                            # (1, K)
        ],
        out_specs=pl.BlockSpec((8, num_classes), lambda b: (b, 0)),
        scratch_shapes=scratch_shapes,
        compiler_params=pltpu.CompilerParams(
            dimension_semantics=("parallel",)),
    )(x_flat, params["conv_w"], params["affine"], pool_packed,
      params["cls_w_cat"], params["cls_b"])
    return out.reshape(B, 8, num_classes)[:, 0, :]


# -----------------------------------------------------------------------------
# Parameter init (conv weights pre-packed for the im2col matmul)
# -----------------------------------------------------------------------------
def init_params(key, channel, num_classes, width, depth, im_hw):
    H0, W0 = im_hw
    kconv, kbias, kcls, kclsb = jax.random.split(key, 4)
    conv_keys = jax.random.split(kconv, depth)
    bias_keys = jax.random.split(kbias, depth)

    conv_w, affine = [], []
    cin = channel
    for l in range(depth):
        std = float(np.sqrt(2.0 / (9 * cin)))
        w = std * jax.random.normal(conv_keys[l], (3, 3, cin, width), jnp.float32)
        w_full = jnp.zeros((3, 3, width, width), jnp.float32).at[:, :, :cin, :].set(w)
        conv_w.append(w_full.reshape(9 * width, width))          # tap-major rows
        bound = float(1.0 / np.sqrt(9 * cin))
        affine.append(jax.random.uniform(bias_keys[l], (width,), jnp.float32,
                                         -bound, bound))         # conv bias
        affine.append(jnp.ones((width,), jnp.float32))           # gamma
        affine.append(jnp.zeros((width,), jnp.float32))          # beta
        cin = width

    S = (H0 // 2 ** depth) * (W0 // 2 ** depth)
    num_feat = S * width
    bound = float(1.0 / np.sqrt(num_feat))
    cls_w = jax.random.uniform(kcls, (S, width, num_classes), jnp.float32,
                               -bound, bound)
    cls_b = jax.random.uniform(kclsb, (1, num_classes), jnp.float32,
                               -bound, bound)
    cls_w_cat = jnp.transpose(cls_w, (1, 0, 2)).reshape(width, S * num_classes)
    return {
        "conv_w": jnp.stack(conv_w).astype(jnp.bfloat16),   # (L, 9*width, width)
        "affine": jnp.stack(affine),                        # (3L, width) f32
        "cls_w": cls_w.astype(jnp.bfloat16),                # (S, width, K) (reference)
        "cls_w_cat": cls_w_cat.astype(jnp.bfloat16),        # (width, S*K)  (kernel)
        "cls_b": cls_b,                                     # (1, K) f32
    }


# -----------------------------------------------------------------------------
# Independent pure-JAX reference (same bf16-at-the-matmul precision policy)
# -----------------------------------------------------------------------------
def convnet_reference(x_pad, params, depth):
    conv_w, affine = params["conv_w"], params["affine"]
    width = x_pad.shape[-1]
    h = x_pad
    for l in range(depth):
        w_hwio = conv_w[l].astype(jnp.bfloat16).reshape(3, 3, width, width)
        h = lax.conv_general_dilated(
            h.astype(jnp.bfloat16), w_hwio, (1, 1), ((1, 1), (1, 1)),
            dimension_numbers=("NHWC", "HWIO", "NHWC"),
            preferred_element_type=jnp.float32)
        h = h + affine[3 * l + 0][None, None, None, :]
        mu = jnp.mean(h, axis=(1, 2), keepdims=True)
        var = jnp.mean((h - mu) ** 2, axis=(1, 2), keepdims=True)
        h = (h - mu) * lax.rsqrt(var + EPS)
        h = h * affine[3 * l + 1][None, None, None, :] + affine[3 * l + 2][None, None, None, :]
        h = jnp.maximum(h, 0.0)
        h = h.astype(jnp.bfloat16).astype(jnp.float32)
        B_, H_, W_, C_ = h.shape
        h = h.reshape(B_, H_ // 2, 2, W_ // 2, 2, C_).mean(axis=(2, 4))
    feats = h.reshape(h.shape[0], -1).astype(jnp.bfloat16)
    wf = params["cls_w"].reshape(-1, params["cls_w"].shape[-1])
    return jnp.dot(feats, wf, preferred_element_type=jnp.float32) + params["cls_b"]


if __name__ == "__main__":
    # ConvNet config: channel=3, num_classes=10, net_width=32, net_depth=3,
    # net_act='relu', net_norm='instancenorm', net_pooling='avgpooling', im=(16,16)
    batch, channel, num_classes = 2, 3, 10
    width, depth = 32, 3
    im_hw = (16, 16)

    key = jax.random.PRNGKey(0)
    kx, kp = jax.random.split(key)
    x = jax.random.normal(kx, (batch, im_hw[0], im_hw[1], channel), jnp.float32)
    params = init_params(kp, channel, num_classes, width, depth, im_hw)

    fwd = jax.jit(functools.partial(convnet_forward, width=width, depth=depth,
                                    num_classes=num_classes))
    out = jax.block_until_ready(fwd(x, params))

    x_pad = jnp.zeros((batch, im_hw[0], im_hw[1], width),
                      jnp.float32).at[..., :channel].set(x)
    ref = convnet_reference(x_pad, params, depth)

    assert out.shape == (batch, num_classes)
    assert bool(jnp.all(jnp.isfinite(out)))
    assert bool(jnp.allclose(out, ref, rtol=2e-2, atol=2e-2)), (out, ref)
    print("KERNEL_OK")
</pallas_src>

<mosaic_0001>
module attributes {stable_mosaic.version = 11 : i64} {
  func.func @kernel(%arg0: i32, %arg1: memref<256x32xbf16, #tpu.memory_space<vmem>>, %arg2: memref<3x288x32xbf16, #tpu.memory_space<vmem>>, %arg3: memref<9x32xf32, #tpu.memory_space<vmem>>, %arg4: memref<84x256xbf16, #tpu.memory_space<vmem>>, %arg5: memref<32x40xbf16, #tpu.memory_space<vmem>>, %arg6: memref<1x10xf32, #tpu.memory_space<vmem>>, %arg7: memref<8x10xf32, #tpu.memory_space<vmem>>, %arg8: memref<320x32xbf16, #tpu.memory_space<vmem>>, %arg9: memref<256x288xbf16, #tpu.memory_space<vmem>>) attributes {dimension_semantics = [#tpu.dimension_semantics<parallel>], iteration_bounds = array<i64: 2>, scalar_prefetch = 0 : i64, scratch_operands = 2 : i64, tpu.core_type = #tpu.core_type<tc>, window_params = [{transform_indices = @transform_0, window_bounds = array<i64: 256, 32>}, {pipeline_mode = #tpu.pipeline_mode<synchronous>, transform_indices = @transform_1, window_bounds = array<i64: 3, 288, 32>}, {pipeline_mode = #tpu.pipeline_mode<synchronous>, transform_indices = @transform_2, window_bounds = array<i64: 9, 32>}, {pipeline_mode = #tpu.pipeline_mode<synchronous>, transform_indices = @transform_3, window_bounds = array<i64: 84, 256>}, {pipeline_mode = #tpu.pipeline_mode<synchronous>, transform_indices = @transform_4, window_bounds = array<i64: 32, 40>}, {pipeline_mode = #tpu.pipeline_mode<synchronous>, transform_indices = @transform_5, window_bounds = array<i64: 1, 10>}, {transform_indices = @transform_6, window_bounds = array<i64: 8, 10>}]} {
    %cst = arith.constant 0.000000e+00 : bf16
    %0 = vector.broadcast %cst : bf16 to vector<32x32xbf16>
    %c0 = arith.constant 0 : index
    %c0_0 = arith.constant 0 : index
    %1 = vector.load %arg8[%c0, %c0_0] : memref<320x32xbf16, #tpu.memory_space<vmem>>, vector<32x32xbf16>
    tpu.vector_store %arg8[%c0, %c0_0], %0 {strides = array<i32>} : memref<320x32xbf16, #tpu.memory_space<vmem>>, vector<32x32xbf16>,
    %c0_1 = arith.constant 0 : index
    %c0_2 = arith.constant 0 : index
    %2 = vector.load %arg1[%c0_1, %c0_2] : memref<256x32xbf16, #tpu.memory_space<vmem>>, vector<256x32xbf16>
    %c32 = arith.constant 32 : index
    %c0_3 = arith.constant 0 : index
    %3 = vector.load %arg8[%c32, %c0_3] : memref<320x32xbf16, #tpu.memory_space<vmem>>, vector<256x32xbf16>
    tpu.vector_store %arg8[%c32, %c0_3], %2 {strides = array<i32>} : memref<320x32xbf16, #tpu.memory_space<vmem>>, vector<256x32xbf16>,
    %cst_4 = arith.constant 0.000000e+00 : bf16
    %4 = vector.broadcast %cst_4 : bf16 to vector<32x32xbf16>
    %c288 = arith.constant 288 : index
    %c0_5 = arith.constant 0 : index
    %5 = vector.load %arg8[%c288, %c0_5] : memref<320x32xbf16, #tpu.memory_space<vmem>>, vector<32x32xbf16>
    tpu.vector_store %arg8[%c288, %c0_5], %4 {strides = array<i32>} : memref<320x32xbf16, #tpu.memory_space<vmem>>, vector<32x32xbf16>,
    %6 = tpu.iota {dimensions = array<i32: 0>} : vector<256x1xi32>
    %c16_i32 = arith.constant 16 : i32
    %c0_i32 = arith.constant 0 : i32
    %7 = arith.cmpi eq, %c16_i32, %c0_i32 : i32
    %c1_i32 = arith.constant 1 : i32
    %8 = arith.select %7, %c1_i32, %c16_i32 : i32
    %9 = vector.broadcast %8 : i32 to vector<256x1xi32>
    %10 = arith.remsi %6, %9 : vector<256x1xi32>
    %c0_i32_6 = arith.constant 0 : i32
    %11 = vector.broadcast %c0_i32_6 : i32 to vector<256x1xi32>
    %12 = arith.cmpi ne, %10, %11 : vector<256x1xi32>
    %c0_i32_7 = arith.constant 0 : i32
    %13 = vector.broadcast %c0_i32_7 : i32 to vector<256x1xi32>
    %14 = arith.cmpi slt, %10, %13 : vector<256x1xi32>
    %c0_i32_8 = arith.constant 0 : i32
    %15 = arith.cmpi slt, %8, %c0_i32_8 : i32
    %16 = vector.broadcast %15 : i1 to vector<256x1xi1>
    %17 = vector.broadcast %16 : vector<256x1xi1> to vector<256x1xi1>
    %18 = arith.xori %14, %17 : vector<256x1xi1>
    %19 = arith.andi %18, %12 : vector<256x1xi1>
    %20 = vector.broadcast %8 : i32 to vector<256x1xi32>
    %21 = arith.addi %10, %20 : vector<256x1xi32>
    %22 = arith.select %19, %21, %10 : vector<256x1xi1>, vector<256x1xi32>
    %c0_i32_9 = arith.constant 0 : i32
    %23 = vector.broadcast %c0_i32_9 : i32 to vector<256x1xi32>
    %24 = arith.cmpi sgt, %22, %23 : vector<256x1xi32>
    %25 = arith.extui %24 : vector<256x1xi1> to vector<256x1xi32>
    %26 = arith.sitofp %25 : vector<256x1xi32> to vector<256x1xf32>
    %27 = arith.truncf %26 : vector<256x1xf32> to vector<256x1xbf16>
    %c15_i32 = arith.constant 15 : i32
    %28 = vector.broadcast %c15_i32 : i32 to vector<256x1xi32>
    %29 = arith.cmpi slt, %22, %28 : vector<256x1xi32>
    %30 = arith.extui %29 : vector<256x1xi1> to vector<256x1xi32>
    %31 = arith.sitofp %30 : vector<256x1xi32> to vector<256x1xf32>
    %32 = arith.truncf %31 : vector<256x1xf32> to vector<256x1xbf16>
    %c15 = arith.constant 15 : index
    %c0_10 = arith.constant 0 : index
    %33 = vector.load %arg8[%c15, %c0_10] : memref<320x32xbf16, #tpu.memory_space<vmem>>, vector<256x32xbf16>
    %34 = vector.broadcast %27 : vector<256x1xbf16> to vector<256x32xbf16>
    %35 = arith.mulf %33, %34 : vector<256x32xbf16>
    %c0_11 = arith.constant 0 : index
    %c0_12 = arith.constant 0 : index
    %36 = vector.load %arg9[%c0_11, %c0_12] : memref<256x288xbf16, #tpu.memory_space<vmem>>, vector<256x32xbf16>
    tpu.vector_store %arg9[%c0_11, %c0_12], %35 {strides = array<i32>} : memref<256x288xbf16, #tpu.memory_space<vmem>>, vector<256x32xbf16>,
    %c16 = arith.constant 16 : index
    %c0_13 = arith.constant 0 : index
    %37 = vector.load %arg8[%c16, %c0_13] : memref<320x32xbf16, #tpu.memory_space<vmem>>, vector<256x32xbf16>
    %c0_14 = arith.constant 0 : index
    %c32_15 = arith.constant 32 : index
    %38 = vector.load %arg9[%c0_14, %c32_15] : memref<256x288xbf16, #tpu.memory_space<vmem>>, vector<256x32xbf16>
    tpu.vector_store %arg9[%c0_14, %c32_15], %37 {strides = array<i32>} : memref<256x288xbf16, #tpu.memory_space<vmem>>, vector<256x32xbf16>,
    %c17 = arith.constant 17 : index
    %c0_16 = arith.constant 0 : index
    %39 = vector.load %arg8[%c17, %c0_16] : memref<320x32xbf16, #tpu.memory_space<vmem>>, vector<256x32xbf16>
    %40 = vector.broadcast %32 : vector<256x1xbf16> to vector<256x32xbf16>
    %41 = arith.mulf %39, %40 : vector<256x32xbf16>
    %c0_17 = arith.constant 0 : index
    %c64 = arith.constant 64 : index
    %42 = vector.load %arg9[%c0_17, %c64] : memref<256x288xbf16, #tpu.memory_space<vmem>>, vector<256x32xbf16>
    tpu.vector_store %arg9[%c0_17, %c64], %41 {strides = array<i32>} : memref<256x288xbf16, #tpu.memory_space<vmem>>, vector<256x32xbf16>,
    %c31 = arith.constant 31 : index
    %c0_18 = arith.constant 0 : index
    %43 = vector.load %arg8[%c31, %c0_18] : memref<320x32xbf16, #tpu.memory_space<vmem>>, vector<256x32xbf16>
    %44 = vector.broadcast %27 : vector<256x1xbf16> to vector<256x32xbf16>
    %45 = arith.mulf %43, %44 : vector<256x32xbf16>
    %c0_19 = arith.constant 0 : index
    %c96 = arith.constant 96 : index
    %46 = vector.load %arg9[%c0_19, %c96] : memref<256x288xbf16, #tpu.memory_space<vmem>>, vector<256x32xbf16>
    tpu.vector_store %arg9[%c0_19, %c96], %45 {strides = array<i32>} : memref<256x288xbf16, #tpu.memory_space<vmem>>, vector<256x32xbf16>,
    %c32_20 = arith.constant 32 : index
    %c0_21 = arith.constant 0 : index
    %47 = vector.load %arg8[%c32_20, %c0_21] : memref<320x32xbf16, #tpu.memory_space<vmem>>, vector<256x32xbf16>
    %c0_22 = arith.constant 0 : index
    %c128 = arith.constant 128 : index
    %48 = vector.load %arg9[%c0_22, %c128] : memref<256x288xbf16, #tpu.memory_space<vmem>>, vector<256x32xbf16>
    tpu.vector_store %arg9[%c0_22, %c128], %47 {strides = array<i32>} : memref<256x288xbf16, #tpu.memory_space<vmem>>, vector<256x32xbf16>,
    %c33 = arith.constant 33 : index
    %c0_23 = arith.constant 0 : index
    %49 = vector.load %arg8[%c33, %c0_23] : memref<320x32xbf16, #tpu.memory_space<vmem>>, vector<256x32xbf16>
    %50 = vector.broadcast %32 : vector<256x1xbf16> to vector<256x32xbf16>
    %51 = arith.mulf %49, %50 : vector<256x32xbf16>
    %c0_24 = arith.constant 0 : index
    %c160 = arith.constant 160 : index
    %52 = vector.load %arg9[%c0_24, %c160] : memref<256x288xbf16, #tpu.memory_space<vmem>>, vector<256x32xbf16>
    tpu.vector_store %arg9[%c0_24, %c160], %51 {strides = array<i32>} : memref<256x288xbf16, #tpu.memory_space<vmem>>, vector<256x32xbf16>,
    %c47 = arith.constant 47 : index
    %c0_25 = arith.constant 0 : index
    %53 = vector.load %arg8[%c47, %c0_25] : memref<320x32xbf16, #tpu.memory_space<vmem>>, vector<256x32xbf16>
    %54 = vector.broadcast %27 : vector<256x1xbf16> to vector<256x32xbf16>
    %55 = arith.mulf %53, %54 : vector<256x32xbf16>
    %c0_26 = arith.constant 0 : index
    %c192 = arith.constant 192 : index
    %56 = vector.load %arg9[%c0_26, %c192] : memref<256x288xbf16, #tpu.memory_space<vmem>>, vector<256x32xbf16>
    tpu.vector_store %arg9[%c0_26, %c192], %55 {strides = array<i32>} : memref<256x288xbf16, #tpu.memory_space<vmem>>, vector<256x32xbf16>,
    %c48 = arith.constant 48 : index
    %c0_27 = arith.constant 0 : index
    %57 = vector.load %arg8[%c48, %c0_27] : memref<320x32xbf16, #tpu.memory_space<vmem>>, vector<256x32xbf16>
    %c0_28 = arith.constant 0 : index
    %c224 = arith.constant 224 : index
    %58 = vector.load %arg9[%c0_28, %c224] : memref<256x288xbf16, #tpu.memory_space<vmem>>, vector<256x32xbf16>
    tpu.vector_store %arg9[%c0_28, %c224], %57 {strides = array<i32>} : memref<256x288xbf16, #tpu.memory_space<vmem>>, vector<256x32xbf16>,
    %c49 = arith.constant 49 : index
    %c0_29 = arith.constant 0 : index
    %59 = vector.load %arg8[%c49, %c0_29] : memref<320x32xbf16, #tpu.memory_space<vmem>>, vector<256x32xbf16>
    %60 = vector.broadcast %32 : vector<256x1xbf16> to vector<256x32xbf16>
    %61 = arith.mulf %59, %60 : vector<256x32xbf16>
    %c0_30 = arith.constant 0 : index
    %c256 = arith.constant 256 : index
    %62 = vector.load %arg9[%c0_30, %c256] : memref<256x288xbf16, #tpu.memory_space<vmem>>, vector<256x32xbf16>
    tpu.vector_store %arg9[%c0_30, %c256], %61 {strides = array<i32>} : memref<256x288xbf16, #tpu.memory_space<vmem>>, vector<256x32xbf16>,
    %c0_31 = arith.constant 0 : index
    %c0_32 = arith.constant 0 : index
    %63 = vector.load %arg9[%c0_31, %c0_32] : memref<256x288xbf16, #tpu.memory_space<vmem>>, vector<256x288xbf16>
    %c0_33 = arith.constant 0 : index
    %c0_34 = arith.constant 0 : index
    %c0_35 = arith.constant 0 : index
    %64 = vector.load %arg2[%c0_33, %c0_34, %c0_35] : memref<3x288x32xbf16, #tpu.memory_space<vmem>>, vector<1x288x32xbf16>
    %65 = vector.shape_cast %64 : vector<1x288x32xbf16> to vector<288x32xbf16>
    %cst_36 = arith.constant dense<0.000000e+00> : vector<256x32xf32>
    %66 = tpu.matmul %63, %65, %cst_36 {dimension_numbers = #tpu.dot_dimension_numbers<[1], [0], [0], [1], [0, 0, 1, 1], [], []>} : vector<256x288xbf16>, vector<288x32xbf16>, vector<256x32xf32> -> vector<256x32xf32>
    %c0_37 = arith.constant 0 : index
    %c0_38 = arith.constant 0 : index
    %67 = vector.load %arg3[%c0_37, %c0_38] : memref<9x32xf32, #tpu.memory_space<vmem>>, vector<1x32xf32>
    %68 = vector.broadcast %67 : vector<1x32xf32> to vector<256x32xf32>
    %69 = arith.addf %66, %68 : vector<256x32xf32>
    %cst_39 = arith.constant dense<0.000000e+00> : vector<32xf32>
    %70 = vector.multi_reduction <add>, %69, %cst_39 [0] : vector<256x32xf32> to vector<32xf32>
    %71 = vector.shape_cast %70 : vector<32xf32> to vector<1x32xf32>
    %cst_40 = arith.constant 2.560000e+02 : f32
    %72 = vector.broadcast %cst_40 : f32 to vector<1x32xf32>
    %73 = arith.divf %71, %72 : vector<1x32xf32>
    %74 = vector.broadcast %73 : vector<1x32xf32> to vector<256x32xf32>
    %75 = arith.subf %69, %74 : vector<256x32xf32>
    %76 = arith.mulf %75, %75 : vector<256x32xf32>
    %cst_41 = arith.constant dense<0.000000e+00> : vector<32xf32>
    %77 = vector.multi_reduction <add>, %76, %cst_41 [0] : vector<256x32xf32> to vector<32xf32>
    %78 = vector.shape_cast %77 : vector<32xf32> to vector<1x32xf32>
    %cst_42 = arith.constant 2.560000e+02 : f32
    %79 = vector.broadcast %cst_42 : f32 to vector<1x32xf32>
    %80 = arith.divf %78, %79 : vector<1x32xf32>
    %81 = vector.broadcast %73 : vector<1x32xf32> to vector<256x32xf32>
    %82 = arith.subf %69, %81 : vector<256x32xf32>
    %cst_43 = arith.constant 9.99999974E-6 : f32
    %83 = vector.broadcast %cst_43 : f32 to vector<1x32xf32>
    %84 = arith.addf %80, %83 : vector<1x32xf32>
    %85 = math.rsqrt %84 : vector<1x32xf32>
    %86 = vector.broadcast %85 : vector<1x32xf32> to vector<256x32xf32>
    %87 = arith.mulf %82, %86 : vector<256x32xf32>
    %c1 = arith.constant 1 : index
    %c0_44 = arith.constant 0 : index
    %88 = vector.load %arg3[%c1, %c0_44] : memref<9x32xf32, #tpu.memory_space<vmem>>, vector<1x32xf32>
    %89 = vector.broadcast %88 : vector<1x32xf32> to vector<256x32xf32>
    %90 = arith.mulf %87, %89 : vector<256x32xf32>
    %c2 = arith.constant 2 : index
    %c0_45 = arith.constant 0 : index
    %91 = vector.load %arg3[%c2, %c0_45] : memref<9x32xf32, #tpu.memory_space<vmem>>, vector<1x32xf32>
    %92 = vector.broadcast %91 : vector<1x32xf32> to vector<256x32xf32>
    %93 = arith.addf %90, %92 : vector<256x32xf32>
    %cst_46 = arith.constant 0.000000e+00 : f32
    %94 = vector.broadcast %cst_46 : f32 to vector<256x32xf32>
    %95 = arith.maximumf %93, %94 : vector<256x32xf32>
    %c0_47 = arith.constant 0 : index
    %c0_48 = arith.constant 0 : index
    %96 = vector.load %arg4[%c0_47, %c0_48] : memref<84x256xbf16, #tpu.memory_space<vmem>>, vector<64x256xbf16>
    %97 = arith.truncf %95 : vector<256x32xf32> to vector<256x32xbf16>
    %cst_49 = arith.constant dense<0.000000e+00> : vector<64x32xf32>
    %98 = tpu.matmul %96, %97, %cst_49 {dimension_numbers = #tpu.dot_dimension_numbers<[1], [0], [0], [1], [0, 0, 1, 1], [], []>} : vector<64x256xbf16>, vector<256x32xbf16>, vector<64x32xf32> -> vector<64x32xf32>
    %99 = arith.truncf %98 : vector<64x32xf32> to vector<64x32xbf16>
    %c32_50 = arith.constant 32 : index
    %c0_51 = arith.constant 0 : index
    %100 = vector.load %arg8[%c32_50, %c0_51] : memref<320x32xbf16, #tpu.memory_space<vmem>>, vector<64x32xbf16>
    tpu.vector_store %arg8[%c32_50, %c0_51], %99 {strides = array<i32>} : memref<320x32xbf16, #tpu.memory_space<vmem>>, vector<64x32xbf16>,
    %cst_52 = arith.constant 0.000000e+00 : bf16
    %101 = vector.broadcast %cst_52 : bf16 to vector<16x32xbf16>
    %c96_53 = arith.constant 96 : index
    %c0_54 = arith.constant 0 : index
    %102 = vector.load %arg8[%c96_53, %c0_54] : memref<320x32xbf16, #tpu.memory_space<vmem>>, vector<16x32xbf16>
    tpu.vector_store %arg8[%c96_53, %c0_54], %101 {strides = array<i32>} : memref<320x32xbf16, #tpu.memory_space<vmem>>, vector<16x32xbf16>,
    %103 = tpu.iota {dimensions = array<i32: 0>} : vector<64x1xi32>
    %c8_i32 = arith.constant 8 : i32
    %c0_i32_55 = arith.constant 0 : i32
    %104 = arith.cmpi eq, %c8_i32, %c0_i32_55 : i32
    %c1_i32_56 = arith.constant 1 : i32
    %105 = arith.select %104, %c1_i32_56, %c8_i32 : i32
    %106 = vector.broadcast %105 : i32 to vector<64x1xi32>
    %107 = arith.remsi %103, %106 : vector<64x1xi32>
    %c0_i32_57 = arith.constant 0 : i32
    %108 = vector.broadcast %c0_i32_57 : i32 to vector<64x1xi32>
    %109 = arith.cmpi ne, %107, %108 : vector<64x1xi32>
    %c0_i32_58 = arith.constant 0 : i32
    %110 = vector.broadcast %c0_i32_58 : i32 to vector<64x1xi32>
    %111 = arith.cmpi slt, %107, %110 : vector<64x1xi32>
    %c0_i32_59 = arith.constant 0 : i32
    %112 = arith.cmpi slt, %105, %c0_i32_59 : i32
    %113 = vector.broadcast %112 : i1 to vector<64x1xi1>
    %114 = vector.broadcast %113 : vector<64x1xi1> to vector<64x1xi1>
    %115 = arith.xori %111, %114 : vector<64x1xi1>
    %116 = arith.andi %115, %109 : vector<64x1xi1>
    %117 = vector.broadcast %105 : i32 to vector<64x1xi32>
    %118 = arith.addi %107, %117 : vector<64x1xi32>
    %119 = arith.select %116, %118, %107 : vector<64x1xi1>, vector<64x1xi32>
    %c0_i32_60 = arith.constant 0 : i32
    %120 = vector.broadcast %c0_i32_60 : i32 to vector<64x1xi32>
    %121 = arith.cmpi sgt, %119, %120 : vector<64x1xi32>
    %122 = arith.extui %121 : vector<64x1xi1> to vector<64x1xi32>
    %123 = arith.sitofp %122 : vector<64x1xi32> to vector<64x1xf32>
    %124 = arith.truncf %123 : vector<64x1xf32> to vector<64x1xbf16>
    %c7_i32 = arith.constant 7 : i32
    %125 = vector.broadcast %c7_i32 : i32 to vector<64x1xi32>
    %126 = arith.cmpi slt, %119, %125 : vector<64x1xi32>
    %127 = arith.extui %126 : vector<64x1xi1> to vector<64x1xi32>
    %128 = arith.sitofp %127 : vector<64x1xi32> to vector<64x1xf32>
    %129 = arith.truncf %128 : vector<64x1xf32> to vector<64x1xbf16>
    %c23 = arith.constant 23 : index
    %c0_61 = arith.constant 0 : index
    %130 = vector.load %arg8[%c23, %c0_61] : memref<320x32xbf16, #tpu.memory_space<vmem>>, vector<64x32xbf16>
    %131 = vector.broadcast %124 : vector<64x1xbf16> to vector<64x32xbf16>
    %132 = arith.mulf %130, %131 : vector<64x32xbf16>
    %c0_62 = arith.constant 0 : index
    %c0_63 = arith.constant 0 : index
    %133 = vector.load %arg9[%c0_62, %c0_63] : memref<256x288xbf16, #tpu.memory_space<vmem>>, vector<64x32xbf16>
    tpu.vector_store %arg9[%c0_62, %c0_63], %132 {strides = array<i32>} : memref<256x288xbf16, #tpu.memory_space<vmem>>, vector<64x32xbf16>,
    %c24 = arith.constant 24 : index
    %c0_64 = arith.constant 0 : index
    %134 = vector.load %arg8[%c24, %c0_64] : memref<320x32xbf16, #tpu.memory_space<vmem>>, vector<64x32xbf16>
    %c0_65 = arith.constant 0 : index
    %c32_66 = arith.constant 32 : index
    %135 = vector.load %arg9[%c0_65, %c32_66] : memref<256x288xbf16, #tpu.memory_space<vmem>>, vector<64x32xbf16>
    tpu.vector_store %arg9[%c0_65, %c32_66], %134 {strides = array<i32>} : memref<256x288xbf16, #tpu.memory_space<vmem>>, vector<64x32xbf16>,
    %c25 = arith.constant 25 : index
    %c0_67 = arith.constant 0 : index
    %136 = vector.load %arg8[%c25, %c0_67] : memref<320x32xbf16, #tpu.memory_space<vmem>>, vector<64x32xbf16>
    %137 = vector.broadcast %129 : vector<64x1xbf16> to vector<64x32xbf16>
    %138 = arith.mulf %136, %137 : vector<64x32xbf16>
    %c0_68 = arith.constant 0 : index
    %c64_69 = arith.constant 64 : index
    %139 = vector.load %arg9[%c0_68, %c64_69] : memref<256x288xbf16, #tpu.memory_space<vmem>>, vector<64x32xbf16>
    tpu.vector_store %arg9[%c0_68, %c64_69], %138 {strides = array<i32>} : memref<256x288xbf16, #tpu.memory_space<vmem>>, vector<64x32xbf16>,
    %c31_70 = arith.constant 31 : index
    %c0_71 = arith.constant 0 : index
    %140 = vector.load %arg8[%c31_70, %c0_71] : memref<320x32xbf16, #tpu.memory_space<vmem>>, vector<64x32xbf16>
    %141 = vector.broadcast %124 : vector<64x1xbf16> to vector<64x32xbf16>
    %142 = arith.mulf %140, %141 : vector<64x32xbf16>
    %c0_72 = arith.constant 0 : index
    %c96_73 = arith.constant 96 : index
    %143 = vector.load %arg9[%c0_72, %c96_73] : memref<256x288xbf16, #tpu.memory_space<vmem>>, vector<64x32xbf16>
    tpu.vector_store %arg9[%c0_72, %c96_73], %142 {strides = array<i32>} : memref<256x288xbf16, #tpu.memory_space<vmem>>, vector<64x32xbf16>,
    %c32_74 = arith.constant 32 : index
    %c0_75 = arith.constant 0 : index
    %144 = vector.load %arg8[%c32_74, %c0_75] : memref<320x32xbf16, #tpu.memory_space<vmem>>, vector<64x32xbf16>
    %c0_76 = arith.constant 0 : index
    %c128_77 = arith.constant 128 : index
    %145 = vector.load %arg9[%c0_76, %c128_77] : memref<256x288xbf16, #tpu.memory_space<vmem>>, vector<64x32xbf16>
    tpu.vector_store %arg9[%c0_76, %c128_77], %144 {strides = array<i32>} : memref<256x288xbf16, #tpu.memory_space<vmem>>, vector<64x32xbf16>,
    %c33_78 = arith.constant 33 : index
    %c0_79 = arith.constant 0 : index
    %146 = vector.load %arg8[%c33_78, %c0_79] : memref<320x32xbf16, #tpu.memory_space<vmem>>, vector<64x32xbf16>
    %147 = vector.broadcast %129 : vector<64x1xbf16> to vector<64x32xbf16>
    %148 = arith.mulf %146, %147 : vector<64x32xbf16>
    %c0_80 = arith.constant 0 : index
    %c160_81 = arith.constant 160 : index
    %149 = vector.load %arg9[%c0_80, %c160_81] : memref<256x288xbf16, #tpu.memory_space<vmem>>, vector<64x32xbf16>
    tpu.vector_store %arg9[%c0_80, %c160_81], %148 {strides = array<i32>} : memref<256x288xbf16, #tpu.memory_space<vmem>>, vector<64x32xbf16>,
    %c39 = arith.constant 39 : index
    %c0_82 = arith.constant 0 : index
    %150 = vector.load %arg8[%c39, %c0_82] : memref<320x32xbf16, #tpu.memory_space<vmem>>, vector<64x32xbf16>
    %151 = vector.broadcast %124 : vector<64x1xbf16> to vector<64x32xbf16>
    %152 = arith.mulf %150, %151 : vector<64x32xbf16>
    %c0_83 = arith.constant 0 : index
    %c192_84 = arith.constant 192 : index
    %153 = vector.load %arg9[%c0_83, %c192_84] : memref<256x288xbf16, #tpu.memory_space<vmem>>, vector<64x32xbf16>
    tpu.vector_store %arg9[%c0_83, %c192_84], %152 {strides = array<i32>} : memref<256x288xbf16, #tpu.memory_space<vmem>>, vector<64x32xbf16>,
    %c40 = arith.constant 40 : index
    %c0_85 = arith.constant 0 : index
    %154 = vector.load %arg8[%c40, %c0_85] : memref<320x32xbf16, #tpu.memory_space<vmem>>, vector<64x32xbf16>
    %c0_86 = arith.constant 0 : index
    %c224_87 = arith.constant 224 : index
    %155 = vector.load %arg9[%c0_86, %c224_87] : memref<256x288xbf16, #tpu.memory_space<vmem>>, vector<64x32xbf16>
    tpu.vector_store %arg9[%c0_86, %c224_87], %154 {strides = array<i32>} : memref<256x288xbf16, #tpu.memory_space<vmem>>, vector<64x32xbf16>,
    %c41 = arith.constant 41 : index
    %c0_88 = arith.constant 0 : index
    %156 = vector.load %arg8[%c41, %c0_88] : memref<320x32xbf16, #tpu.memory_space<vmem>>, vector<64x32xbf16>
    %157 = vector.broadcast %129 : vector<64x1xbf16> to vector<64x32xbf16>
    %158 = arith.mulf %156, %157 : vector<64x32xbf16>
    %c0_89 = arith.constant 0 : index
    %c256_90 = arith.constant 256 : index
    %159 = vector.load %arg9[%c0_89, %c256_90] : memref<256x288xbf16, #tpu.memory_space<vmem>>, vector<64x32xbf16>
    tpu.vector_store %arg9[%c0_89, %c256_90], %158 {strides = array<i32>} : memref<256x288xbf16, #tpu.memory_space<vmem>>, vector<64x32xbf16>,
    %c0_91 = arith.constant 0 : index
    %c0_92 = arith.constant 0 : index
    %160 = vector.load %arg9[%c0_91, %c0_92] : memref<256x288xbf16, #tpu.memory_space<vmem>>, vector<64x288xbf16>
    %c1_93 = arith.constant 1 : index
    %c0_94 = arith.constant 0 : index
    %c0_95 = arith.constant 0 : index
    %161 = vector.load %arg2[%c1_93, %c0_94, %c0_95] : memref<3x288x32xbf16, #tpu.memory_space<vmem>>, vector<1x288x32xbf16>
    %162 = vector.shape_cast %161 : vector<1x288x32xbf16> to vector<288x32xbf16>
    %cst_96 = arith.constant dense<0.000000e+00> : vector<64x32xf32>
    %163 = tpu.matmul %160, %162, %cst_96 {dimension_numbers = #tpu.dot_dimension_numbers<[1], [0], [0], [1], [0, 0, 1, 1], [], []>} : vector<64x288xbf16>, vector<288x32xbf16>, vector<64x32xf32> -> vector<64x32xf32>
    %c3 = arith.constant 3 : index
    %c0_97 = arith.constant 0 : index
    %164 = vector.load %arg3[%c3, %c0_97] : memref<9x32xf32, #tpu.memory_space<vmem>>, vector<1x32xf32>
    %165 = vector.broadcast %164 : vector<1x32xf32> to vector<64x32xf32>
    %166 = arith.addf %163, %165 : vector<64x32xf32>
    %cst_98 = arith.constant dense<0.000000e+00> : vector<32xf32>
    %167 = vector.multi_reduction <add>, %166, %cst_98 [0] : vector<64x32xf32> to vector<32xf32>
    %168 = vector.shape_cast %167 : vector<32xf32> to vector<1x32xf32>
    %cst_99 = arith.constant 6.400000e+01 : f32
    %169 = vector.broadcast %cst_99 : f32 to vector<1x32xf32>
    %170 = arith.divf %168, %169 : vector<1x32xf32>
    %171 = vector.broadcast %170 : vector<1x32xf32> to vector<64x32xf32>
    %172 = arith.subf %166, %171 : vector<64x32xf32>
    %173 = arith.mulf %172, %172 : vector<64x32xf32>
    %cst_100 = arith.constant dense<0.000000e+00> : vector<32xf32>
    %174 = vector.multi_reduction <add>, %173, %cst_100 [0] : vector<64x32xf32> to vector<32xf32>
    %175 = vector.shape_cast %174 : vector<32xf32> to vector<1x32xf32>
    %cst_101 = arith.constant 6.400000e+01 : f32
    %176 = vector.broadcast %cst_101 : f32 to vector<1x32xf32>
    %177 = arith.divf %175, %176 : vector<1x32xf32>
    %178 = vector.broadcast %170 : vector<1x32xf32> to vector<64x32xf32>
    %179 = arith.subf %166, %178 : vector<64x32xf32>
    %cst_102 = arith.constant 9.99999974E-6 : f32
    %180 = vector.broadcast %cst_102 : f32 to vector<1x32xf32>
    %181 = arith.addf %177, %180 : vector<1x32xf32>
    %182 = math.rsqrt %181 : vector<1x32xf32>
    %183 = vector.broadcast %182 : vector<1x32xf32> to vector<64x32xf32>
    %184 = arith.mulf %179, %183 : vector<64x32xf32>
    %c4 = arith.constant 4 : index
    %c0_103 = arith.constant 0 : index
    %185 = vector.load %arg3[%c4, %c0_103] : memref<9x32xf32, #tpu.memory_space<vmem>>, vector<1x32xf32>
    %186 = vector.broadcast %185 : vector<1x32xf32> to vector<64x32xf32>
    %187 = arith.mulf %184, %186 : vector<64x32xf32>
    %c5 = arith.constant 5 : index
    %c0_104 = arith.constant 0 : index
    %188 = vector.load %arg3[%c5, %c0_104] : memref<9x32xf32, #tpu.memory_space<vmem>>, vector<1x32xf32>
    %189 = vector.broadcast %188 : vector<1x32xf32> to vector<64x32xf32>
    %190 = arith.addf %187, %189 : vector<64x32xf32>
    %cst_105 = arith.constant 0.000000e+00 : f32
    %191 = vector.broadcast %cst_105 : f32 to vector<64x32xf32>
    %192 = arith.maximumf %190, %191 : vector<64x32xf32>
    %c64_106 = arith.constant 64 : index
    %c0_107 = arith.constant 0 : index
    %193 = vector.load %arg4[%c64_106, %c0_107] : memref<84x256xbf16, #tpu.memory_space<vmem>>, vector<16x64xbf16>
    %194 = arith.truncf %192 : vector<64x32xf32> to vector<64x32xbf16>
    %cst_108 = arith.constant dense<0.000000e+00> : vector<16x32xf32>
    %195 = tpu.matmul %193, %194, %cst_108 {dimension_numbers = #tpu.dot_dimension_numbers<[1], [0], [0], [1], [0, 0, 1, 1], [], []>} : vector<16x64xbf16>, vector<64x32xbf16>, vector<16x32xf32> -> vector<16x32xf32>
    %196 = arith.truncf %195 : vector<16x32xf32> to vector<16x32xbf16>
    %c32_109 = arith.constant 32 : index
    %c0_110 = arith.constant 0 : index
    %197 = vector.load %arg8[%c32_109, %c0_110] : memref<320x32xbf16, #tpu.memory_space<vmem>>, vector<16x32xbf16>
    tpu.vector_store %arg8[%c32_109, %c0_110], %196 {strides = array<i32>} : memref<320x32xbf16, #tpu.memory_space<vmem>>, vector<16x32xbf16>,
    %cst_111 = arith.constant 0.000000e+00 : bf16
    %198 = vector.broadcast %cst_111 : bf16 to vector<16x32xbf16>
    %c48_112 = arith.constant 48 : index
    %c0_113 = arith.constant 0 : index
    %199 = vector.load %arg8[%c48_112, %c0_113] : memref<320x32xbf16, #tpu.memory_space<vmem>>, vector<16x32xbf16>
    tpu.vector_store %arg8[%c48_112, %c0_113], %198 {strides = array<i32>} : memref<320x32xbf16, #tpu.memory_space<vmem>>, vector<16x32xbf16>,
    %200 = tpu.iota {dimensions = array<i32: 0>} : vector<16x1xi32>
    %c4_i32 = arith.constant 4 : i32
    %c0_i32_114 = arith.constant 0 : i32
    %201 = arith.cmpi eq, %c4_i32, %c0_i32_114 : i32
    %c1_i32_115 = arith.constant 1 : i32
    %202 = arith.select %201, %c1_i32_115, %c4_i32 : i32
    %203 = vector.broadcast %202 : i32 to vector<16x1xi32>
    %204 = arith.remsi %200, %203 : vector<16x1xi32>
    %c0_i32_116 = arith.constant 0 : i32
    %205 = vector.broadcast %c0_i32_116 : i32 to vector<16x1xi32>
    %206 = arith.cmpi ne, %204, %205 : vector<16x1xi32>
    %c0_i32_117 = arith.constant 0 : i32
    %207 = vector.broadcast %c0_i32_117 : i32 to vector<16x1xi32>
    %208 = arith.cmpi slt, %204, %207 : vector<16x1xi32>
    %c0_i32_118 = arith.constant 0 : i32
    %209 = arith.cmpi slt, %202, %c0_i32_118 : i32
    %210 = vector.broadcast %209 : i1 to vector<16x1xi1>
    %211 = vector.broadcast %210 : vector<16x1xi1> to vector<16x1xi1>
    %212 = arith.xori %208, %211 : vector<16x1xi1>
    %213 = arith.andi %212, %206 : vector<16x1xi1>
    %214 = vector.broadcast %202 : i32 to vector<16x1xi32>
    %215 = arith.addi %204, %214 : vector<16x1xi32>
    %216 = arith.select %213, %215, %204 : vector<16x1xi1>, vector<16x1xi32>
    %c0_i32_119 = arith.constant 0 : i32
    %217 = vector.broadcast %c0_i32_119 : i32 to vector<16x1xi32>
    %218 = arith.cmpi sgt, %216, %217 : vector<16x1xi32>
    %219 = arith.extui %218 : vector<16x1xi1> to vector<16x1xi32>
    %220 = arith.sitofp %219 : vector<16x1xi32> to vector<16x1xf32>
    %221 = arith.truncf %220 : vector<16x1xf32> to vector<16x1xbf16>
    %c3_i32 = arith.constant 3 : i32
    %222 = vector.broadcast %c3_i32 : i32 to vector<16x1xi32>
    %223 = arith.cmpi slt, %216, %222 : vector<16x1xi32>
    %224 = arith.extui %223 : vector<16x1xi1> to vector<16x1xi32>
    %225 = arith.sitofp %224 : vector<16x1xi32> to vector<16x1xf32>
    %226 = arith.truncf %225 : vector<16x1xf32> to vector<16x1xbf16>
    %c27 = arith.constant 27 : index
    %c0_120 = arith.constant 0 : index
    %227 = vector.load %arg8[%c27, %c0_120] : memref<320x32xbf16, #tpu.memory_space<vmem>>, vector<16x32xbf16>
    %228 = vector.broadcast %221 : vector<16x1xbf16> to vector<16x32xbf16>
    %229 = arith.mulf %227, %228 : vector<16x32xbf16>
    %c0_121 = arith.constant 0 : index
    %c0_122 = arith.constant 0 : index
    %230 = vector.load %arg9[%c0_121, %c0_122] : memref<256x288xbf16, #tpu.memory_space<vmem>>, vector<16x32xbf16>
    tpu.vector_store %arg9[%c0_121, %c0_122], %229 {strides = array<i32>} : memref<256x288xbf16, #tpu.memory_space<vmem>>, vector<16x32xbf16>,
    %c28 = arith.constant 28 : index
    %c0_123 = arith.constant 0 : index
    %231 = vector.load %arg8[%c28, %c0_123] : memref<320x32xbf16, #tpu.memory_space<vmem>>, vector<16x32xbf16>
    %c0_124 = arith.constant 0 : index
    %c32_125 = arith.constant 32 : index
    %232 = vector.load %arg9[%c0_124, %c32_125] : memref<256x288xbf16, #tpu.memory_space<vmem>>, vector<16x32xbf16>
    tpu.vector_store %arg9[%c0_124, %c32_125], %231 {strides = array<i32>} : memref<256x288xbf16, #tpu.memory_space<vmem>>, vector<16x32xbf16>,
    %c29 = arith.constant 29 : index
    %c0_126 = arith.constant 0 : index
    %233 = vector.load %arg8[%c29, %c0_126] : memref<320x32xbf16, #tpu.memory_space<vmem>>, vector<16x32xbf16>
    %234 = vector.broadcast %226 : vector<16x1xbf16> to vector<16x32xbf16>
    %235 = arith.mulf %233, %234 : vector<16x32xbf16>
    %c0_127 = arith.constant 0 : index
    %c64_128 = arith.constant 64 : index
    %236 = vector.load %arg9[%c0_127, %c64_128] : memref<256x288xbf16, #tpu.memory_space<vmem>>, vector<16x32xbf16>
    tpu.vector_store %arg9[%c0_127, %c64_128], %235 {strides = array<i32>} : memref<256x288xbf16, #tpu.memory_space<vmem>>, vector<16x32xbf16>,
    %c31_129 = arith.constant 31 : index
    %c0_130 = arith.constant 0 : index
    %237 = vector.load %arg8[%c31_129, %c0_130] : memref<320x32xbf16, #tpu.memory_space<vmem>>, vector<16x32xbf16>
    %238 = vector.broadcast %221 : vector<16x1xbf16> to vector<16x32xbf16>
    %239 = arith.mulf %237, %238 : vector<16x32xbf16>
    %c0_131 = arith.constant 0 : index
    %c96_132 = arith.constant 96 : index
    %240 = vector.load %arg9[%c0_131, %c96_132] : memref<256x288xbf16, #tpu.memory_space<vmem>>, vector<16x32xbf16>
    tpu.vector_store %arg9[%c0_131, %c96_132], %239 {strides = array<i32>} : memref<256x288xbf16, #tpu.memory_space<vmem>>, vector<16x32xbf16>,
    %c32_133 = arith.constant 32 : index
    %c0_134 = arith.constant 0 : index
    %241 = vector.load %arg8[%c32_133, %c0_134] : memref<320x32xbf16, #tpu.memory_space<vmem>>, vector<16x32xbf16>
    %c0_135 = arith.constant 0 : index
    %c128_136 = arith.constant 128 : index
    %242 = vector.load %arg9[%c0_135, %c128_136] : memref<256x288xbf16, #tpu.memory_space<vmem>>, vector<16x32xbf16>
    tpu.vector_store %arg9[%c0_135, %c128_136], %241 {strides = array<i32>} : memref<256x288xbf16, #tpu.memory_space<vmem>>, vector<16x32xbf16>,
    %c33_137 = arith.constant 33 : index
    %c0_138 = arith.constant 0 : index
    %243 = vector.load %arg8[%c33_137, %c0_138] : memref<320x32xbf16, #tpu.memory_space<vmem>>, vector<16x32xbf16>
    %244 = vector.broadcast %226 : vector<16x1xbf16> to vector<16x32xbf16>
    %245 = arith.mulf %243, %244 : vector<16x32xbf16>
    %c0_139 = arith.constant 0 : index
    %c160_140 = arith.constant 160 : index
    %246 = vector.load %arg9[%c0_139, %c160_140] : memref<256x288xbf16, #tpu.memory_space<vmem>>, vector<16x32xbf16>
    tpu.vector_store %arg9[%c0_139, %c160_140], %245 {strides = array<i32>} : memref<256x288xbf16, #tpu.memory_space<vmem>>, vector<16x32xbf16>,
    %c35 = arith.constant 35 : index
    %c0_141 = arith.constant 0 : index
    %247 = vector.load %arg8[%c35, %c0_141] : memref<320x32xbf16, #tpu.memory_space<vmem>>, vector<16x32xbf16>
    %248 = vector.broadcast %221 : vector<16x1xbf16> to vector<16x32xbf16>
    %249 = arith.mulf %247, %248 : vector<16x32xbf16>
    %c0_142 = arith.constant 0 : index
    %c192_143 = arith.constant 192 : index
    %250 = vector.load %arg9[%c0_142, %c192_143] : memref<256x288xbf16, #tpu.memory_space<vmem>>, vector<16x32xbf16>
    tpu.vector_store %arg9[%c0_142, %c192_143], %249 {strides = array<i32>} : memref<256x288xbf16, #tpu.memory_space<vmem>>, vector<16x32xbf16>,
    %c36 = arith.constant 36 : index
    %c0_144 = arith.constant 0 : index
    %251 = vector.load %arg8[%c36, %c0_144] : memref<320x32xbf16, #tpu.memory_space<vmem>>, vector<16x32xbf16>
    %c0_145 = arith.constant 0 : index
    %c224_146 = arith.constant 224 : index
    %252 = vector.load %arg9[%c0_145, %c224_146] : memref<256x288xbf16, #tpu.memory_space<vmem>>, vector<16x32xbf16>
    tpu.vector_store %arg9[%c0_145, %c224_146], %251 {strides = array<i32>} : memref<256x288xbf16, #tpu.memory_space<vmem>>, vector<16x32xbf16>,
    %c37 = arith.constant 37 : index
    %c0_147 = arith.constant 0 : index
    %253 = vector.load %arg8[%c37, %c0_147] : memref<320x32xbf16, #tpu.memory_space<vmem>>, vector<16x32xbf16>
    %254 = vector.broadcast %226 : vector<16x1xbf16> to vector<16x32xbf16>
    %255 = arith.mulf %253, %254 : vector<16x32xbf16>
    %c0_148 = arith.constant 0 : index
    %c256_149 = arith.constant 256 : index
    %256 = vector.load %arg9[%c0_148, %c256_149] : memref<256x288xbf16, #tpu.memory_space<vmem>>, vector<16x32xbf16>
    tpu.vector_store %arg9[%c0_148, %c256_149], %255 {strides = array<i32>} : memref<256x288xbf16, #tpu.memory_space<vmem>>, vector<16x32xbf16>,
    %c0_150 = arith.constant 0 : index
    %c0_151 = arith.constant 0 : index
    %257 = vector.load %arg9[%c0_150, %c0_151] : memref<256x288xbf16, #tpu.memory_space<vmem>>, vector<16x288xbf16>
    %c2_152 = arith.constant 2 : index
    %c0_153 = arith.constant 0 : index
    %c0_154 = arith.constant 0 : index
    %258 = vector.load %arg2[%c2_152, %c0_153, %c0_154] : memref<3x288x32xbf16, #tpu.memory_space<vmem>>, vector<1x288x32xbf16>
    %259 = vector.shape_cast %258 : vector<1x288x32xbf16> to vector<288x32xbf16>
    %cst_155 = arith.constant dense<0.000000e+00> : vector<16x32xf32>
    %260 = tpu.matmul %257, %259, %cst_155 {dimension_numbers = #tpu.dot_dimension_numbers<[1], [0], [0], [1], [0, 0, 1, 1], [], []>} : vector<16x288xbf16>, vector<288x32xbf16>, vector<16x32xf32> -> vector<16x32xf32>
    %c6 = arith.constant 6 : index
    %c0_156 = arith.constant 0 : index
    %261 = vector.load %arg3[%c6, %c0_156] : memref<9x32xf32, #tpu.memory_space<vmem>>, vector<1x32xf32>
    %262 = vector.broadcast %261 : vector<1x32xf32> to vector<16x32xf32>
    %263 = arith.addf %260, %262 : vector<16x32xf32>
    %cst_157 = arith.constant dense<0.000000e+00> : vector<32xf32>
    %264 = vector.multi_reduction <add>, %263, %cst_157 [0] : vector<16x32xf32> to vector<32xf32>
    %265 = vector.shape_cast %264 : vector<32xf32> to vector<1x32xf32>
    %cst_158 = arith.constant 1.600000e+01 : f32
    %266 = vector.broadcast %cst_158 : f32 to vector<1x32xf32>
    %267 = arith.divf %265, %266 : vector<1x32xf32>
    %268 = vector.broadcast %267 : vector<1x32xf32> to vector<16x32xf32>
    %269 = arith.subf %263, %268 : vector<16x32xf32>
    %270 = arith.mulf %269, %269 : vector<16x32xf32>
    %cst_159 = arith.constant dense<0.000000e+00> : vector<32xf32>
    %271 = vector.multi_reduction <add>, %270, %cst_159 [0] : vector<16x32xf32> to vector<32xf32>
    %272 = vector.shape_cast %271 : vector<32xf32> to vector<1x32xf32>
    %cst_160 = arith.constant 1.600000e+01 : f32
    %273 = vector.broadcast %cst_160 : f32 to vector<1x32xf32>
    %274 = arith.divf %272, %273 : vector<1x32xf32>
    %275 = vector.broadcast %267 : vector<1x32xf32> to vector<16x32xf32>
    %276 = arith.subf %263, %275 : vector<16x32xf32>
    %cst_161 = arith.constant 9.99999974E-6 : f32
    %277 = vector.broadcast %cst_161 : f32 to vector<1x32xf32>
    %278 = arith.addf %274, %277 : vector<1x32xf32>
    %279 = math.rsqrt %278 : vector<1x32xf32>
    %280 = vector.broadcast %279 : vector<1x32xf32> to vector<16x32xf32>
    %281 = arith.mulf %276, %280 : vector<16x32xf32>
    %c7 = arith.constant 7 : index
    %c0_162 = arith.constant 0 : index
    %282 = vector.load %arg3[%c7, %c0_162] : memref<9x32xf32, #tpu.memory_space<vmem>>, vector<1x32xf32>
    %283 = vector.broadcast %282 : vector<1x32xf32> to vector<16x32xf32>
    %284 = arith.mulf %281, %283 : vector<16x32xf32>
    %c8 = arith.constant 8 : index
    %c0_163 = arith.constant 0 : index
    %285 = vector.load %arg3[%c8, %c0_163] : memref<9x32xf32, #tpu.memory_space<vmem>>, vector<1x32xf32>
    %286 = vector.broadcast %285 : vector<1x32xf32> to vector<16x32xf32>
    %287 = arith.addf %284, %286 : vector<16x32xf32>
    %cst_164 = arith.constant 0.000000e+00 : f32
    %288 = vector.broadcast %cst_164 : f32 to vector<16x32xf32>
    %289 = arith.maximumf %287, %288 : vector<16x32xf32>
    %c80 = arith.constant 80 : index
    %c0_165 = arith.constant 0 : index
    %290 = vector.load %arg4[%c80, %c0_165] : memref<84x256xbf16, #tpu.memory_space<vmem>>, vector<4x16xbf16>
    %291 = arith.truncf %289 : vector<16x32xf32> to vector<16x32xbf16>
    %cst_166 = arith.constant dense<0.000000e+00> : vector<4x32xf32>
    %292 = tpu.matmul %290, %291, %cst_166 {dimension_numbers = #tpu.dot_dimension_numbers<[1], [0], [0], [1], [0, 0, 1, 1], [], []>} : vector<4x16xbf16>, vector<16x32xbf16>, vector<4x32xf32> -> vector<4x32xf32>
    %293 = arith.truncf %292 : vector<4x32xf32> to vector<4x32xbf16>
    %c0_167 = arith.constant 0 : index
    %c0_168 = arith.constant 0 : index
    %294 = vector.load %arg5[%c0_167, %c0_168] : memref<32x40xbf16, #tpu.memory_space<vmem>>, vector<32x40xbf16>
    %cst_169 = arith.constant dense<0.000000e+00> : vector<4x40xf32>
    %295 = tpu.matmul %293, %294, %cst_169 {dimension_numbers = #tpu.dot_dimension_numbers<[1], [0], [0], [1], [0, 0, 1, 1], [], []>} : vector<4x32xbf16>, vector<32x40xbf16>, vector<4x40xf32> -> vector<4x40xf32>
    %c0_170 = arith.constant 0 : index
    %c0_171 = arith.constant 0 : index
    %296 = vector.load %arg6[%c0_170, %c0_171] : memref<1x10xf32, #tpu.memory_space<vmem>>, vector<1x10xf32>
    %297 = vector.extract_strided_slice %295 {offsets = [0, 0], sizes = [1, 10], strides = [1, 1]} : vector<4x40xf32> to vector<1x10xf32>
    %298 = arith.addf %296, %297 : vector<1x10xf32>
    %299 = vector.extract_strided_slice %295 {offsets = [1, 10], sizes = [1, 10], strides = [1, 1]} : vector<4x40xf32> to vector<1x10xf32>
    %300 = arith.addf %298, %299 : vector<1x10xf32>
    %301 = vector.extract_strided_slice %295 {offsets = [2, 20], sizes = [1, 10], strides = [1, 1]} : vector<4x40xf32> to vector<1x10xf32>
    %302 = arith.addf %300, %301 : vector<1x10xf32>
    %303 = vector.extract_strided_slice %295 {offsets = [3, 30], sizes = [1, 10], strides = [1, 1]} : vector<4x40xf32> to vector<1x10xf32>
    %304 = arith.addf %302, %303 : vector<1x10xf32>
    %305 = vector.shape_cast %304 : vector<1x10xf32> to vector<1x10xf32>
    %306 = vector.broadcast %305 : vector<1x10xf32> to vector<8x10xf32>
    %c0_172 = arith.constant 0 : index
    %c0_173 = arith.constant 0 : index
    %307 = vector.load %arg7[%c0_172, %c0_173] : memref<8x10xf32, #tpu.memory_space<vmem>>, vector<8x10xf32>
    tpu.vector_store %arg7[%c0_172, %c0_173], %306 {strides = array<i32>} : memref<8x10xf32, #tpu.memory_space<vmem>>, vector<8x10xf32>,
    return
  }
  func.func @transform_0(%arg0: i32) -> (i32, i32) {
    %c0_i32 = arith.constant 0 : i32
    %c0_i32_0 = arith.constant 0 : i32
    return %arg0, %c0_i32 : i32, i32
  }
  func.func @transform_1(%arg0: i32) -> (i32, i32, i32) {
    %c0_i32 = arith.constant 0 : i32
    %c0_i32_0 = arith.constant 0 : i32
    %c0_i32_1 = arith.constant 0 : i32
    %c0_i32_2 = arith.constant 0 : i32
    return %c0_i32, %c0_i32_0, %c0_i32_1 : i32, i32, i32
  }
  func.func @transform_2(%arg0: i32) -> (i32, i32) {
    %c0_i32 = arith.constant 0 : i32
    %c0_i32_0 = arith.constant 0 : i32
    %c0_i32_1 = arith.constant 0 : i32
    return %c0_i32, %c0_i32_0 : i32, i32
  }
  func.func @transform_3(%arg0: i32) -> (i32, i32) {
    %c0_i32 = arith.constant 0 : i32
    %c0_i32_0 = arith.constant 0 : i32
    %c0_i32_1 = arith.constant 0 : i32
    return %c0_i32, %c0_i32_0 : i32, i32
  }
  func.func @transform_4(%arg0: i32) -> (i32, i32) {
    %c0_i32 = arith.constant 0 : i32
    %c0_i32_0 = arith.constant 0 : i32
    %c0_i32_1 = arith.constant 0 : i32
    return %c0_i32, %c0_i32_0 : i32, i32
  }
  func.func @transform_5(%arg0: i32) -> (i32, i32) {
    %c0_i32 = arith.constant 0 : i32
    %c0_i32_0 = arith.constant 0 : i32
    %c0_i32_1 = arith.constant 0 : i32
    return %c0_i32, %c0_i32_0 : i32, i32
  }
  func.func @transform_6(%arg0: i32) -> (i32, i32) {
    %c0_i32 = arith.constant 0 : i32
    %c0_i32_0 = arith.constant 0 : i32
    return %arg0, %c0_i32 : i32, i32
  }
}

</mosaic_0001>

<bundles_post_ra>
// kernel: convnet_forward.1
= control target key start
LH: loop header
LB: loop body
LE: loop exit
PB: predicated region body
PF: predicated region fallthrough
CT: control target
= control target key end

     0   :  { %s6599_s21 = smov 0   ;;  %s9213_s0 = inlined_call_operand.vmem [shape: bf16[512,32], index: 0, kind: input, shape index: {}]   ;;  %s9214_s1 = inlined_call_operand.vmem [shape: bf16[3,288,32], index: 1, kind: input, shape index: {}]   ;;  %s9215_s2 = inlined_call_operand.vmem [shape: f32[9,32], index: 2, kind: input, shape index: {}]   ;;  %s9216_s3 = inlined_call_operand.vmem [shape: bf16[84,256], index: 3, kind: input, shape index: {}]   ;;  %s9217_s4 = inlined_call_operand.vmem [shape: bf16[32,40], index: 4, kind: input, shape index: {}]   ;;  %s9218_s5 = inlined_call_operand.vmem [shape: f32[1,10], index: 5, kind: input, shape index: {}]   ;;  %s9219_s6 = inlined_call_operand.vmem [shape: f32[16,10], index: 6, kind: output, shape index: {}]  }
   0x1 LB: > { %s6605_s22 = sadd.s32 4294967295, %s6551_s21   ;;  %p5858_p0 = scmp.ge.s32.totalorder %s6551_s21, 1  ;;  %s6551_s21 = sphi %s6599_s21, %s16_s21  }
   0x2   : > { %p213_p1 = scmp.lt.s32.totalorder %s6551_s21, 3 }
   0x4   : > { %p214_p2 = pnand %p5858_p0, %p213_p1 }
   0x6   : > { %217 = sbr.rel (%p214_p2) target bundleno = 2697 (0xa89), region = 44 }
   0xd   : > { %vm253_vm0 = vcmask 261120   ;;  %s5859_s23 = sshll.u32 %s6605_s22, 5  ;;  %v402_v0 = vlaneseq  ;;  %v9220_v1 = vmov 0   ;;  %s6554_s28 = smov 32   ;;  %vm1060_vm4 = vsmask.f32 7424 }
   0xe   : > { %255 = vst.msk [vmem:[#allocation2 + $0x8] sm:$0xff] %vm253_vm0, %v9220_v1  ;;  %401 = vst.msk [vmem:[#allocation2 + $0x98] sm:$0xff] %vm253_vm0, %v9220_v1  ;;  %p243_p3 = scmp.lt.s32.totalorder %s5859_s23, 63  ;;  %v9223_v16 = vmov 0.0   ;;  %v9221_v21 = vmov 1.0   ;;  %s6557_s29 = smov 96  }
   0xf   : > { %254 = vst.msk [vmem:[#allocation2] sm:$0xff] %vm253_vm0, %v9220_v1  ;;  %400 = vst.msk [vmem:[#allocation2 + $0x90] sm:$0xff] %vm253_vm0, %v9220_v1  ;;  %v6618_v2 = vshrl.u32 %v402_v0, 7  ;;  %vm1222_vm6 = vsmask.f32 256  ;;  %s6558_s12 = smov 64  }
  0x10   : > { %s9248_s23 = smov (!%p243_p3, %s5859_s23), 63  ;;  %s6562_s25 = smov 108  }
  0x11   : > { %v6621_v3 = vadd.s32 8, %v6618_v2  ;;  %v6624_v4 = vadd.s32 24, %v6618_v2  ;;  %v6627_v5 = vadd.s32 16, %v6618_v2  ;;  %v439_v6 = vand.u32 15, %v6618_v2  ;;  %s5860_s24 = sshll.u32 %s9248_s23, 2  ;;  %s6563_s26 = smov 98  }
  0x12   : > { %v6631_v7 = vadd.s32 40, %v6618_v2  ;;  %s6636_s27 = scalar_lea.vmem %s9213_s0, %s5860_s24  ;;  %v6642_v11 = vadd.s32 32, %v6618_v2  ;;  %v6669_v29 = vadd.s32 56, %v6618_v2  ;;  %v6685_v46 = vadd.s32 48, %v6618_v2  ;;  %s6561_s24 = smov 118  }
  0x13   : > { %9227 = vst [vmem:[#allocation4_spill] sm:$0xff] %v6621_v3  ;;  %v446_v8 = vand.u32 15, %v6621_v3  ;;  %v460_v9 = vand.u32 15, %v6624_v4  ;;  %v453_v10 = vand.u32 15, %v6627_v5  ;;  %v6454_v12 = vld [vmem:[%s6636_s27 + $0x8] sm:$0xff]   ;;  %vm819_vm1 = vcmp.gt.s32.totalorder %v439_v6, 0 }
  0x14   : > { %385 = vst.msk [vmem:[#allocation2 + $0x18] sm:$0xff] %vm253_vm0, %v6454_v12  ;;  %v6455_v14 = vld [vmem:[%s6636_s27] sm:$0xff]   ;;  %v6456_v15 = vld [vmem:[%s6636_s27 + $0x10] sm:$0xff]   ;;  %v5878_v19 = vsel %vm819_vm1, 1.0, %v9223_v16  ;;  %v6457_v20 = vld [vmem:[%s6636_s27 + $0x18] sm:$0xff]   ;;  %v474_v28 = vand.u32 15, %v6631_v7 }
  0x15   : > { %v6645_v13 = vld [vmem:[#allocation2 + $0x8] sm:$0xff]  ;;  %vm932_vm2 = vcmp.lt.s32.totalorder %v446_v8, 15  ;;  %vm934_vm3 = vcmp.lt.s32.totalorder %v460_v9, 15  ;;  %vm821_vm5 = vcmp.gt.s32.totalorder %v453_v10, 0  ;;  %384 = vst.msk [vmem:[#allocation2 + $0x10] sm:$0xff] %vm253_vm0, %v6455_v14  ;;  %v915_v25 = vpack.c.bf16 %v9221_v21, %v5878_v19  ;;  %v6458_v26 = vld [vmem:[%s6636_s27 + $0x20] sm:$0xff]  }
  0x16   : > { %1419 = vrot.lane.b32.xlu0 %v6645_v13, %s6554_s28  ;;  %v5894_v17 = vsel %vm932_vm2, 1.0, %v9223_v16  ;;  %v5895_v18 = vsel %vm934_vm3, 1.0, %v9223_v16  ;;  %v5879_v24 = vsel %vm821_vm5, 1.0, %v9223_v16  ;;  %386 = vst.msk [vmem:[#allocation2 + $0x20] sm:$0xff] %vm253_vm0, %v6456_v15  ;;  %387 = vst.msk [vmem:[#allocation2 + $0x28] sm:$0xff] %vm253_vm0, %v6457_v20  ;;  %v6459_v30 = vld [vmem:[%s6636_s27 + $0x28] sm:$0xff]  }
  0x17   : > { %v1027_v22 = vpack.c.bf16 %v5894_v17, %v9221_v21  ;;  %v1028_v23 = vpack.c.bf16 %v5895_v18, %v9221_v21  ;;  %v6664_v27 = vpack.c.bf16 %v9221_v21, %v5879_v24  ;;  %388 = vst.msk [vmem:[#allocation2 + $0x30] sm:$0xff] %vm253_vm0, %v6458_v26  ;;  %v1062_v35 = vshll.u32 %v915_v25, 16  ;;  %389 = vst.msk [vmem:[#allocation2 + $0x38] sm:$0xff] %vm253_vm0, %v6459_v30  ;;  %v6460_v61 = vld [vmem:[%s6636_s27 + $0x30] sm:$0xff]   ;;  %v6461_v14 = vld [vmem:[%s6636_s27 + $0x38] sm:$0xff]   ;;  %p248_p4 = scmp.lt.s32.totalorder %s6605_s22, 1 }
  0x18   : > { %v1065_v36 = vshrl.u32 %v915_v25, 16  ;;  %vm936_vm7 = vcmp.lt.s32.totalorder %v474_v28, 15  ;;  %v467_v41 = vand.u32 15, %v6642_v11  ;;  %390 = vst.msk [vmem:[#allocation2 + $0x40] sm:$0xff] %vm253_vm0, %v6460_v61  ;;  %v6462_v20 = vld [vmem:[%s6636_s27 + $0x40] sm:$0xff]   ;;  %391 = vst.msk [vmem:[#allocation2 + $0x48] sm:$0xff] %vm253_vm0, %v6461_v14 }
  0x19   : > { %v1502_v31 = vshrl.u32 %v1027_v22, 16  ;;  %v1505_v32 = vshll.u32 %v1027_v22, 16  ;;  %v1509_v33 = vshrl.u32 %v1028_v23, 16  ;;  %v1512_v34 = vshll.u32 %v1028_v23, 16  ;;  %v6463_v26 = vld [vmem:[%s6636_s27 + $0x48] sm:$0xff]   ;;  %392 = vst.msk [vmem:[#allocation2 + $0x50] sm:$0xff] %vm253_vm0, %v6462_v20 }
  0x1a   : > { %v1069_v37 = vshll.u32 %v6664_v27, 16  ;;  %v5896_v40 = vsel %vm936_vm7, 1.0, %v9223_v16  ;;  %v6679_v43 = vrot.slane %v1062_v35, 1  ;;  %vm823_vm8 = vcmp.gt.s32.totalorder %v467_v41, 0  ;;  %393 = vst.msk [vmem:[#allocation2 + $0x58] sm:$0xff] %vm253_vm0, %v6463_v26  ;;  %s9250_s22 = smov (!%p248_p4, %s6605_s22), 1 }
  0x1b   : > { %v1504_v38 = vrot.slane %v1502_v31, 7  ;;  %v1511_v39 = vrot.slane %v1509_v33, 7  ;;  %v6677_v42 = vld [vmem:[#allocation2 + $0x18] sm:$0xff]  ;;  %v1029_v45 = vpack.c.bf16 %v5896_v40, %v9221_v21  ;;  %v1073_v49 = vshrl.u32 %v6664_v27, 16  ;;  %s5861_s7 = sshll.u32 %s9250_s22, 3 }
  0x1c   : > { %v6681_v44 = vrot.slane %v1069_v37, 1  ;;  %2614 = vrot.lane.b32.xlu0 %v6677_v42, %s6557_s29  ;;  %v6690_v50 = vld [vmem:[#allocation2 + $0x10] sm:$0xff]  ;;  %v1067_v51 = vor.u32 %v1065_v36, %v6679_v43  ;;  %v6694_v55 = vsel %vm823_vm8, 1.0, %v9223_v16  ;;  %s251_s10 = scalar_lea.vmem %s9219_s6, %s5861_s7 }
  0x1d   : > { %v1507_v47 = vor.u32 %v1505_v32, %v1504_v38  ;;  %v1514_v48 = vor.u32 %v1512_v34, %v1511_v39  ;;  %v2352_v52 = vld [vmem:[#allocation2 + $0x10] sm:$0x80]  ;;  %v1517_v53 = vshrl.u32 %v1029_v45, 16  ;;  %v1520_v54 = vshll.u32 %v1029_v45, 16  ;;  %1421 = vrot.lane.b32.xlu1 %v6690_v50, %s6554_s28  ;;  %v6698_v56 = vld [vmem:[#allocation2 + $0x20] sm:$0xff]  ;;  %v6725_v33 = vld [vmem:[#allocation2 + $0x28] sm:$0xff] }
  0x1e   : > { %v2369_v60 = vmul.bf16 %v2352_v52, %v6679_v43  ;;  %v6709_v0 = vsel %vm1060_vm4, %v1067_v51, %v6681_v44  ;;  %v6465_v51 = vld [vmem:[%s9214_s1 + $0x40] sm:$0xff]   ;;  %v6466_v52 = vld [vmem:[%s6636_s27 + $0x58] sm:$0xff]   ;;  %v1075_v20 = vor.u32 %v1073_v49, %v6681_v44 }
  0x1f   : > { %v1515_v57 = vsel %vm1222_vm6, %v1504_v38, %v1514_v48  ;;  %v2139_v58 = vmul.bf16 %v1507_v47, %v6690_v50  ;;  %v2695_v59 = vmul.bf16 %v6677_v42, %v1507_v47  ;;  %v6711_v6 = vrot.slane %v1517_v53, 7  ;;  %v6464_v38 = vld [vmem:[%s6636_s27 + $0x50] sm:$0xff]   ;;  %6102 = vmatprep.subr.bf16.mxu0 %v6465_v51  ;;  %395 = vst.msk [vmem:[#allocation2 + $0x68] sm:$0xff] %vm253_vm0, %v6466_v52  ;;  %v6796_v51 = vld [vmem:[#allocation2 + $0x18] sm:$0xff] }
  0x20   : > { %v2140_v62 = vmul.bf16 %v6677_v42, %v1515_v57  ;;  %v2696_v63 = vmul.bf16 %v6698_v56, %v1515_v57  ;;  %2616 = vrot.lane.b32.xlu0 %v6698_v56, %s6557_s29  ;;  %v2370_v19 = vmul.bf16 %v6677_v42, %v6709_v0  ;;  %v2387_v24 = vshrl.u32 %v2369_v60, 16  ;;  %394 = vst.msk [vmem:[#allocation2 + $0x60] sm:$0xff] %vm253_vm0, %v6464_v38 }
  0x21   : > { %v2157_v8 = vshrl.u32 %v2139_v58, 16  ;;  %v2159_v9 = vshll.u32 %v2139_v58, 16  ;;  %v2713_v10 = vshrl.u32 %v2695_v59, 16  ;;  %v2715_v12 = vshll.u32 %v2695_v59, 16  ;;  %1423 = vrot.lane.b32.xlu1 %v6677_v42, %s6554_s28  ;;  %v6467_v59 = vld [vmem:[%s9214_s1] sm:$0xff]   ;;  %2107 = vst.msk [vmem:[#allocation3 + $0x20] sm:$0xff] %vm253_vm0, %v6796_v51 }
  0x22   : > { %v2164_v15 = vshll.u32 %v2140_v62, 16  ;;  %v2720_v17 = vshll.u32 %v2696_v63, 16  ;;  %v2724_v18 = vshrl.u32 %v2696_v63, 16  ;;  %v1522_v25 = vor.u32 %v1520_v54, %v6711_v6  ;;  %6103 = vmatpush3.bf16.msra.mxu0 %v6467_v59 }
  0x23   : > { %v2161_v22 = vrot.slane %v2159_v9, 1  ;;  %v2717_v23 = vrot.slane %v2715_v12, 1  ;;  %v2391_v31 = vshrl.u32 %v2370_v19, 16  ;;  %v2394_v32 = vshll.u32 %v2370_v19, 16 }
  0x24   : > { %v2166_v28 = vrot.slane %v2164_v15, 1  ;;  %v2722_v30 = vrot.slane %v2720_v17, 1  ;;  %v2389_v36 = vrot.slane %v2387_v24, 7  ;;  %v1523_v37 = vsel %vm1222_vm6, %v1511_v39, %v1522_v25 }
  0x25   : > { %v2162_v34 = vor.u32 %v2161_v22, %v2157_v8  ;;  %v2718_v35 = vor.u32 %v2717_v23, %v2713_v10  ;;  %v6731_v41 = vrot.slane %v2391_v31, 7  ;;  %v6734_v45 = vmul.bf16 %v6698_v56, %v1523_v37  ;;  %v1859_v8 = vld [vmem:[#allocation2 + $0x8] sm:$0x80] }
  0x26   : > { %v2726_v40 = vor.u32 %v2724_v18, %v2722_v30  ;;  %v2168_v48 = vshrl.u32 %v2140_v62, 16  ;;  %v6743_v39 = vmul.bf16 %v6725_v33, %v1523_v37  ;;  %v1645_v58 = vmul.bf16 %v1507_v47, %v6645_v13 }
  0x27   : > { %v2167_v53 = vsel %vm1060_vm4, %v2162_v34, %v2166_v28  ;;  %v2723_v54 = vsel %vm1060_vm4, %v2718_v35, %v2722_v30  ;;  %v2396_v60 = vor.u32 %v2394_v32, %v6731_v41  ;;  %v2172_v62 = vshll.u32 %v6734_v45, 16  ;;  %v6470_v30 = vld [vmem:[%s9214_s1 + $0x50] sm:$0xff]  }
  0x28   : > { %2860 = vst.msk [vmem:[#allocation3 + $0x10] sm:$0xff] %vm253_vm0, %v2723_v54  ;;  %2288 = vrot.lane.b32.xlu0 %v2167_v53, %s6554_s28  ;;  %v2170_v61 = vor.u32 %v2168_v48, %v2166_v28  ;;  %v1646_v63 = vmul.bf16 %v1515_v57, %v6690_v50  ;;  %v2728_v13 = vshll.u32 %v6743_v39, 16  ;;  %v2732_v47 = vshrl.u32 %v6743_v39, 16  ;;  %v6468_v57 = vld [vmem:[%s9214_s1 + $0x48] sm:$0xff]   ;;  %v6778_v28 = vld [vmem:[#allocation2 + $0x10] sm:$0xff]  ;;  %v6472_v39 = vld [vmem:[%s9214_s1 + $0x58] sm:$0xff]  }
  0x29   : > { %v1663_v9 = vshrl.u32 %v1645_v58, 16  ;;  %v1665_v10 = vshll.u32 %v1645_v58, 16  ;;  %v2397_v12 = vsel %vm1222_vm6, %v2389_v36, %v2396_v60  ;;  %v2174_v14 = vrot.slane %v2172_v62, 1  ;;  %6104 = vmatprep.subr.bf16.mxu0 %v6468_v57  ;;  %2106 = vst.msk [vmem:[#allocation3 + $0x8] sm:$0xff] %vm253_vm0, %v6778_v28  ;;  %v6471_v48 = vld [vmem:[%s9214_s1 + $0x10] sm:$0xff]  }
  0x2a   : > { %v1670_v15 = vshll.u32 %v1646_v63, 16  ;;  %v6761_v17 = vpack.c.bf16 %v9221_v21, %v6694_v55  ;;  %2518 = vrot.lane.b32.xlu1 %v2397_v12, %s6558_s12  ;;  %v2730_v18 = vrot.slane %v2728_v13, 1  ;;  %v1876_v22 = vmul.bf16 %v1859_v8, %v6679_v43  ;;  %v6469_v55 = vld [vmem:[%s9214_s1 + $0x8] sm:$0xff]   ;;  %v6474_v8 = vld [vmem:[%s9214_s1 + $0x18] sm:$0xff]  }
  0x2b   : > { %v1667_v19 = vrot.slane %v1665_v10, 1  ;;  %v2175_v23 = vsel %vm1060_vm4, %v2170_v61, %v2174_v14  ;;  %v1877_v26 = vmul.bf16 %v6690_v50, %v6709_v0  ;;  %6105 = vmatpush3.bf16.msra.mxu0 %v6469_v55  ;;  %v6789_v34 = vmul.bf16 %v6677_v42, %v1523_v37 }
  0x2c   : > { %v1672_v24 = vrot.slane %v1670_v15, 1  ;;  %v1077_v25 = vshll.u32 %v6761_v17, 16  ;;  %v2731_v27 = vsel %vm1060_vm4, %v2726_v40, %v2730_v18  ;;  %2290 = vrot.lane.b32.xlu0 %v2175_v23, %s6554_s28  ;;  %v1894_v49 = vshrl.u32 %v1876_v22, 16  ;;  %6106 = vmatprep.subr.bf16.mxu0 %v6470_v30 }
  0x2d   : > { %v1668_v44 = vor.u32 %v1667_v19, %v1663_v9  ;;  %2861 = vst.msk [vmem:[#allocation3 + $0x28] sm:$0xff] %vm253_vm0, %v2731_v27  ;;  %v1898_v31 = vshrl.u32 %v1877_v26, 16  ;;  %v1901_v32 = vshll.u32 %v1877_v26, 16  ;;  %v1674_v38 = vshrl.u32 %v1646_v63, 16  ;;  %v6473_v63 = vld [vmem:[%s6636_s27 + $0x60] sm:$0xff]  }
  0x2e   : > { %v1079_v50 = vrot.slane %v1077_v25, 1  ;;  %v1896_v36 = vrot.slane %v1894_v49, 7  ;;  %v488_v40 = vand.u32 15, %v6669_v29  ;;  %v1678_v53 = vshll.u32 %v6789_v34, 16  ;;  %396 = vst.msk [vmem:[#allocation2 + $0x70] sm:$0xff] %vm253_vm0, %v6473_v63  ;;  %v6477_v25 = vld [vmem:[%s9214_s1 + $0x68] sm:$0xff]  }
  0x2f   : > { %v1673_v35 = vsel %vm1060_vm4, %v1668_v44, %v1672_v24  ;;  %v6802_v37 = vrot.slane %v1898_v31, 7  ;;  %v2176_v54 = vshrl.u32 %v6734_v45, 16  ;;  %v6811_v58 = vor.u32 %v2732_v47, %v2730_v18  ;;  %6107 = vmatpush3.bf16.msra.mxu0 %v6471_v48  ;;  %v6479_v48 = vld [vmem:[%s9214_s1 + $0x70] sm:$0xff]  }
  0x30   : > { %1794 = vrot.lane.b32.xlu1 %v1673_v35, %s6558_s12  ;;  %v6800_v52 = vsel %vm1060_vm4, %v1075_v20, %v1079_v50  ;;  %vm938_vm9 = vcmp.lt.s32.totalorder %v488_v40, 15  ;;  %v1676_v61 = vor.u32 %v1674_v38, %v1672_v24  ;;  %v1680_v62 = vrot.slane %v1678_v53, 1  ;;  %6108 = vmatprep.subr.bf16.mxu0 %v6472_v39  ;;  %v6478_v35 = vld [vmem:[%s9214_s1 + $0x28] sm:$0xff]  }
  0x31   : > { %v2371_v59 = vmul.bf16 %v6698_v56, %v6800_v52  ;;  %v1903_v60 = vor.u32 %v1901_v32, %v6802_v37  ;;  %v5897_v45 = vsel %vm938_vm9, 1.0, %v9223_v16  ;;  %v1878_v10 = vmul.bf16 %v6677_v42, %v6800_v52  ;;  %v6475_v42 = vld [vmem:[%s9214_s1 + $0x60] sm:$0xff]  }
  0x32   : > { %v1030_v9 = vpack.c.bf16 %v5897_v45, %v9221_v21  ;;  %v6825_v15 = vor.u32 %v2176_v54, %v2174_v14  ;;  %v481_v57 = vand.u32 15, %v6685_v46  ;;  %v1081_v18 = vshrl.u32 %v6761_v17, 16  ;;  %v6476_v14 = vld [vmem:[%s9214_s1 + $0x20] sm:$0xff]  }
  0x33   : > { %v2399_v13 = vshrl.u32 %v2371_v59, 16  ;;  %v2402_v47 = vshll.u32 %v2371_v59, 16  ;;  %v1904_v12 = vsel %vm1222_vm6, %v1896_v36, %v1903_v60  ;;  %v1906_v55 = vshrl.u32 %v1878_v10, 16  ;;  %6109 = vmatpush3.bf16.msra.mxu0 %v6474_v8  ;;  %v6480_v59 = vld [vmem:[%s6636_s27 + $0x68] sm:$0xff]  }
  0x34   : > { %2025 = vrot.lane.b32.xlu1 %v1904_v12, %s6557_s29  ;;  %v1525_v20 = vshrl.u32 %v1030_v9, 16  ;;  %v1528_v22 = vshll.u32 %v1030_v9, 16  ;;  %v1681_v17 = vsel %vm1060_vm4, %v1676_v61, %v1680_v62  ;;  %v1909_v23 = vshll.u32 %v1878_v10, 16  ;;  %6110 = vmatprep.subr.bf16.mxu0 %v6475_v42  ;;  %v6872_v61 = vld [vmem:[#allocation2 + $0x30] sm:$0xff]  ;;  %397 = vst.msk [vmem:[#allocation2 + $0x78] sm:$0xff] %vm253_vm0, %v6480_v59 }
  0x35   : > { %v6830_v19 = vrot.slane %v2399_v13, 7  ;;  %vm825_vm10 = vcmp.gt.s32.totalorder %v481_v57, 0  ;;  %v1083_v24 = vor.u32 %v1081_v18, %v1079_v50  ;;  %v6846_v44 = vrot.slane %v1906_v55, 7  ;;  %v6482_v55 = vld [vmem:[%s9214_s1 + $0x78] sm:$0xff]   ;;  %v6486_v10 = vld [vmem:[%s6636_s27 + $0x70] sm:$0xff]  }
  0x36   : > { %v6844_v27 = vrot.slane %v1525_v20, 7  ;;  %v5881_v49 = vsel %vm825_vm10, 1.0, %v9223_v16  ;;  %v1682_v31 = vshrl.u32 %v6789_v34, 16  ;;  %v412_v50 = vadd.s32 72, %v6618_v2  ;;  %398 = vst.msk [vmem:[#allocation2 + $0x80] sm:$0xff] %vm253_vm0, %v6486_v10 }
  0x37   : > { %v2404_v26 = vor.u32 %v2402_v47, %v6830_v19  ;;  %v6850_v30 = vpack.c.bf16 %v9221_v21, %v5881_v49  ;;  %v411_v32 = vadd.s32 64, %v6618_v2  ;;  %v1911_v40 = vor.u32 %v1909_v23, %v6846_v44  ;;  %6111 = vmatpush3.bf16.msra.mxu0 %v6476_v14 }
  0x38   : > { %1796 = vrot.lane.b32.xlu1 %v1681_v17, %s6558_s12  ;;  %v1530_v38 = vor.u32 %v1528_v22, %v6844_v27  ;;  %v414_v34 = vadd.s32 88, %v6618_v2  ;;  %v1684_v54 = vor.u32 %v1682_v31, %v1680_v62  ;;  %v502_v39 = vand.u32 15, %v412_v50  ;;  %6112 = vmatprep.subr.bf16.mxu0 %v6477_v25 }
  0x39   : > { %v2405_v36 = vsel %vm1222_vm6, %v6731_v41, %v2404_v26  ;;  %v1085_v53 = vshll.u32 %v6850_v30, 16  ;;  %v495_v41 = vand.u32 15, %v411_v32  ;;  %v1912_v45 = vsel %vm1222_vm6, %v6802_v37, %v1911_v40 }
  0x3a   : > { %2520 = vrot.lane.b32.xlu0 %v2405_v36, %s6558_s12  ;;  %v1531_v60 = vsel %vm1222_vm6, %v6711_v6, %v1530_v38  ;;  %v1089_v63 = vshrl.u32 %v6850_v30, 16  ;;  %v516_v8 = vand.u32 15, %v414_v34  ;;  %v6481_v6 = vld [vmem:[%s9214_s1 + $0x30] sm:$0xff]   ;;  %vm940_vm11 = vcmp.lt.s32.totalorder %v502_v39, 15  ;;  %v6483_v30 = vld [vmem:[%s9214_s1 + $0x80] sm:$0xff]  }
  0x3b   : > { %v2142_v13 = vmul.bf16 %v6725_v33, %v1531_v60  ;;  %v2698_v47 = vmul.bf16 %v6872_v61, %v1531_v60  ;;  %v1087_v62 = vrot.slane %v1085_v53, 1  ;;  %v6880_v9 = vmul.bf16 %v6698_v56, %v1531_v60  ;;  %6113 = vmatpush3.bf16.msra.mxu0 %v6478_v35  ;;  %6353 = vmatprep.subr.bf16.mxu1 %v6483_v30 }
  0x3c   : > { %2027 = vrot.lane.b32.xlu1 %v1912_v45, %s6557_s29  ;;  %vm6887_vm12 = vcmp.gt.s32.totalorder %v495_v41, 0  ;;  %vm6891_vm13 = vcmp.lt.s32.totalorder %v516_v8, 15  ;;  %v6896_v12 = vadd.s32 80, %v6618_v2  ;;  %6114 = vmatprep.subr.bf16.mxu0 %v6479_v48  ;;  %v5898_v23 = vsel %vm940_vm11, 1.0, %v9223_v16  ;;  %v6484_v48 = vld [vmem:[%s9214_s1 + $0x38] sm:$0xff]   ;;  %v6936_v8 = vld [vmem:[#allocation2 + $0x20] sm:$0xff] }
  0x3d   : > { %v2180_v57 = vshll.u32 %v2142_v13, 16  ;;  %v2736_v18 = vshll.u32 %v2698_v47, 16  ;;  %v2740_v20 = vshrl.u32 %v2698_v47, 16  ;;  %v6899_v22 = vsel %vm1060_vm4, %v1083_v24, %v1087_v62  ;;  %6354 = vmatpush3.bf16.msra.mxu1 %v6483_v30  ;;  %2108 = vst.msk [vmem:[#allocation3 + $0x38] sm:$0xff] %vm253_vm0, %v6936_v8 }
  0x3e   : > { %v2372_v42 = vmul.bf16 %v6725_v33, %v6899_v22  ;;  %v1686_v14 = vshll.u32 %v6880_v9, 16  ;;  %v1879_v17 = vmul.bf16 %v6698_v56, %v6899_v22  ;;  %v1031_v24 = vpack.c.bf16 %v5898_v23, %v9221_v21 }
  0x3f   : > { %v2182_v25 = vrot.slane %v2180_v57, 1  ;;  %v2738_v26 = vrot.slane %v2736_v18, 1  ;;  %v2184_v49 = vshrl.u32 %v2142_v13, 16  ;;  %6115 = vmatpush3.bf16.msra.mxu0 %v6481_v6  ;;  %v5882_v60 = vsel %vm6887_vm12, 1.0, %v9223_v16 }
  0x40   : > { %v2407_v31 = vshrl.u32 %v2372_v42, 16  ;;  %v2410_v50 = vshll.u32 %v2372_v42, 16  ;;  %v1688_v32 = vrot.slane %v1686_v14, 1  ;;  %v1914_v35 = vshrl.u32 %v1879_v17, 16  ;;  %6116 = vmatprep.subr.bf16.mxu0 %v6482_v55 }
  0x41   : > { %v2183_v36 = vsel %vm1060_vm4, %v6825_v15, %v2182_v25  ;;  %v2739_v38 = vsel %vm1060_vm4, %v6811_v58, %v2738_v26  ;;  %v6918_v40 = vor.u32 %v2740_v20, %v2738_v26  ;;  %v1917_v34 = vshll.u32 %v1879_v17, 16 }
  0x42   : > { %2862 = vst.msk [vmem:[#allocation3 + $0x40] sm:$0xff] %vm253_vm0, %v2739_v38  ;;  %2292 = vrot.lane.b32.xlu0 %v2183_v36, %s6554_s28  ;;  %v6925_v53 = vrot.slane %v2407_v31, 7  ;;  %v1689_v15 = vsel %vm1060_vm4, %v1684_v54, %v1688_v32  ;;  %v6928_v39 = vrot.slane %v1914_v35, 7  ;;  %v1533_v58 = vshrl.u32 %v1031_v24, 16  ;;  %v6485_v54 = vld [vmem:[%s9214_s1 + $0x88] sm:$0xff]  }
  0x43   : > { %1798 = vrot.lane.b32.xlu1 %v1689_v15, %s6558_s12  ;;  %v1536_v41 = vshll.u32 %v1031_v24, 16  ;;  %v6931_v59 = vor.u32 %v2184_v49, %v2182_v25  ;;  %v1091_v45 = vor.u32 %v1089_v63, %v1087_v62  ;;  %v919_v57 = vpack.c.bf16 %v9221_v21, %v5882_v60  ;;  %6117 = vmatpush3.bf16.msra.mxu0 %v6484_v48  ;;  %v2878_v63 = vld [vmem:[#allocation3 + $0x10] sm:$0xff]  ;;  %v2881_v62 = vld [vmem:[#allocation3 + $0x28] sm:$0xff] }
  0x44   : > { %v2412_v13 = vor.u32 %v2410_v50, %v6925_v53  ;;  %v1919_v47 = vor.u32 %v1917_v34, %v6928_v39  ;;  %v6943_v6 = vrot.slane %v1533_v58, 7  ;;  %v1690_v37 = vshrl.u32 %v6880_v9, 16  ;;  %6355 = vmatprep.subr.bf16.mxu1 %v6485_v54  ;;  %6357 = vmatprep.mubr.msk.bf16.mxu1 %vm253_vm0, %v2878_v63 }
  0x45   : > { %v5899_v18 = vsel %vm6891_vm13, 1.0, %v9223_v16  ;;  %v509_v20 = vand.u32 15, %v6896_v12  ;;  %v6954_v55 = vadd.s32 104, %v6618_v2  ;;  %v1093_v17 = vshll.u32 %v919_v57, 16  ;;  %6356 = vmatpush3.bf16.msra.mxu1 %v6485_v54  ;;  %v6965_v12 = vld [vmem:[#allocation2 + $0x38] sm:$0xff] }
  0x46   : > { %v2413_v42 = vsel %vm1222_vm6, %v6830_v19, %v2412_v13  ;;  %v1920_v14 = vsel %vm1222_vm6, %v6846_v44, %v1919_v47  ;;  %v1538_v9 = vor.u32 %v1536_v41, %v6943_v6  ;;  %v1692_v23 = vor.u32 %v1690_v37, %v1688_v32  ;;  %v6993_v13 = vld [vmem:[#allocation2 + $0x28] sm:$0xff] }
  0x47   : > { %2522 = vrot.lane.b32.xlu0 %v2413_v42, %s6558_s12  ;;  %2029 = vrot.lane.b32.xlu1 %v1920_v14, %s6557_s29  ;;  %v1032_v25 = vpack.c.bf16 %v5899_v18, %v9221_v21  ;;  %vm829_vm14 = vcmp.gt.s32.totalorder %v509_v20, 0  ;;  %v1097_v26 = vshrl.u32 %v919_v57, 16  ;;  %v1095_v44 = vrot.slane %v1093_v17, 1  ;;  %2109 = vst.msk [vmem:[#allocation3 + $0x50] sm:$0xff] %vm253_vm0, %v6993_v13  ;;  %v6487_v17 = vld [vmem:[%s6636_s27 + $0x78] sm:$0xff]  }
  0x48   : > { %v1539_v19 = vsel %vm1222_vm6, %v6844_v27, %v1538_v9  ;;  %v5883_v24 = vsel %vm829_vm14, 1.0, %v9223_v16  ;;  %v530_v49 = vand.u32 15, %v6954_v55  ;;  %6358 = vmatmul.mubr.msk.bf16.vlgmr.msra.gmra.mrb[0].mxu1 %vm253_vm0, %v2881_v62  ;;  %399 = vst.msk [vmem:[#allocation2 + $0x88] sm:$0xff] %vm253_vm0, %v6487_v17  ;;  %vm1467_vm11 = vcmask 523520  }
  0x49   : > { %v2143_v30 = vmul.bf16 %v6872_v61, %v1539_v19  ;;  %v2699_v31 = vmul.bf16 %v6965_v12, %v1539_v19  ;;  %v1649_v50 = vmul.bf16 %v6725_v33, %v1539_v19  ;;  %v1541_v32 = vshrl.u32 %v1032_v25, 16 }
  0x4a   : > { %v6978_v35 = vsel %vm1060_vm4, %v1091_v45, %v1095_v44  ;;  %v1544_v27 = vshll.u32 %v1032_v25, 16  ;;  %v6981_v36 = vpack.c.bf16 %v9221_v21, %v5883_v24  ;;  %v1099_v38 = vor.u32 %v1097_v26, %v1095_v44 }
  0x4b   : > { %2618 = vrot.lane.b32.xlu0 %v6725_v33, %s6557_s29  ;;  %v2188_v34 = vshll.u32 %v2143_v30, 16  ;;  %v2744_v48 = vshll.u32 %v2699_v31, 16  ;;  %v2748_v15 = vshrl.u32 %v2699_v31, 16  ;;  %1425 = vrot.lane.b32.xlu1 %v6698_v56, %s6554_s28  ;;  %v2373_v58 = vmul.bf16 %v6872_v61, %v6978_v35 }
  0x4c   : > { %v1694_v41 = vshll.u32 %v1649_v50, 16  ;;  %v1880_v60 = vmul.bf16 %v6725_v33, %v6978_v35  ;;  %v6991_v45 = vrot.slane %v1541_v32, 7  ;;  %v2192_v54 = vshrl.u32 %v2143_v30, 16 }
  0x4d   : > { %v2190_v47 = vrot.slane %v2188_v34, 1  ;;  %v2746_v57 = vrot.slane %v2744_v48, 1  ;;  %v2415_v63 = vshrl.u32 %v2373_v58, 16  ;;  %v2418_v62 = vshll.u32 %v2373_v58, 16 }
  0x4e   : > { %v1696_v56 = vrot.slane %v1694_v41, 1  ;;  %v1922_v37 = vshrl.u32 %v1880_v60, 16  ;;  %v1925_v18 = vshll.u32 %v1880_v60, 16  ;;  %v1546_v20 = vor.u32 %v1544_v27, %v6991_v45 }
  0x4f   : > { %v2191_v55 = vsel %vm1060_vm4, %v6931_v59, %v2190_v47  ;;  %v2747_v42 = vsel %vm1060_vm4, %v6918_v40, %v2746_v57  ;;  %v2750_v14 = vor.u32 %v2748_v15, %v2746_v57  ;;  %v7002_v9 = vrot.slane %v2415_v63, 7  ;;  %v7012_v59 = vld [vmem:[#allocation2 + $0x40] sm:$0xff] }
  0x50   : > { %2863 = vst.msk [vmem:[#allocation3 + $0x58] sm:$0xff] %vm253_vm0, %v2747_v42  ;;  %2294 = vrot.lane.b32.xlu0 %v2191_v55, %s6554_s28  ;;  %v1697_v10 = vsel %vm1060_vm4, %v1692_v23, %v1696_v56  ;;  %v7008_v25 = vrot.slane %v1922_v37, 7  ;;  %v1547_v26 = vsel %vm1222_vm6, %v6943_v6, %v1546_v20  ;;  %v2194_v19 = vor.u32 %v2192_v54, %v2190_v47 }
  0x51   : > { %v2420_v40 = vor.u32 %v2418_v62, %v7002_v9  ;;  %1800 = vrot.lane.b32.xlu1 %v1697_v10, %s6558_s12  ;;  %v2144_v44 = vmul.bf16 %v6965_v12, %v1547_v26  ;;  %v2700_v24 = vmul.bf16 %v7012_v59, %v1547_v26  ;;  %v1101_v30 = vshll.u32 %v6981_v36, 16  ;;  %v7050_v10 = vld [vmem:[#allocation2 + $0x88] sm:$0xff] }
  0x52   : > { %v1927_v23 = vor.u32 %v1925_v18, %v7008_v25  ;;  %v7022_v31 = vmul.bf16 %v6872_v61, %v1547_v26  ;;  %v1698_v6 = vshrl.u32 %v1649_v50, 16  ;;  %vm944_vm15 = vcmp.lt.s32.totalorder %v530_v49, 15  ;;  %2121 = vst.msk [vmem:[#allocation3 + $0x170] sm:$0xff] %vm253_vm0, %v7050_v10 }
  0x53   : > { %v2421_v32 = vsel %vm1222_vm6, %v6925_v53, %v2420_v40  ;;  %v2196_v27 = vshll.u32 %v2144_v44, 16  ;;  %v2752_v34 = vshll.u32 %v2700_v24, 16  ;;  %v2756_v48 = vshrl.u32 %v2700_v24, 16 }
  0x54   : > { %2524 = vrot.lane.b32.xlu0 %v2421_v32, %s6558_s12  ;;  %v1928_v15 = vsel %vm1222_vm6, %v6928_v39, %v1927_v23  ;;  %v1103_v58 = vrot.slane %v1101_v30, 1  ;;  %v1700_v41 = vor.u32 %v1698_v6, %v1696_v56  ;;  %v1702_v60 = vshll.u32 %v7022_v31, 16  ;;  %v2884_v39 = vld [vmem:[#allocation3 + $0x40] sm:$0xff]  ;;  %v7060_v32 = vld [vmem:[#allocation2 + $0x30] sm:$0xff] }
  0x55   : > { %2031 = vrot.lane.b32.xlu1 %v1928_v15, %s6557_s29  ;;  %v2198_v54 = vrot.slane %v2196_v27, 1  ;;  %v2754_v50 = vrot.slane %v2752_v34, 1  ;;  %v5900_v49 = vsel %vm944_vm15, 1.0, %v9223_v16  ;;  %v2200_v47 = vshrl.u32 %v2144_v44, 16  ;;  %6361 = vmatprep.mubr.msk.bf16.mxu1 %vm253_vm0, %v2884_v39  ;;  %2110 = vst.msk [vmem:[#allocation3 + $0x68] sm:$0xff] %vm253_vm0, %v7060_v32  ;;  %3925 = vst.msk [vmem:[#allocation2 + $0x30] sm:$0xff] %vm253_vm0, %v9220_v1 }
  0x56   : > { %v7033_v53 = vsel %vm1060_vm4, %v1099_v38, %v1103_v58  ;;  %v1704_v57 = vrot.slane %v1702_v60, 1  ;;  %v1033_v63 = vpack.c.bf16 %v5900_v49, %v9221_v21  ;;  %v415_v62 = vadd.s32 96, %v6618_v2 }
  0x57   : > { %v2199_v56 = vsel %vm1060_vm4, %v2194_v19, %v2198_v54  ;;  %v2755_v37 = vsel %vm1060_vm4, %v2750_v14, %v2754_v50  ;;  %v7039_v18 = vor.u32 %v2756_v48, %v2754_v50  ;;  %v2374_v20 = vmul.bf16 %v6965_v12, %v7033_v53  ;;  %v2887_v55 = vld [vmem:[#allocation3 + $0x58] sm:$0xff] }
  0x58   : > { %2620 = vrot.lane.b32.xlu0 %v6872_v61, %s6557_s29  ;;  %2864 = vst.msk [vmem:[#allocation3 + $0x70] sm:$0xff] %vm253_vm0, %v2755_v37  ;;  %v1705_v38 = vsel %vm1060_vm4, %v1700_v41, %v1704_v57  ;;  %v1881_v42 = vmul.bf16 %v6872_v61, %v7033_v53  ;;  %v1549_v17 = vshrl.u32 %v1033_v63, 16  ;;  %v1552_v14 = vshll.u32 %v1033_v63, 16  ;;  %6362 = vmatmul.mubr.msk.bf16.gmra.mrb[4].mxu1 %vm253_vm0, %v2887_v55 }
  0x59   : > { %1427 = vrot.lane.b32.xlu1 %v6725_v33, %s6554_s28  ;;  %v2423_v26 = vshrl.u32 %v2374_v20, 16  ;;  %v2426_v19 = vshll.u32 %v2374_v20, 16  ;;  %v2202_v40 = vor.u32 %v2200_v47, %v2198_v54  ;;  %v523_v44 = vand.u32 15, %v415_v62 }
  0x5a   : > { %v1930_v24 = vshrl.u32 %v1881_v42, 16  ;;  %v1933_v30 = vshll.u32 %v1881_v42, 16  ;;  %v7057_v23 = vrot.slane %v1549_v17, 7  ;;  %v1105_v6 = vshrl.u32 %v6981_v36, 16 }
  0x5b   : > { %v7062_v27 = vrot.slane %v2423_v26, 7  ;;  %vm831_vm1 = vcmp.gt.s32.totalorder %v523_v44, 0  ;;  %v1706_v33 = vshrl.u32 %v7022_v31, 16  ;;  %v418_v34 = vadd.s32 120, %v6618_v2  ;;  %v7077_v31 = vld [vmem:[#allocation2 + $0x48] sm:$0xff] }
  0x5c   : > { %2296 = vrot.lane.b32.xlu0 %v2199_v56, %s6554_s28  ;;  %v7071_v48 = vrot.slane %v1930_v24, 7  ;;  %v1554_v36 = vor.u32 %v1552_v14, %v7057_v23  ;;  %v5884_v15 = vsel %vm831_vm1, 1.0, %v9223_v16  ;;  %v1107_v41 = vor.u32 %v1105_v6, %v1103_v58 }
  0x5d   : > { %v2428_v60 = vor.u32 %v2426_v19, %v7062_v27  ;;  %1802 = vrot.lane.b32.xlu1 %v1705_v38, %s6558_s12  ;;  %v7080_v54 = vpack.c.bf16 %v9221_v21, %v5884_v15  ;;  %v1708_v50 = vor.u32 %v1706_v33, %v1704_v57  ;;  %v544_v49 = vand.u32 15, %v418_v34 }
  0x5e   : > { %v1935_v47 = vor.u32 %v1933_v30, %v7071_v48  ;;  %v1555_v63 = vsel %vm1222_vm6, %v6991_v45, %v1554_v36  ;;  %v417_v62 = vadd.s32 112, %v6618_v2  ;;  %v420_v58 = vadd.s32 136, %v6618_v2 }
  0x5f   : > { %v2429_v39 = vsel %vm1222_vm6, %v7002_v9, %v2428_v60  ;;  %v2145_v56 = vmul.bf16 %v7012_v59, %v1555_v63  ;;  %v2701_v37 = vmul.bf16 %v7077_v31, %v1555_v63  ;;  %v1109_v20 = vshll.u32 %v7080_v54, 16 }
  0x60   : > { %2526 = vrot.lane.b32.xlu0 %v2429_v39, %s6558_s12  ;;  %v1936_v57 = vsel %vm1222_vm6, %v7008_v25, %v1935_v47  ;;  %v1651_v45 = vmul.bf16 %v6965_v12, %v1555_v63  ;;  %vm946_vm2 = vcmp.lt.s32.totalorder %v544_v49, 15  ;;  %v537_v55 = vand.u32 15, %v417_v62 }
  0x61   : > { %2033 = vrot.lane.b32.xlu1 %v1936_v57, %s6557_s29  ;;  %v2204_v38 = vshll.u32 %v2145_v56, 16  ;;  %v2760_v42 = vshll.u32 %v2701_v37, 16  ;;  %v2764_v9 = vshrl.u32 %v2701_v37, 16  ;;  %v1111_v17 = vrot.slane %v1109_v20, 1 }
  0x62   : > { %v1710_v14 = vshll.u32 %v1651_v45, 16  ;;  %v5901_v26 = vsel %vm946_vm2, 1.0, %v9223_v16  ;;  %v2208_v19 = vshrl.u32 %v2145_v56, 16  ;;  %vm833_vm3 = vcmp.gt.s32.totalorder %v537_v55, 0 }
  0x63   : > { %v2206_v44 = vrot.slane %v2204_v38, 1  ;;  %v2762_v24 = vrot.slane %v2760_v42, 1  ;;  %v7099_v30 = vsel %vm1060_vm4, %v1107_v41, %v1111_v17  ;;  %v1034_v25 = vpack.c.bf16 %v5901_v26, %v9221_v21  ;;  %v7129_v38 = vld [vmem:[#allocation2 + $0x38] sm:$0xff] }
  0x64   : > { %2622 = vrot.lane.b32.xlu0 %v6965_v12, %s6557_s29  ;;  %v2375_v6 = vmul.bf16 %v7012_v59, %v7099_v30  ;;  %v1712_v33 = vrot.slane %v1710_v14, 1  ;;  %v1882_v34 = vmul.bf16 %v6965_v12, %v7099_v30  ;;  %v5885_v36 = vsel %vm833_vm3, 1.0, %v9223_v16  ;;  %2111 = vst.msk [vmem:[#allocation3 + $0x80] sm:$0xff] %vm253_vm0, %v7129_v38 }
  0x65   : > { %v2207_v15 = vsel %vm1060_vm4, %v2202_v40, %v2206_v44  ;;  %v2763_v41 = vsel %vm1060_vm4, %v7039_v18, %v2762_v24  ;;  %v7112_v60 = vor.u32 %v2764_v9, %v2762_v24  ;;  %1429 = vrot.lane.b32.xlu1 %v6872_v61, %s6554_s28  ;;  %v1557_v49 = vshrl.u32 %v1034_v25, 16 }
  0x66   : > { %2865 = vst.msk [vmem:[#allocation3 + $0x88] sm:$0xff] %vm253_vm0, %v2763_v41  ;;  %v2431_v47 = vshrl.u32 %v2375_v6, 16  ;;  %v2434_v63 = vshll.u32 %v2375_v6, 16  ;;  %v1713_v62 = vsel %vm1060_vm4, %v1708_v50, %v1712_v33  ;;  %v1938_v39 = vshrl.u32 %v1882_v34, 16 }
  0x67   : > { %v1941_v56 = vshll.u32 %v1882_v34, 16  ;;  %v7118_v37 = vrot.slane %v1557_v49, 7  ;;  %v1560_v40 = vshll.u32 %v1034_v25, 16  ;;  %v2210_v20 = vor.u32 %v2208_v19, %v2206_v44  ;;  %v7138_v44 = vld [vmem:[#allocation2 + $0x50] sm:$0xff] }
  0x68   : > { %2298 = vrot.lane.b32.xlu0 %v2207_v15, %s6554_s28  ;;  %v7121_v18 = vrot.slane %v2431_v47, 7  ;;  %v7123_v57 = vrot.slane %v1938_v39, 7  ;;  %v7126_v61 = vpack.c.bf16 %v9221_v21, %v5885_v36  ;;  %v1113_v55 = vshrl.u32 %v7080_v54, 16 }
  0x69   : > { %1804 = vrot.lane.b32.xlu1 %v1713_v62, %s6558_s12  ;;  %v1562_v50 = vor.u32 %v1560_v40, %v7118_v37  ;;  %v1714_v42 = vshrl.u32 %v1651_v45, 16  ;;  %v558_v9 = vand.u32 15, %v420_v58  ;;  %v419_v14 = vadd.s32 128, %v6618_v2 }
  0x6a   : > { %v2436_v26 = vor.u32 %v2434_v63, %v7121_v18  ;;  %v1943_v19 = vor.u32 %v1941_v56, %v7123_v57  ;;  %v1115_v54 = vor.u32 %v1113_v55, %v1111_v17  ;;  %v1117_v24 = vshll.u32 %v7126_v61, 16 }
  0x6b   : > { %v1563_v25 = vsel %vm1222_vm6, %v7057_v23, %v1562_v50  ;;  %v1716_v6 = vor.u32 %v1714_v42, %v1712_v33  ;;  %vm948_vm5 = vcmp.lt.s32.totalorder %v558_v9, 15  ;;  %v551_v58 = vand.u32 15, %v419_v14  ;;  %v2890_v42 = vld [vmem:[#allocation3 + $0x70] sm:$0xff] }
  0x6c   : > { %v2437_v45 = vsel %vm1222_vm6, %v7062_v27, %v2436_v26  ;;  %v1944_v34 = vsel %vm1222_vm6, %v7071_v48, %v1943_v19  ;;  %v2146_v36 = vmul.bf16 %v7077_v31, %v1563_v25  ;;  %v2702_v15 = vmul.bf16 %v7138_v44, %v1563_v25  ;;  %6365 = vmatprep.mubr.msk.bf16.mxu1 %vm253_vm0, %v2890_v42 }
  0x6d   : > { %2528 = vrot.lane.b32.xlu0 %v2437_v45, %s6558_s12  ;;  %2035 = vrot.lane.b32.xlu1 %v1944_v34, %s6557_s29  ;;  %v1119_v17 = vrot.slane %v1117_v24, 1  ;;  %v1652_v23 = vmul.bf16 %v7012_v59, %v1563_v25  ;;  %v5902_v33 = vsel %vm948_vm5, 1.0, %v9223_v16  ;;  %vm835_vm7 = vcmp.gt.s32.totalorder %v551_v58, 0  ;;  %v2893_v9 = vld [vmem:[#allocation3 + $0x88] sm:$0xff] }
  0x6e   : > { %v2212_v41 = vshll.u32 %v2146_v36, 16  ;;  %v2768_v49 = vshll.u32 %v2702_v15, 16  ;;  %v2772_v27 = vshrl.u32 %v2702_v15, 16  ;;  %v1035_v47 = vpack.c.bf16 %v5902_v33, %v9221_v21  ;;  %6366 = vmatmul.mubr.msk.bf16.gmra.mrb[8].mxu1 %vm253_vm0, %v2893_v9 }
  0x6f   : > { %v7155_v48 = vsel %vm1060_vm4, %v1115_v54, %v1119_v17  ;;  %v1718_v63 = vshll.u32 %v1652_v23, 16  ;;  %v2216_v62 = vshrl.u32 %v2146_v36, 16  ;;  %v5886_v39 = vsel %vm835_vm7, 1.0, %v9223_v16 }
  0x70   : > { %v2214_v56 = vrot.slane %v2212_v41, 1  ;;  %v2770_v40 = vrot.slane %v2768_v49, 1  ;;  %v2376_v55 = vmul.bf16 %v7077_v31, %v7155_v48  ;;  %v1883_v50 = vmul.bf16 %v7012_v59, %v7155_v48  ;;  %v7183_v49 = vld [vmem:[#allocation2 + $0x40] sm:$0xff] }
  0x71   : > { %2624 = vrot.lane.b32.xlu0 %v7012_v59, %s6557_s29  ;;  %1431 = vrot.lane.b32.xlu1 %v6965_v12, %s6554_s28  ;;  %v1720_v14 = vrot.slane %v1718_v63, 1  ;;  %v1565_v26 = vshrl.u32 %v1035_v47, 16  ;;  %v1568_v19 = vshll.u32 %v1035_v47, 16  ;;  %v7167_v54 = vpack.c.bf16 %v9221_v21, %v5886_v39  ;;  %2112 = vst.msk [vmem:[#allocation3 + $0x98] sm:$0xff] %vm253_vm0, %v7183_v49 }
  0x72   : > { %v2215_v24 = vsel %vm1060_vm4, %v2210_v20, %v2214_v56  ;;  %v2771_v25 = vsel %vm1060_vm4, %v7112_v60, %v2770_v40  ;;  %v7172_v58 = vor.u32 %v2772_v27, %v2770_v40  ;;  %v2439_v45 = vshrl.u32 %v2376_v55, 16 }
  0x73   : > { %2866 = vst.msk [vmem:[#allocation3 + $0xa0] sm:$0xff] %vm253_vm0, %v2771_v25  ;;  %v2442_v34 = vshll.u32 %v2376_v55, 16  ;;  %v1721_v12 = vsel %vm1060_vm4, %v1716_v6, %v1720_v14  ;;  %v1946_v36 = vshrl.u32 %v1883_v50, 16  ;;  %v1949_v15 = vshll.u32 %v1883_v50, 16 }
  0x74   : > { %v7178_v33 = vrot.slane %v2439_v45, 7  ;;  %v7180_v20 = vrot.slane %v1565_v26, 7  ;;  %v2218_v41 = vor.u32 %v2216_v62, %v2214_v56  ;;  %v1121_v60 = vshrl.u32 %v7126_v61, 16  ;;  %v7201_v26 = vld [vmem:[#allocation2 + $0x58] sm:$0xff] }
  0x75   : > { %2300 = vrot.lane.b32.xlu0 %v2215_v24, %s6554_s28  ;;  %1806 = vrot.lane.b32.xlu1 %v1721_v12, %s6558_s12  ;;  %v7187_v27 = vrot.slane %v1946_v36, 7  ;;  %v1125_v6 = vshll.u32 %v7167_v54, 16  ;;  %v1722_v47 = vshrl.u32 %v1652_v23, 16  ;;  %v422_v63 = vadd.s32 152, %v6618_v2 }
  0x76   : > { %v2444_v62 = vor.u32 %v2442_v34, %v7178_v33  ;;  %v1570_v61 = vor.u32 %v1568_v19, %v7180_v20  ;;  %v1123_v39 = vor.u32 %v1121_v60, %v1119_v17  ;;  %v421_v56 = vadd.s32 144, %v6618_v2  ;;  %v7204_v19 = vld [vmem:[#allocation2 + $0x48] sm:$0xff] }
  0x77   : > { %v1951_v40 = vor.u32 %v1949_v15, %v7187_v27  ;;  %v1127_v55 = vrot.slane %v1125_v6, 1  ;;  %v1724_v50 = vor.u32 %v1722_v47, %v1720_v14  ;;  %v572_v42 = vand.u32 15, %v422_v63  ;;  %2113 = vst.msk [vmem:[#allocation3 + $0xb0] sm:$0xff] %vm253_vm0, %v7204_v19 }
  0x78   : > { %v2445_v23 = vsel %vm1222_vm6, %v7121_v18, %v2444_v62  ;;  %v1571_v9 = vsel %vm1222_vm6, %v7118_v37, %v1570_v61  ;;  %v565_v24 = vand.u32 15, %v421_v56  ;;  %v1129_v25 = vshrl.u32 %v7167_v54, 16  ;;  %v7223_v61 = vld [vmem:[#allocation2 + $0x50] sm:$0xff] }
  0x79   : > { %2530 = vrot.lane.b32.xlu0 %v2445_v23, %s6558_s12  ;;  %v1952_v17 = vsel %vm1222_vm6, %v7123_v57, %v1951_v40  ;;  %v2147_v14 = vmul.bf16 %v7138_v44, %v1571_v9  ;;  %v2703_v45 = vmul.bf16 %v7201_v26, %v1571_v9  ;;  %v7212_v18 = vsel %vm1060_vm4, %v1123_v39, %v1127_v55 }
  0x7a   : > { %2037 = vrot.lane.b32.xlu1 %v1952_v17, %s6557_s29  ;;  %v2377_v37 = vmul.bf16 %v7138_v44, %v7212_v18  ;;  %v1653_v54 = vmul.bf16 %v7077_v31, %v1571_v9  ;;  %v1884_v57 = vmul.bf16 %v7077_v31, %v7212_v18  ;;  %vm950_vm8 = vcmp.lt.s32.totalorder %v572_v42, 15  ;;  %v2896_v62 = vld [vmem:[#allocation3 + $0xa0] sm:$0xff]  ;;  %2114 = vst.msk [vmem:[#allocation3 + $0xc8] sm:$0xff] %vm253_vm0, %v7223_v61 }
  0x7b   : > { %v2220_v34 = vshll.u32 %v2147_v14, 16  ;;  %v2776_v12 = vshll.u32 %v2703_v45, 16  ;;  %v2780_v36 = vshrl.u32 %v2703_v45, 16  ;;  %v5903_v15 = vsel %vm950_vm8, 1.0, %v9223_v16  ;;  %6369 = vmatprep.mubr.msk.bf16.mxu1 %vm253_vm0, %v2896_v62 }
  0x7c   : > { %v2447_v60 = vshrl.u32 %v2377_v37, 16  ;;  %v2450_v6 = vshll.u32 %v2377_v37, 16  ;;  %v1726_v47 = vshll.u32 %v1653_v54, 16  ;;  %v1954_v63 = vshrl.u32 %v1884_v57, 16 }
  0x7d   : > { %2626 = vrot.lane.b32.xlu0 %v7077_v31, %s6557_s29  ;;  %v2222_v39 = vrot.slane %v2220_v34, 1  ;;  %v2778_v56 = vrot.slane %v2776_v12, 1  ;;  %v1957_v40 = vshll.u32 %v1884_v57, 16  ;;  %v1036_v42 = vpack.c.bf16 %v5903_v15, %v9221_v21 }
  0x7e   : > { %1433 = vrot.lane.b32.xlu1 %v7012_v59, %s6554_s28  ;;  %v7233_v23 = vrot.slane %v2447_v60, 7  ;;  %v1728_v9 = vrot.slane %v1726_v47, 1  ;;  %v7235_v17 = vrot.slane %v1954_v63, 7  ;;  %v2224_v45 = vshrl.u32 %v2147_v14, 16  ;;  %v1044_v63 = vld [vmem:[#allocation2 + $0x8] sm:$0xff] }
  0x7f   : > { %v2223_v37 = vsel %vm1060_vm4, %v2218_v41, %v2222_v39  ;;  %v2779_v57 = vsel %vm1060_vm4, %v7172_v58, %v2778_v56  ;;  %v1573_v34 = vshrl.u32 %v1036_v42, 16  ;;  %v1576_v60 = vshll.u32 %v1036_v42, 16  ;;  %v1043_v41 = vld [vmem:[#allocation2] sm:$0x80] }
  0x80   : > { %2867 = vst.msk [vmem:[#allocation3 + $0xb8] sm:$0xff] %vm253_vm0, %v2779_v57  ;;  %v2452_v12 = vor.u32 %v2450_v6, %v7233_v23  ;;  %v1729_v15 = vsel %vm1060_vm4, %v1724_v50, %v1728_v9  ;;  %v1959_v59 = vor.u32 %v1957_v40, %v7235_v17  ;;  %v2782_v62 = vor.u32 %v2780_v36, %v2778_v56 }
  0x81   : > { %2302 = vrot.lane.b32.xlu0 %v2223_v37, %s6554_s28  ;;  %v7245_v47 = vrot.slane %v1573_v34, 7  ;;  %v2226_v14 = vor.u32 %v2224_v45, %v2222_v39  ;;  %vm837_vm9 = vcmp.gt.s32.totalorder %v565_v24, 0  ;;  %v1131_v50 = vor.u32 %v1129_v25, %v1127_v55 }
  0x82   : > { %v2453_v58 = vsel %vm1222_vm6, %v7178_v33, %v2452_v12  ;;  %1808 = vrot.lane.b32.xlu1 %v1729_v15, %s6558_s12  ;;  %v5887_v6 = vsel %vm837_vm9, 1.0, %v9223_v16  ;;  %v1730_v57 = vshrl.u32 %v1653_v54, 16  ;;  %v1960_v36 = vsel %vm1222_vm6, %v7187_v27, %v1959_v59  ;;  %v7264_v27 = vld [vmem:[#allocation2 + $0x60] sm:$0xff] }
  0x83   : > { %v1578_v56 = vor.u32 %v1576_v60, %v7245_v47  ;;  %v7255_v40 = vpack.c.bf16 %v9221_v21, %v5887_v6  ;;  %v424_v24 = vadd.s32 168, %v6618_v2  ;;  %v1205_v42 = vmul.bf16 %v6679_v43, %v1043_v41 }
  0x84   : > { %v1732_v39 = vor.u32 %v1730_v57, %v1728_v9  ;;  %v1206_v33 = vmul.bf16 %v6709_v0, %v1044_v63  ;;  %v423_v45 = vadd.s32 160, %v6618_v2  ;;  %vm1842_vm13 = vcmask 785920  }
  0x85   : > { %2532 = vrot.lane.b32.xlu0 %v2453_v58, %s6558_s12  ;;  %v1579_v55 = vsel %vm1222_vm6, %v7180_v20, %v1578_v56  ;;  %v1133_v25 = vshll.u32 %v7255_v40, 16  ;;  %v586_v54 = vand.u32 15, %v424_v24  ;;  %v1137_v37 = vshrl.u32 %v7255_v40, 16 }
  0x86   : > { %2039 = vrot.lane.b32.xlu1 %v1960_v36, %s6557_s29  ;;  %v2148_v43 = vmul.bf16 %v7201_v26, %v1579_v55  ;;  %v2704_v0 = vmul.bf16 %v7264_v27, %v1579_v55  ;;  %v7272_v9 = vmul.bf16 %v7138_v44, %v1579_v55  ;;  %v1224_v34 = vshrl.u32 %v1205_v42, 16 }
  0x87   : > { %v1135_v12 = vrot.slane %v1133_v25, 1  ;;  %vm952_vm10 = vcmp.lt.s32.totalorder %v586_v54, 15  ;;  %v1228_v20 = vshrl.u32 %v1206_v33, 16  ;;  %v1231_v15 = vshll.u32 %v1206_v33, 16  ;;  %v2899_v59 = vld [vmem:[#allocation3 + $0xb8] sm:$0xff] }
  0x88   : > { %v2228_v60 = vshll.u32 %v2148_v43, 16  ;;  %v2784_v41 = vshll.u32 %v2704_v0, 16  ;;  %v2788_v63 = vshrl.u32 %v2704_v0, 16  ;;  %v1734_v58 = vshll.u32 %v7272_v9, 16  ;;  %v1420_v6 = vpop.permute.xlu0 %1419  ;;  %6370 = vmatmul.mubr.msk.bf16.gmra.mrb[12].mxu1 %vm253_vm0, %v2899_v59  ;;  %v7286_v25 = vld [vmem:[#allocation2 + $0x58] sm:$0xff] }
  0x89   : > { %2628 = vrot.lane.b32.xlu0 %v7138_v44, %s6557_s29  ;;  %v7279_v57 = vsel %vm1060_vm4, %v1131_v50, %v1135_v12  ;;  %v5904_v36 = vsel %vm952_vm10, 1.0, %v9223_v16  ;;  %v2232_v56 = vshrl.u32 %v2148_v43, 16  ;;  %v1226_v40 = vrot.slane %v1224_v34, 7  ;;  %2115 = vst.msk [vmem:[#allocation3 + $0xe0] sm:$0xff] %vm253_vm0, %v7286_v25 }
  0x8a   : > { %v2230_v24 = vrot.slane %v2228_v60, 1  ;;  %v2786_v42 = vrot.slane %v2784_v41, 1  ;;  %1435 = vrot.lane.b32.xlu1 %v7077_v31, %s6554_s28  ;;  %v2378_v33 = vmul.bf16 %v7201_v26, %v7279_v57  ;;  %v1736_v55 = vrot.slane %v1734_v58, 1 }
  0x8b   : > { %v1885_v54 = vmul.bf16 %v7138_v44, %v7279_v57  ;;  %v1037_v50 = vpack.c.bf16 %v5904_v36, %v9221_v21  ;;  %v7291_v0 = vrot.slane %v1228_v20, 7  ;;  %v579_v43 = vand.u32 15, %v423_v45 }
  0x8c   : > { %v2231_v34 = vsel %vm1060_vm4, %v2226_v14, %v2230_v24  ;;  %v2787_v31 = vsel %vm1060_vm4, %v2782_v62, %v2786_v42  ;;  %v7297_v59 = vor.u32 %v2788_v63, %v2786_v42  ;;  %v2455_v60 = vshrl.u32 %v2378_v33, 16 }
  0x8d   : > { %2868 = vst.msk [vmem:[#allocation3 + $0xd0] sm:$0xff] %vm253_vm0, %v2787_v31  ;;  %2304 = vrot.lane.b32.xlu0 %v2231_v34, %s6554_s28  ;;  %v2458_v41 = vshll.u32 %v2378_v33, 16  ;;  %v1737_v58 = vsel %vm1060_vm4, %v1732_v39, %v1736_v55  ;;  %v1962_v20 = vshrl.u32 %v1885_v54, 16  ;;  %v1965_v36 = vshll.u32 %v1885_v54, 16 }
  0x8e   : > { %v7302_v45 = vrot.slane %v2455_v60, 7  ;;  %1810 = vrot.lane.b32.xlu1 %v1737_v58, %s6558_s12  ;;  %v1581_v1 = vshrl.u32 %v1037_v50, 16  ;;  %v1584_v14 = vshll.u32 %v1037_v50, 16  ;;  %v7305_v21 = vor.u32 %v2232_v56, %v2230_v24  ;;  %v7307_v62 = vpop.permute.xlu0 %2614 }
  0x8f   : > { %v7309_v63 = vrot.slane %v1962_v20, 7  ;;  %v1233_v42 = vor.u32 %v1231_v15, %v7291_v0  ;;  %vm839_vm12 = vcmp.gt.s32.totalorder %v579_v43, 0  ;;  %v1139_v33 = vor.u32 %v1137_v37, %v1135_v12  ;;  %v7317_v60 = vpop.permute.xlu1 %1421 }
  0x90   : > { %v2460_v39 = vor.u32 %v2458_v41, %v7302_v45  ;;  %v7313_v34 = vrot.slane %v1581_v1, 7  ;;  %v5888_v54 = vsel %vm839_vm12, 1.0, %v9223_v16  ;;  %v1738_v31 = vshrl.u32 %v7272_v9, 16  ;;  %v7342_v41 = vld [vmem:[#allocation2 + $0x68] sm:$0xff] }
  0x91   : > { %v1967_v56 = vor.u32 %v1965_v36, %v7309_v63  ;;  %v1234_v24 = vsel %vm1222_vm6, %v1226_v40, %v1233_v42  ;;  %v9232_v50 = vmov 1.0   ;;  %v1207_v37 = vmul.bf16 %v6800_v52, %v6778_v28 }
  0x92   : > { %v7322_v58 = vpack.c.bf16 %v9232_v50, %v5888_v54  ;;  %v2461_v1 = vsel %vm1222_vm6, %v7233_v23, %v2460_v39  ;;  %v1586_v12 = vor.u32 %v1584_v14, %v7313_v34  ;;  %1371 = vst.msk [vmem:[#allocation3] sm:$0xff] %vm253_vm0, %v1234_v24  ;;  %v1740_v9 = vor.u32 %v1738_v31, %v1736_v55  ;;  %v7337_v23 = vpop.permute.xlu0 %2616 }
  0x93   : > { %v1208_v15 = vmul.bf16 %v6899_v22, %v6796_v51  ;;  %2534 = vrot.lane.b32.xlu0 %v2461_v1, %s6558_s12  ;;  %v1968_v40 = vsel %vm1222_vm6, %v7235_v17, %v1967_v56  ;;  %1468 = vst.msk [vmem:[#allocation3] sm:$0xff] %vm1467_vm11, %v1420_v6  ;;  %v1236_v52 = vshrl.u32 %v1207_v37, 16  ;;  %v1239_v43 = vshll.u32 %v1207_v37, 16  ;;  %v1424_v54 = vpop.permute.xlu1 %1423 }
  0x94   : > { %v1141_v28 = vshll.u32 %v7322_v58, 16  ;;  %2041 = vrot.lane.b32.xlu1 %v1968_v40, %s6557_s29  ;;  %v1587_v55 = vsel %vm1222_vm6, %v7245_v47, %v1586_v12  ;;  %v426_v20 = vadd.s32 184, %v6618_v2  ;;  %vm2073_vm15 = vcmask 1048320  }
  0x95   : > { %v1244_v51 = vshrl.u32 %v1208_v15, 16  ;;  %v1247_v22 = vshll.u32 %v1208_v15, 16  ;;  %v2149_v17 = vmul.bf16 %v7264_v27, %v1587_v55  ;;  %v2705_v6 = vmul.bf16 %v7342_v41, %v1587_v55 }
  0x96   : > { %v7347_v36 = vrot.slane %v1141_v28, 1  ;;  %v7350_v14 = vmul.bf16 %v7201_v26, %v1587_v55  ;;  %v1238_v42 = vrot.slane %v1236_v52, 7  ;;  %v600_v47 = vand.u32 15, %v426_v20  ;;  %v2902_v28 = vld [vmem:[#allocation3 + $0xd0] sm:$0xff]  ;;  %v7367_v52 = vld [vmem:[#allocation2 + $0x60] sm:$0xff] }
  0x97   : > { %v7352_v39 = vrot.slane %v1244_v51, 7  ;;  %2630 = vrot.lane.b32.xlu0 %v7201_v26, %s6557_s29  ;;  %v2236_v31 = vshll.u32 %v2149_v17, 16  ;;  %v2792_v56 = vshll.u32 %v2705_v6, 16  ;;  %v2796_v24 = vshrl.u32 %v2705_v6, 16  ;;  %6373 = vmatprep.mubr.msk.bf16.mxu1 %vm253_vm0, %v2902_v28  ;;  %2116 = vst.msk [vmem:[#allocation3 + $0xf8] sm:$0xff] %vm253_vm0, %v7367_v52 }
  0x98   : > { %v7358_v37 = vsel %vm1060_vm4, %v1139_v33, %v7347_v36  ;;  %1437 = vrot.lane.b32.xlu1 %v7138_v44, %s6554_s28  ;;  %v1742_v12 = vshll.u32 %v7350_v14, 16  ;;  %v1241_v15 = vor.u32 %v1239_v43, %v1238_v42  ;;  %vm7370_vm14 = vcmp.lt.s32.totalorder %v600_v47, 15 }
  0x99   : > { %v2379_v1 = vmul.bf16 %v7264_v27, %v7358_v37  ;;  %v1886_v40 = vmul.bf16 %v7201_v26, %v7358_v37  ;;  %v2238_v55 = vrot.slane %v2236_v31, 1  ;;  %v2794_v51 = vrot.slane %v2792_v56, 1 }
  0x9a   : > { %v1249_v33 = vor.u32 %v1247_v22, %v7352_v39  ;;  %v2289_v44 = vpop.permute.xlu0 %2288  ;;  %v1744_v16 = vrot.slane %v1742_v12, 1  ;;  %v1242_v3 = vsel %vm1222_vm6, %v7291_v0, %v1241_v15  ;;  %v2240_v28 = vshrl.u32 %v2149_v17, 16 }
  0x9b   : > { %v2463_v43 = vshrl.u32 %v2379_v1, 16  ;;  %v2466_v6 = vshll.u32 %v2379_v1, 16  ;;  %2336 = vst.msk [vmem:[#allocation3 + $0x8] sm:$0xff] %vm1467_vm11, %v2289_v44  ;;  %v2239_v22 = vsel %vm1060_vm4, %v7305_v21, %v2238_v55  ;;  %v2795_v47 = vsel %vm1060_vm4, %v7297_v59, %v2794_v51 }
  0x9c   : > { %v7384_v31 = vor.u32 %v2796_v24, %v2794_v51  ;;  %1372 = vst.msk [vmem:[#allocation3 + $0x18] sm:$0xff] %vm253_vm0, %v1242_v3  ;;  %v1970_v56 = vshrl.u32 %v1886_v40, 16  ;;  %2869 = vst.msk [vmem:[#allocation3 + $0xe8] sm:$0xff] %vm253_vm0, %v2795_v47  ;;  %2306 = vrot.lane.b32.xlu0 %v2239_v22, %s6554_s28  ;;  %v1745_v0 = vsel %vm1060_vm4, %v1740_v9, %v1744_v16  ;;  %v1973_v21 = vshll.u32 %v1886_v40, 16  ;;  %v2519_v59 = vpop.permute.xlu1 %2518 }
  0x9d   : > { %v7389_v1 = vrot.slane %v2463_v43, 7  ;;  %1469 = vst.msk [vmem:[#allocation3 + $0x18] sm:$0xff] %vm1467_vm11, %v7317_v60  ;;  %v1250_v12 = vsel %vm1222_vm6, %v1238_v42, %v1249_v33  ;;  %1812 = vrot.lane.b32.xlu1 %v1745_v0, %s6558_s12  ;;  %v9235_v3 = vmov 0.0   ;;  %v425_v42 = vadd.s32 176, %v6618_v2 }
  0x9e   : > { %v7396_v24 = vrot.slane %v1970_v56, 7  ;;  %1373 = vst.msk [vmem:[#allocation3 + $0x30] sm:$0xff] %vm253_vm0, %v1250_v12  ;;  %v5905_v15 = vsel %vm7370_vm14, 1.0, %v9235_v3  ;;  %v1145_v40 = vshrl.u32 %v7322_v58, 16  ;;  %v2291_v51 = vpop.permute.xlu0 %2290  ;;  %v7411_v17 = vor.u32 %v2240_v28, %v2238_v55 }
  0x9f   : > { %2566 = vst.msk [vmem:[#allocation3 + $0x8] sm:$0xff] %vm1842_vm13, %v2519_v59  ;;  %v2468_v60 = vor.u32 %v2466_v6, %v7389_v1  ;;  %v1038_v9 = vpack.c.bf16 %v5905_v15, %v9232_v50  ;;  %v1746_v20 = vshrl.u32 %v7350_v14, 16  ;;  %v593_v6 = vand.u32 15, %v425_v42 }
  0xa0   : > { %1470 = vst.msk [vmem:[#allocation3 + $0x30] sm:$0xff] %vm1467_vm11, %v1424_v54  ;;  %v1975_v33 = vor.u32 %v1973_v21, %v7396_v24  ;;  %2337 = vst.msk [vmem:[#allocation3 + $0x20] sm:$0xff] %vm1467_vm11, %v2291_v51  ;;  %v428_v54 = vadd.s32 200, %v6618_v2  ;;  %v1147_v55 = vor.u32 %v1145_v40, %v7347_v36  ;;  %v430_v0 = vadd.s32 216, %v6618_v2  ;;  %v7449_v51 = vld [vmem:[#allocation2 + $0x70] sm:$0xff] }
  0xa1   : > { %2662 = vst.msk [vmem:[#allocation3 + $0x8] sm:$0xff] %vm2073_vm15, %v7307_v62  ;;  %v2469_v44 = vsel %vm1222_vm6, %v7302_v45, %v2468_v60  ;;  %v1589_v43 = vshrl.u32 %v1038_v9, 16  ;;  %v1592_v62 = vshll.u32 %v1038_v9, 16  ;;  %v7422_v22 = vor.u32 %v1746_v20, %v1744_v16 }
  0xa2   : > { %2536 = vrot.lane.b32.xlu0 %v2469_v44, %s6558_s12  ;;  %v1976_v58 = vsel %vm1222_vm6, %v7309_v63, %v1975_v33  ;;  %v1795_v14 = vpop.permute.xlu1 %1794  ;;  %v614_v47 = vand.u32 15, %v428_v54  ;;  %vm841_vm1 = vcmp.gt.s32.totalorder %v593_v6, 0  ;;  %v427_v45 = vadd.s32 192, %v6618_v2 }
  0xa3   : > { %2043 = vrot.lane.b32.xlu1 %v1976_v58, %s6557_s29  ;;  %v7425_v56 = vrot.slane %v1589_v43, 7  ;;  %1843 = vst.msk [vmem:[#allocation3] sm:$0xff] %vm1842_vm13, %v1795_v14  ;;  %v5889_v21 = vsel %vm841_vm1, 1.0, %v9235_v3  ;;  %v7432_v63 = vadd.s32 208, %v6618_v2  ;;  %v7436_v16 = vmul.bf16 %v6936_v8, %v6978_v35  ;;  %v2905_v36 = vld [vmem:[#allocation3 + $0xe8] sm:$0xff] }
  0xa4   : > { %vm956_vm2 = vcmp.lt.s32.totalorder %v614_v47, 15  ;;  %v926_v59 = vpack.c.bf16 %v9232_v50, %v5889_v21  ;;  %v607_v28 = vand.u32 15, %v427_v45  ;;  %6374 = vmatmul.mubr.msk.bf16.gmra.mrb[16].mxu1 %vm253_vm0, %v2905_v36  ;;  %v628_v42 = vand.u32 15, %v430_v0 }
  0xa5   : > { %v1594_v12 = vor.u32 %v1592_v62, %v7425_v56  ;;  %v5906_v15 = vsel %vm956_vm2, 1.0, %v9235_v3 }
  0xa6   : > { %2632 = vrot.lane.b32.xlu0 %v7264_v27, %s6557_s29  ;;  %v1039_v60 = vpack.c.bf16 %v5906_v15, %v9232_v50  ;;  %v1149_v33 = vshll.u32 %v926_v59, 16  ;;  %v2026_v20 = vpop.permute.xlu1 %2025  ;;  %vm843_vm3 = vcmp.gt.s32.totalorder %v607_v28, 0  ;;  %v1153_v54 = vshrl.u32 %v926_v59, 16 }
  0xa7   : > { %v1595_v40 = vsel %vm1222_vm6, %v7313_v34, %v1594_v12  ;;  %1439 = vrot.lane.b32.xlu1 %v7201_v26, %s6554_s28  ;;  %2074 = vst.msk [vmem:[#allocation3] sm:$0xff] %vm2073_vm15, %v2026_v20  ;;  %v5890_v14 = vsel %vm843_vm3, 1.0, %v9235_v3  ;;  %vm7460_vm5 = vcmp.lt.s32.totalorder %v628_v42, 15  ;;  %v7476_v20 = vld [vmem:[#allocation2 + $0x68] sm:$0xff] }
  0xa8   : > { %v2877_v9 = vld [vmem:[#allocation3 + $0x8] sm:$0xff]  ;;  %v2150_v44 = vmul.bf16 %v7342_v41, %v1595_v40  ;;  %v2706_v43 = vmul.bf16 %v7449_v51, %v1595_v40  ;;  %v7456_v62 = vmul.bf16 %v7264_v27, %v1595_v40  ;;  %v1597_v34 = vshrl.u32 %v1039_v60, 16  ;;  %2117 = vst.msk [vmem:[#allocation3 + $0x110] sm:$0xff] %vm253_vm0, %v7476_v20 }
  0xa9   : > { %3153 = vmatprep.mubr.bf16.mxu0 %v2877_v9  ;;  %v1151_v6 = vrot.slane %v1149_v33, 1  ;;  %v1600_v58 = vshll.u32 %v1039_v60, 16  ;;  %v7471_v28 = vpack.c.bf16 %v9232_v50, %v5890_v14 }
  0xaa   : > { %v2244_v47 = vshll.u32 %v2150_v44, 16  ;;  %v2800_v45 = vshll.u32 %v2706_v43, 16  ;;  %v2804_v0 = vshrl.u32 %v2706_v43, 16  ;;  %v1750_v21 = vshll.u32 %v7456_v62, 16  ;;  %v1797_v15 = vpop.permute.xlu1 %1796 }
  0xab   : > { %v7466_v36 = vsel %vm1060_vm4, %v1147_v55, %v1151_v6  ;;  %v7468_v12 = vrot.slane %v1597_v34, 7  ;;  %v2248_v59 = vshrl.u32 %v2150_v44, 16  ;;  %1844 = vst.msk [vmem:[#allocation3 + $0x18] sm:$0xff] %vm1842_vm13, %v1797_v15  ;;  %v1155_v43 = vor.u32 %v1153_v54, %v1151_v6 }
  0xac   : > { %v2246_v60 = vrot.slane %v2244_v47, 1  ;;  %v2802_v9 = vrot.slane %v2800_v45, 1  ;;  %v2380_v42 = vmul.bf16 %v7342_v41, %v7466_v36  ;;  %v1752_v40 = vrot.slane %v1750_v21, 1  ;;  %v2521_v33 = vpop.permute.xlu0 %2520 }
  0xad   : > { %v1887_v55 = vmul.bf16 %v7264_v27, %v7466_v36  ;;  %2567 = vst.msk [vmem:[#allocation3 + $0x20] sm:$0xff] %vm1842_vm13, %v2521_v33  ;;  %v1602_v44 = vor.u32 %v1600_v58, %v7468_v12  ;;  %v1157_v34 = vshll.u32 %v7471_v28, 16 }
  0xae   : > { %v2247_v14 = vsel %vm1060_vm4, %v7411_v17, %v2246_v60  ;;  %v2803_v47 = vsel %vm1060_vm4, %v7384_v31, %v2802_v9  ;;  %v2806_v45 = vor.u32 %v2804_v0, %v2802_v9  ;;  %v2471_v21 = vshrl.u32 %v2380_v42, 16  ;;  %2663 = vst.msk [vmem:[#allocation3 + $0x20] sm:$0xff] %vm2073_vm15, %v7337_v23  ;;  %v2028_v33 = vpop.permute.xlu1 %2027  ;;  %v2876_v17 = vld [vmem:[#allocation3] sm:$0xff]  ;;  %v7500_v0 = vld [vmem:[#allocation2 + $0x78] sm:$0xff] }
  0xaf   : > { %2870 = vst.msk [vmem:[#allocation3 + $0x100] sm:$0xff] %vm253_vm0, %v2803_v47  ;;  %2308 = vrot.lane.b32.xlu0 %v2247_v14, %s6554_s28  ;;  %v2474_v54 = vshll.u32 %v2380_v42, 16  ;;  %v1753_v6 = vsel %vm1060_vm4, %v7422_v22, %v1752_v40  ;;  %v1978_v58 = vshrl.u32 %v1887_v55, 16  ;;  %v1981_v15 = vshll.u32 %v1887_v55, 16  ;;  %3154 = vmatmul.mubr.bf16.vlgmr.msra.gmra.mrb[0].mxu0 %v2876_v17 }
  0xb0   : > { %v7495_v35 = vrot.slane %v2471_v21, 7  ;;  %1814 = vrot.lane.b32.xlu1 %v1753_v6, %s6558_s12  ;;  %v1603_v31 = vsel %vm1222_vm6, %v7425_v56, %v1602_v44  ;;  %v2250_v23 = vor.u32 %v2248_v59, %v2246_v60  ;;  %v7502_v9 = vrot.slane %v1157_v34, 1  ;;  %2075 = vst.msk [vmem:[#allocation3 + $0x18] sm:$0xff] %vm2073_vm15, %v2028_v33 }
  0xb1   : > { %v7505_v22 = vrot.slane %v1978_v58, 7  ;;  %v2151_v42 = vmul.bf16 %v7449_v51, %v1603_v31  ;;  %v2707_v55 = vmul.bf16 %v7500_v0, %v1603_v31  ;;  %v7510_v14 = vmul.bf16 %v7342_v41, %v1603_v31 }
  0xb2   : > { %v2476_v47 = vor.u32 %v2474_v54, %v7495_v35  ;;  %v7515_v56 = vsel %vm1060_vm4, %v1155_v43, %v7502_v9  ;;  %v1754_v59 = vshrl.u32 %v7456_v62, 16  ;;  %v5907_v60 = vsel %vm7460_vm5, 1.0, %v9235_v3 }
  0xb3   : > { %v1983_v44 = vor.u32 %v1981_v15, %v7505_v22  ;;  %v2252_v34 = vshll.u32 %v2151_v42, 16  ;;  %v2808_v21 = vshll.u32 %v2707_v55, 16  ;;  %v2812_v6 = vshrl.u32 %v2707_v55, 16 }
  0xb4   : > { %v2477_v58 = vsel %vm1222_vm6, %v7389_v1, %v2476_v47  ;;  %v2381_v54 = vmul.bf16 %v7449_v51, %v7515_v56  ;;  %v1756_v33 = vor.u32 %v1754_v59, %v1752_v40  ;;  %v1758_v43 = vshll.u32 %v7510_v14, 16  ;;  %v2293_v15 = vpop.permute.xlu0 %2292 }
  0xb5   : > { %2538 = vrot.lane.b32.xlu0 %v2477_v58, %s6558_s12  ;;  %v1984_v62 = vsel %vm1222_vm6, %v7396_v24, %v1983_v44  ;;  %v2254_v26 = vrot.slane %v2252_v34, 1  ;;  %v2810_v17 = vrot.slane %v2808_v21, 1  ;;  %v1888_v31 = vmul.bf16 %v7342_v41, %v7515_v56  ;;  %v2880_v55 = vld [vmem:[#allocation3 + $0x20] sm:$0xff]  ;;  %2338 = vst.msk [vmem:[#allocation3 + $0x38] sm:$0xff] %vm1467_vm11, %v2293_v15  ;;  %v1799_v40 = vpop.permute.xlu1 %1798 }
  0xb6   : > { %2045 = vrot.lane.b32.xlu1 %v1984_v62, %s6557_s29  ;;  %v2479_v1 = vshrl.u32 %v2381_v54, 16  ;;  %v2482_v47 = vshll.u32 %v2381_v54, 16  ;;  %v1760_v8 = vrot.slane %v1758_v43, 1  ;;  %3161 = vmatprep.mubr.bf16.mxu0 %v2880_v55  ;;  %v1040_v59 = vpack.c.bf16 %v5907_v60, %v9232_v50  ;;  %1845 = vst.msk [vmem:[#allocation3 + $0x30] sm:$0xff] %vm1842_vm13, %v1799_v40  ;;  %v2908_v60 = vld [vmem:[#allocation3 + $0x100] sm:$0xff]  ;;  %v7544_v55 = vld [vmem:[#allocation2 + $0x70] sm:$0xff] }
  0xb7   : > { %v2255_v24 = vsel %vm1060_vm4, %v2250_v23, %v2254_v26  ;;  %v2811_v44 = vsel %vm1060_vm4, %v2806_v45, %v2810_v17  ;;  %v7537_v34 = vor.u32 %v2812_v6, %v2810_v17  ;;  %v1986_v21 = vshrl.u32 %v1888_v31, 16  ;;  %v2879_v58 = vld [vmem:[#allocation3 + $0x18] sm:$0xff]  ;;  %6377 = vmatprep.mubr.msk.bf16.mxu1 %vm253_vm0, %v2908_v60  ;;  %2118 = vst.msk [vmem:[#allocation3 + $0x128] sm:$0xff] %vm253_vm0, %v7544_v55 }
  0xb8   : > { %2871 = vst.msk [vmem:[#allocation3 + $0x118] sm:$0xff] %vm253_vm0, %v2811_v44  ;;  %v7541_v54 = vrot.slane %v2479_v1, 7  ;;  %v1761_v43 = vsel %vm1060_vm4, %v1756_v33, %v1760_v8  ;;  %v1989_v62 = vshll.u32 %v1888_v31, 16  ;;  %v1605_v15 = vshrl.u32 %v1040_v59, 16  ;;  %3162 = vmatmul.mubr.bf16.gmra.mrb[4].mxu0 %v2879_v58 }
  0xb9   : > { %2634 = vrot.lane.b32.xlu0 %v7342_v41, %s6557_s29  ;;  %v7548_v45 = vrot.slane %v1986_v21, 7  ;;  %v1608_v23 = vshll.u32 %v1040_v59, 16  ;;  %v2256_v6 = vshrl.u32 %v2151_v42, 16  ;;  %v9238_v17 = vand.u32 15, %v7432_v63  ;;  %v2523_v31 = vpop.permute.xlu0 %2522  ;;  %v2030_v40 = vpop.permute.xlu1 %2029 }
  0xba   : > { %1441 = vrot.lane.b32.xlu1 %v7264_v27, %s6554_s28  ;;  %v2484_v33 = vor.u32 %v2482_v47, %v7541_v54  ;;  %v7558_v1 = vrot.slane %v1605_v15, 7  ;;  %v1161_v42 = vshrl.u32 %v7471_v28, 16  ;;  %2568 = vst.msk [vmem:[#allocation3 + $0x38] sm:$0xff] %vm1842_vm13, %v2523_v31  ;;  %v1762_v27 = vshrl.u32 %v7510_v14, 16 }
  0xbb   : > { %vm845_vm7 = vcmp.gt.s32.totalorder %v9238_v17, 0  ;;  %v1991_v63 = vor.u32 %v1989_v62, %v7548_v45  ;;  %v2258_v44 = vor.u32 %v2256_v6, %v2254_v26  ;;  %2076 = vst.msk [vmem:[#allocation3 + $0x30] sm:$0xff] %vm2073_vm15, %v2030_v40  ;;  %v9239_v28 = vshrl.u32 %v7436_v16, 16 }
  0xbc   : > { %v5891_v59 = vsel %vm845_vm7, 1.0, %v9235_v3  ;;  %v2485_v47 = vsel %vm1222_vm6, %v7495_v35, %v2484_v33  ;;  %v1610_v58 = vor.u32 %v1608_v23, %v7558_v1  ;;  %v1163_v15 = vor.u32 %v1161_v42, %v7502_v9  ;;  %v7585_v9 = vld [vmem:[#allocation2 + $0x80] sm:$0xff] }
  0xbd   : > { %v7566_v21 = vpack.c.bf16 %v9232_v50, %v5891_v59  ;;  %v7575_v62 = vrot.slane %v9239_v28, 7  ;;  %2310 = vrot.lane.b32.xlu0 %v2255_v24, %s6554_s28  ;;  %v1992_v26 = vsel %vm1222_vm6, %v7505_v22, %v1991_v63  ;;  %v1764_v6 = vor.u32 %v1762_v27, %v1760_v8  ;;  %v2619_v23 = vpop.permute.xlu0 %2618  ;;  %v1426_v17 = vpop.permute.xlu1 %1425 }
  0xbe   : > { %v1255_v14 = vshll.u32 %v7436_v16, 16  ;;  %1816 = vrot.lane.b32.xlu1 %v1761_v43, %s6558_s12  ;;  %v1611_v35 = vsel %vm1222_vm6, %v7468_v12, %v1610_v58  ;;  %v432_v33 = vadd.s32 232, %v6618_v2  ;;  %v431_v24 = vadd.s32 224, %v6618_v2  ;;  %2664 = vst.msk [vmem:[#allocation3 + $0x38] sm:$0xff] %vm2073_vm15, %v2619_v23 }
  0xbf   : > { %v1165_v60 = vshll.u32 %v7566_v21, 16  ;;  %v1169_v22 = vshrl.u32 %v7566_v21, 16  ;;  %v2152_v31 = vmul.bf16 %v7500_v0, %v1611_v35  ;;  %v2708_v8 = vmul.bf16 %v7585_v9, %v1611_v35  ;;  %v2911_v12 = vld [vmem:[#allocation3 + $0x118] sm:$0xff] }
  0xc0   : > { %v7594_v43 = vmul.bf16 %v7449_v51, %v1611_v35  ;;  %v1257_v40 = vor.u32 %v1255_v14, %v7575_v62  ;;  %v642_v59 = vand.u32 15, %v432_v33  ;;  %v635_v42 = vand.u32 15, %v431_v24  ;;  %6378 = vmatmul.mubr.msk.bf16.gmra.mrb[20].mxu1 %vm253_vm0, %v2911_v12 }
  0xc1   : > { %v1167_v16 = vrot.slane %v1165_v60, 1  ;;  %v7599_v63 = vmul.bf16 %v6993_v13, %v7033_v53  ;;  %2540 = vrot.lane.b32.xlu0 %v2485_v47, %s6558_s12  ;;  %v2260_v21 = vshll.u32 %v2152_v31, 16  ;;  %v2816_v27 = vshll.u32 %v2708_v8, 16 }
  0xc2   : > { %v2820_v58 = vshrl.u32 %v2708_v8, 16  ;;  %2047 = vrot.lane.b32.xlu1 %v1992_v26, %s6557_s29  ;;  %v1766_v14 = vshll.u32 %v7594_v43, 16  ;;  %v1258_v13 = vsel %vm1222_vm6, %v7352_v39, %v1257_v40  ;;  %v2295_v23 = vpop.permute.xlu0 %2294  ;;  %vm7615_vm8 = vcmp.lt.s32.totalorder %v642_v59, 15  ;;  %v7621_v40 = vld [vmem:[#allocation2 + $0x78] sm:$0xff] }
  0xc3   : > { %v7604_v28 = vsel %vm1060_vm4, %v1163_v15, %v1167_v16  ;;  %v2262_v47 = vrot.slane %v2260_v21, 1  ;;  %v2818_v35 = vrot.slane %v2816_v27, 1  ;;  %1374 = vst.msk [vmem:[#allocation3 + $0x48] sm:$0xff] %vm253_vm0, %v1258_v13  ;;  %v2264_v26 = vshrl.u32 %v2152_v31, 16  ;;  %v1801_v12 = vpop.permute.xlu1 %1800  ;;  %2119 = vst.msk [vmem:[#allocation3 + $0x140] sm:$0xff] %vm253_vm0, %v7621_v40 }
  0xc4   : > { %v2382_v60 = vmul.bf16 %v7500_v0, %v7604_v28  ;;  %v1889_v53 = vmul.bf16 %v7449_v51, %v7604_v28  ;;  %v1768_v8 = vrot.slane %v1766_v14, 1  ;;  %2339 = vst.msk [vmem:[#allocation3 + $0x50] sm:$0xff] %vm1467_vm11, %v2295_v23  ;;  %1471 = vst.msk [vmem:[#allocation3 + $0x48] sm:$0xff] %vm1467_vm11, %v1426_v17  ;;  %vm847_vm9 = vcmp.gt.s32.totalorder %v635_v42, 0 }
  0xc5   : > { %2636 = vrot.lane.b32.xlu0 %v7449_v51, %s6557_s29  ;;  %v2263_v59 = vsel %vm1060_vm4, %v2258_v44, %v2262_v47  ;;  %v2819_v21 = vsel %vm1060_vm4, %v7537_v34, %v2818_v35  ;;  %v7628_v31 = vor.u32 %v2820_v58, %v2818_v35  ;;  %1846 = vst.msk [vmem:[#allocation3 + $0x48] sm:$0xff] %vm1842_vm13, %v1801_v12  ;;  %v2883_v34 = vld [vmem:[#allocation3 + $0x38] sm:$0xff]  ;;  %v5908_v58 = vsel %vm7615_vm8, 1.0, %v9235_v3 }
  0xc6   : > { %v2487_v33 = vshrl.u32 %v2382_v60, 16  ;;  %v2490_v24 = vshll.u32 %v2382_v60, 16  ;;  %v1994_v39 = vshrl.u32 %v1889_v53, 16  ;;  %v1997_v27 = vshll.u32 %v1889_v53, 16  ;;  %v2882_v60 = vld [vmem:[#allocation3 + $0x30] sm:$0xff]  ;;  %2872 = vst.msk [vmem:[#allocation3 + $0x130] sm:$0xff] %vm253_vm0, %v2819_v21  ;;  %1443 = vrot.lane.b32.xlu1 %v7342_v41, %s6554_s28  ;;  %v2525_v13 = vpop.permute.xlu0 %2524  ;;  %3169 = vmatprep.mubr.bf16.mxu0 %v2883_v34 }
  0xc7   : > { %v1769_v44 = vsel %vm1060_vm4, %v1764_v6, %v1768_v8  ;;  %v1041_v53 = vpack.c.bf16 %v5908_v58, %v9232_v50  ;;  %v7645_v35 = vor.u32 %v2264_v26, %v2262_v47  ;;  %v1171_v23 = vor.u32 %v1169_v22, %v1167_v16  ;;  %2569 = vst.msk [vmem:[#allocation3 + $0x50] sm:$0xff] %vm1842_vm13, %v2525_v13  ;;  %v2032_v6 = vpop.permute.xlu1 %2031 }
  0xc8   : > { %v7636_v17 = vrot.slane %v2487_v33, 7  ;;  %v7639_v14 = vrot.slane %v1994_v39, 7  ;;  %3170 = vmatmul.mubr.bf16.gmra.mrb[8].mxu0 %v2882_v60  ;;  %v5892_v39 = vsel %vm847_vm9, 1.0, %v9235_v3  ;;  %v1770_v15 = vshrl.u32 %v7594_v43, 16  ;;  %2077 = vst.msk [vmem:[#allocation3 + $0x48] sm:$0xff] %vm2073_vm15, %v2032_v6 }
  0xc9   : > { %2312 = vrot.lane.b32.xlu0 %v2263_v59, %s6554_s28  ;;  %v1613_v12 = vshrl.u32 %v1041_v53, 16  ;;  %v1616_v21 = vshll.u32 %v1041_v53, 16  ;;  %v929_v22 = vpack.c.bf16 %v9232_v50, %v5892_v39  ;;  %v1260_v16 = vshrl.u32 %v7599_v63, 16 }
  0xca   : > { %v2492_v41 = vor.u32 %v2490_v24, %v7636_v17  ;;  %v1999_v33 = vor.u32 %v1997_v27, %v7639_v14  ;;  %1818 = vrot.lane.b32.xlu1 %v1769_v44, %s6558_s12  ;;  %v7661_v26 = vor.u32 %v1770_v15, %v1768_v8  ;;  %v1263_v43 = vshll.u32 %v7599_v63, 16  ;;  %v2621_v59 = vpop.permute.xlu0 %2620 }
  0xcb   : > { %v7664_v24 = vrot.slane %v1613_v12, 7  ;;  %v1173_v27 = vshll.u32 %v929_v22, 16  ;;  %v7666_v60 = vrot.slane %v1260_v16, 7  ;;  %v434_v34 = vadd.s32 248, %v6618_v2  ;;  %2665 = vst.msk [vmem:[#allocation3 + $0x50] sm:$0xff] %vm2073_vm15, %v2621_v59 }
  0xcc   : > { %v2493_v42 = vsel %vm1222_vm6, %v7541_v54, %v2492_v41  ;;  %v2000_v47 = vsel %vm1222_vm6, %v7548_v45, %v1999_v33  ;;  %v1428_v54 = vpop.permute.xlu1 %1427  ;;  %v433_v44 = vadd.s32 240, %v6618_v2  ;;  %v1177_v58 = vshrl.u32 %v929_v22, 16 }
  0xcd   : > { %v7673_v45 = vmul.bf16 %v7060_v32, %v7099_v30  ;;  %v7677_v63 = vmul.bf16 %v7129_v38, %v7155_v48  ;;  %2542 = vrot.lane.b32.xlu0 %v2493_v42, %s6558_s12  ;;  %v1618_v8 = vor.u32 %v1616_v21, %v7664_v24  ;;  %v1175_v13 = vrot.slane %v1173_v27, 1 }
  0xce   : > { %v1265_v53 = vor.u32 %v1263_v43, %v7666_v60  ;;  %v656_v41 = vand.u32 15, %v434_v34  ;;  %2049 = vrot.lane.b32.xlu1 %v2000_v47, %s6557_s29  ;;  %v649_v33 = vand.u32 15, %v433_v44  ;;  %v2297_v39 = vpop.permute.xlu0 %2296  ;;  %vm4129_vm8 = vsmask.f32 4352 }
  0xcf   : > { %v1268_v6 = vshrl.u32 %v7673_v45, 16  ;;  %v1276_v30 = vshrl.u32 %v7677_v63, 16  ;;  %v1619_v38 = vsel %vm1222_vm6, %v7558_v1, %v1618_v8  ;;  %v7689_v48 = vsel %vm1060_vm4, %v1171_v23, %v1175_v13  ;;  %2340 = vst.msk [vmem:[#allocation3 + $0x68] sm:$0xff] %vm1467_vm11, %v2297_v39  ;;  %v2885_v42 = vld [vmem:[#allocation3 + $0x48] sm:$0xff]  ;;  %v7717_v8 = vld [vmem:[#allocation2 + $0x80] sm:$0xff] }
  0xd0   : > { %v1266_v15 = vsel %vm1222_vm6, %v7575_v62, %v1265_v53  ;;  %vm962_vm10 = vcmp.lt.s32.totalorder %v656_v41, 15  ;;  %v2153_v12 = vmul.bf16 %v7585_v9, %v1619_v38  ;;  %v2709_v21 = vmul.bf16 %v7050_v10, %v1619_v38  ;;  %v1803_v1 = vpop.permute.xlu1 %1802  ;;  %2120 = vst.msk [vmem:[#allocation3 + $0x158] sm:$0xff] %vm253_vm0, %v7717_v8 }
  0xd1   : > { %v2383_v22 = vmul.bf16 %v7585_v9, %v7689_v48  ;;  %v7698_v16 = vmul.bf16 %v7500_v0, %v1619_v38  ;;  %1375 = vst.msk [vmem:[#allocation3 + $0x60] sm:$0xff] %vm253_vm0, %v1266_v15  ;;  %2638 = vrot.lane.b32.xlu0 %v7500_v0, %s6557_s29  ;;  %v1890_v62 = vmul.bf16 %v7500_v0, %v7689_v48  ;;  %v5909_v23 = vsel %vm962_vm10, 1.0, %v9235_v3 }
  0xd2   : > { %1472 = vst.msk [vmem:[#allocation3 + $0x60] sm:$0xff] %vm1467_vm11, %v1428_v54  ;;  %vm7708_vm12 = vcmp.gt.s32.totalorder %v649_v33, 0  ;;  %v7712_v43 = vor.u32 %v1177_v58, %v1175_v13  ;;  %v2268_v59 = vshll.u32 %v2153_v12, 16  ;;  %v2824_v27 = vshll.u32 %v2709_v21, 16  ;;  %1445 = vrot.lane.b32.xlu1 %v7449_v51, %s6554_s28  ;;  %v2914_v54 = vld [vmem:[#allocation3 + $0x130] sm:$0xff]  ;;  %v2527_v39 = vpop.permute.xlu0 %2526 }
  0xd3   : > { %v2828_v34 = vshrl.u32 %v2709_v21, 16  ;;  %v2495_v44 = vshrl.u32 %v2383_v22, 16  ;;  %1847 = vst.msk [vmem:[#allocation3 + $0x60] sm:$0xff] %vm1842_vm13, %v1803_v1  ;;  %v2498_v53 = vshll.u32 %v2383_v22, 16  ;;  %v1774_v41 = vshll.u32 %v7698_v16, 16  ;;  %v2886_v58 = vld [vmem:[#allocation3 + $0x50] sm:$0xff]  ;;  %6381 = vmatprep.mubr.msk.bf16.mxu1 %vm253_vm0, %v2914_v54 }
  0xd4   : > { %v2002_v33 = vshrl.u32 %v1890_v62, 16  ;;  %v2005_v38 = vshll.u32 %v1890_v62, 16  ;;  %v2270_v13 = vrot.slane %v2268_v59, 1  ;;  %v2826_v51 = vrot.slane %v2824_v27, 1  ;;  %2570 = vst.msk [vmem:[#allocation3 + $0x68] sm:$0xff] %vm1842_vm13, %v2527_v39  ;;  %3177 = vmatprep.mubr.bf16.mxu0 %v2886_v58  ;;  %v2034_v22 = vpop.permute.xlu1 %2033 }
  0xd5   : > { %v7723_v15 = vrot.slane %v2495_v44, 7  ;;  %v1042_v21 = vpack.c.bf16 %v5909_v23, %v9232_v50  ;;  %v1776_v1 = vrot.slane %v1774_v41, 1  ;;  %v2272_v62 = vshrl.u32 %v2153_v12, 16  ;;  %3178 = vmatmul.mubr.bf16.gmra.mrb[12].mxu0 %v2885_v42  ;;  %2078 = vst.msk [vmem:[#allocation3 + $0x60] sm:$0xff] %vm2073_vm15, %v2034_v22 }
  0xd6   : > { %v7727_v32 = vrot.slane %v2002_v33, 7  ;;  %v5893_v59 = vsel %vm7708_vm12, 1.0, %v9235_v3  ;;  %v2271_v27 = vsel %vm1060_vm4, %v7645_v35, %v2270_v13  ;;  %v2827_v44 = vsel %vm1060_vm4, %v7628_v31, %v2826_v51  ;;  %v2623_v33 = vpop.permute.xlu0 %2622 }
  0xd7   : > { %v7737_v54 = vor.u32 %v2828_v34, %v2826_v51  ;;  %v2500_v23 = vor.u32 %v2498_v53, %v7723_v15  ;;  %2873 = vst.msk [vmem:[#allocation3 + $0x148] sm:$0xff] %vm253_vm0, %v2827_v44  ;;  %2314 = vrot.lane.b32.xlu0 %v2271_v27, %s6554_s28  ;;  %v1777_v12 = vsel %vm1060_vm4, %v7661_v26, %v1776_v1  ;;  %v1621_v47 = vshrl.u32 %v1042_v21, 16  ;;  %v2694_v34 = vld [vmem:[#allocation2 + $0x98] sm:$0x1] }
  0xd8   : > { %v2007_v42 = vor.u32 %v2005_v38, %v7727_v32  ;;  %v1624_v41 = vshll.u32 %v1042_v21, 16  ;;  %1820 = vrot.lane.b32.xlu1 %v1777_v12, %s6558_s12  ;;  %v7748_v31 = vor.u32 %v2272_v62, %v2270_v13  ;;  %2666 = vst.msk [vmem:[#allocation3 + $0x68] sm:$0xff] %vm2073_vm15, %v2623_v33  ;;  %v7752_v53 = vpack.c.bf16 %v9232_v50, %v5893_v59  ;;  %v1430_v39 = vpop.permute.xlu1 %1429  ;;  %v2138_v38 = vld [vmem:[#allocation2 + $0x90] sm:$0x1]  ;;  %v7763_v13 = vld [vmem:[#allocation2 + $0x88] sm:$0x1] }
  0xd9   : > { %v2501_v35 = vsel %vm1222_vm6, %v7636_v17, %v2500_v23  ;;  %v1778_v26 = vshrl.u32 %v7698_v16, 16  ;;  %v7757_v51 = vrot.slane %v1621_v47, 7  ;;  %v7761_v17 = vrot.slane %v1268_v6, 7  ;;  %v7794_v47 = vld [vmem:[#allocation2 + $0x90] sm:$0xff] }
  0xda   : > { %v2008_v58 = vsel %vm1222_vm6, %v7639_v14, %v2007_v42  ;;  %v7767_v21 = vrot.slane %v1276_v30, 7  ;;  %v1181_v50 = vshll.u32 %v7752_v53, 16  ;;  %v1185_v22 = vshrl.u32 %v7752_v53, 16  ;;  %v2299_v59 = vpop.permute.xlu0 %2298 }
  0xdb   : > { %v7770_v16 = vor.u32 %v1778_v26, %v1776_v1  ;;  %v1279_v14 = vshll.u32 %v7677_v63, 16  ;;  %2544 = vrot.lane.b32.xlu0 %v2501_v35, %s6558_s12  ;;  %v1626_v62 = vor.u32 %v1624_v41, %v7757_v51  ;;  %v2711_v6 = vmul.bf16 %v2694_v34, %v7757_v51  ;;  %2341 = vst.msk [vmem:[#allocation3 + $0x80] sm:$0xff] %vm1467_vm11, %v2299_v59 }
  0xdc   : > { %v9244_v27 = vshll.u32 %v7673_v45, 16  ;;  %v2155_v44 = vmul.bf16 %v2138_v38, %v7757_v51  ;;  %2051 = vrot.lane.b32.xlu1 %v2008_v58, %s6557_s29  ;;  %v1183_v1 = vrot.slane %v1181_v50, 1  ;;  %v1805_v23 = vpop.permute.xlu1 %1804  ;;  %v1661_v63 = vmul.bf16 %v7757_v51, %v7763_v13 }
  0xdd   : > { %v7786_v12 = vor.u32 %v1279_v14, %v7767_v21  ;;  %v7790_v42 = vmul.bf16 %v7183_v49, %v7212_v18  ;;  %v1627_v45 = vsel %vm1222_vm6, %v7664_v24, %v1626_v62  ;;  %v2840_v41 = vshll.u32 %v2711_v6, 16  ;;  %v2888_v18 = vld [vmem:[#allocation3 + $0x60] sm:$0xff] }
  0xde   : > { %v1273_v30 = vor.u32 %v9244_v27, %v7761_v17  ;;  %v7798_v35 = vshll.u32 %v2155_v44, 16  ;;  %v2154_v34 = vmul.bf16 %v7050_v10, %v1627_v45  ;;  %v2710_v53 = vmul.bf16 %v7794_v47, %v1627_v45  ;;  %v2917_v24 = vld [vmem:[#allocation3 + $0x148] sm:$0xff] }
  0xdf   : > { %v7804_v26 = vsel %vm1060_vm4, %v7712_v43, %v1183_v1  ;;  %v1660_v49 = vmul.bf16 %v7585_v9, %v1627_v45  ;;  %2640 = vrot.lane.b32.xlu0 %v7585_v9, %s6557_s29  ;;  %v2889_v43 = vld [vmem:[#allocation3 + $0x68] sm:$0xff]  ;;  %6382 = vmatmul.mubr.msk.bf16.gmra.mrb[24].mxu1 %vm253_vm0, %v2917_v24  ;;  %v2529_v6 = vpop.permute.xlu0 %2528 }
  0xe0   : > { %v1274_v33 = vsel %vm1222_vm6, %v7666_v60, %v1273_v30  ;;  %v2842_v60 = vrot.slane %v2840_v41, 1  ;;  %v2384_v38 = vmul.bf16 %v7050_v10, %v7804_v26  ;;  %v1891_v58 = vmul.bf16 %v7585_v9, %v7804_v26  ;;  %1447 = vrot.lane.b32.xlu1 %v7500_v0, %s6554_s28  ;;  %3185 = vmatprep.mubr.bf16.mxu0 %v2889_v43 }
  0xe1   : > { %1376 = vst.msk [vmem:[#allocation3 + $0x78] sm:$0xff] %vm253_vm0, %v1274_v33  ;;  %v2286_v51 = vrot.slane %v7798_v35, 1  ;;  %v2276_v13 = vshll.u32 %v2154_v34, 16  ;;  %v2832_v50 = vshll.u32 %v2710_v53, 16  ;;  %v2836_v14 = vshrl.u32 %v2710_v53, 16  ;;  %3186 = vmatmul.mubr.bf16.gmra.mrb[16].mxu0 %v2888_v18 }
  0xe2   : > { %1473 = vst.msk [vmem:[#allocation3 + $0x78] sm:$0xff] %vm1467_vm11, %v1430_v39  ;;  %v1782_v62 = vshll.u32 %v1660_v49, 16  ;;  %v2036_v39 = vpop.permute.xlu1 %2035  ;;  %v2503_v59 = vshrl.u32 %v2384_v38, 16  ;;  %v2506_v27 = vshll.u32 %v2384_v38, 16  ;;  %v2010_v30 = vshrl.u32 %v1891_v58, 16 }
  0xe3   : > { %1848 = vst.msk [vmem:[#allocation3 + $0x78] sm:$0xff] %vm1842_vm13, %v1805_v23  ;;  %v2013_v44 = vshll.u32 %v1891_v58, 16  ;;  %2571 = vst.msk [vmem:[#allocation3 + $0x80] sm:$0xff] %vm1842_vm13, %v2529_v6  ;;  %v2278_v45 = vrot.slane %v2276_v13, 1  ;;  %v2834_v41 = vrot.slane %v2832_v50, 1  ;;  %v2280_v35 = vshrl.u32 %v2154_v34, 16  ;;  %v2625_v13 = vpop.permute.xlu0 %2624 }
  0xe4   : > { %2079 = vst.msk [vmem:[#allocation3 + $0x78] sm:$0xff] %vm2073_vm15, %v2036_v39  ;;  %v1784_v33 = vrot.slane %v1782_v62, 1  ;;  %v7822_v0 = vrot.slane %v2503_v59, 7  ;;  %v7824_v53 = vrot.slane %v2010_v30, 7  ;;  %v7826_v23 = vor.u32 %v1185_v22, %v1183_v1  ;;  %2667 = vst.msk [vmem:[#allocation3 + $0x80] sm:$0xff] %vm2073_vm15, %v2625_v13 }
  0xe5   : > { %v1786_v24 = vshrl.u32 %v1660_v49, 16  ;;  %v2279_v38 = vsel %vm1060_vm4, %v7748_v31, %v2278_v45  ;;  %v2835_v58 = vsel %vm1060_vm4, %v7737_v54, %v2834_v41  ;;  %v2838_v18 = vor.u32 %v2836_v14, %v2834_v41 }
  0xe6   : > { %v1785_v43 = vsel %vm1060_vm4, %v7770_v16, %v1784_v33  ;;  %v1432_v50 = vpop.permute.xlu1 %1431  ;;  %2874 = vst.msk [vmem:[#allocation3 + $0x160] sm:$0xff] %vm253_vm0, %v2835_v58  ;;  %2316 = vrot.lane.b32.xlu0 %v2279_v38, %s6554_s28  ;;  %v2508_v22 = vor.u32 %v2506_v27, %v7822_v0  ;;  %v2015_v1 = vor.u32 %v2013_v44, %v7824_v53  ;;  %v1790_v54 = vshll.u32 %v1661_v63, 16 }
  0xe7   : > { %1822 = vrot.lane.b32.xlu1 %v1785_v43, %s6558_s12  ;;  %v2282_v31 = vor.u32 %v2280_v35, %v2278_v45  ;;  %v2843_v34 = vsel %vm1060_vm4, %v2838_v18, %v2842_v60  ;;  %v2385_v16 = vmul.bf16 %v7794_v47, %v7826_v23  ;;  %v1788_v49 = vor.u32 %v1786_v24, %v1784_v33  ;;  %v2301_v27 = vpop.permute.xlu0 %2300 }
  0xe8   : > { %v1282_v14 = vsel %vm1222_vm6, %v7761_v17, %v7786_v12  ;;  %2875 = vst.msk [vmem:[#allocation3 + $0x178] sm:$0xff] %vm253_vm0, %v2843_v34  ;;  %v2509_v62 = vsel %vm1222_vm6, %v7723_v15, %v2508_v22  ;;  %v2016_v6 = vsel %vm1222_vm6, %v7727_v32, %v2015_v1  ;;  %v1792_v39 = vrot.slane %v1790_v54, 1 }
  0xe9   : > { %v2287_v63 = vsel %vm1060_vm4, %v2282_v31, %v2286_v51  ;;  %1377 = vst.msk [vmem:[#allocation3 + $0x90] sm:$0xff] %vm253_vm0, %v1282_v14  ;;  %v2511_v60 = vshrl.u32 %v2385_v16, 16  ;;  %v2514_v59 = vshll.u32 %v2385_v16, 16  ;;  %v1892_v17 = vmul.bf16 %v7050_v10, %v7826_v23 }
  0xea   : > { %1474 = vst.msk [vmem:[#allocation3 + $0x90] sm:$0xff] %vm1467_vm11, %v1432_v50  ;;  %v1807_v12 = vpop.permute.xlu1 %1806  ;;  %v1284_v30 = vshrl.u32 %v7790_v42, 16  ;;  %2546 = vrot.lane.b32.xlu0 %v2509_v62, %s6558_s12  ;;  %v1793_v32 = vsel %vm1060_vm4, %v1788_v49, %v1792_v39  ;;  %2342 = vst.msk [vmem:[#allocation3 + $0x98] sm:$0xff] %vm1467_vm11, %v2301_v27  ;;  %v1287_v15 = vshll.u32 %v7790_v42, 16  ;;  %v1214_v51 = vmul.bf16 %v7204_v19, %v7279_v57 }
  0xeb   : > { %2053 = vrot.lane.b32.xlu1 %v2016_v6, %s6557_s29  ;;  %1849 = vst.msk [vmem:[#allocation3 + $0x90] sm:$0xff] %vm1842_vm13, %v1807_v12  ;;  %v1215_v44 = vmul.bf16 %v7223_v61, %v7358_v37  ;;  %v2513_v45 = vrot.slane %v2511_v60, 7  ;;  %v2018_v41 = vshrl.u32 %v1892_v17, 16  ;;  %v2021_v33 = vshll.u32 %v1892_v17, 16  ;;  %v2531_v50 = vpop.permute.xlu0 %2530  ;;  %v2892_v22 = vld [vmem:[#allocation3 + $0x80] sm:$0xff]  ;;  %v2891_v1 = vld [vmem:[#allocation3 + $0x78] sm:$0xff] }
  0xec   : > { %v1286_v35 = vrot.slane %v1284_v30, 7  ;;  %v1292_v24 = vshrl.u32 %v1214_v51, 16  ;;  %v1295_v38 = vshll.u32 %v1214_v51, 16  ;;  %v1216_v19 = vmul.bf16 %v7286_v25, %v7466_v36  ;;  %2572 = vst.msk [vmem:[#allocation3 + $0x98] sm:$0xff] %vm1842_vm13, %v2531_v50  ;;  %3193 = vmatprep.mubr.bf16.mxu0 %v2892_v22 }
  0xed   : > { %v1300_v58 = vshrl.u32 %v1215_v44, 16  ;;  %v1303_v18 = vshll.u32 %v1215_v44, 16  ;;  %v2516_v43 = vor.u32 %v2514_v59, %v2513_v45  ;;  %v2020_v13 = vrot.slane %v2018_v41, 7  ;;  %v2920_v57 = vld [vmem:[#allocation3 + $0x160] sm:$0xff]  ;;  %3194 = vmatmul.mubr.bf16.gmra.mrb[20].mxu0 %v2891_v1 }
  0xee   : > { %v1289_v42 = vor.u32 %v1287_v15, %v1286_v35  ;;  %2642 = vrot.lane.b32.xlu0 %v7050_v10, %s6557_s29  ;;  %v2038_v61 = vpop.permute.xlu1 %2037  ;;  %v1294_v37 = vrot.slane %v1292_v24, 7  ;;  %v1217_v54 = vmul.bf16 %v7367_v52, %v7515_v56  ;;  %v1218_v34 = vmul.bf16 %v7476_v20, %v7604_v28  ;;  %6385 = vmatprep.mubr.msk.bf16.mxu1 %vm253_vm0, %v2920_v57 }
  0xef   : > { %1449 = vrot.lane.b32.xlu1 %v7585_v9, %s6554_s28  ;;  %v1302_v31 = vrot.slane %v1300_v58, 7  ;;  %v2517_v25 = vsel %vm1222_vm6, %v7822_v0, %v2516_v43  ;;  %v2023_v36 = vor.u32 %v2021_v33, %v2020_v13  ;;  %2080 = vst.msk [vmem:[#allocation3 + $0x90] sm:$0xff] %vm2073_vm15, %v2038_v61  ;;  %v1308_v9 = vshrl.u32 %v1216_v19, 16  ;;  %v2923_v16 = vld [vmem:[#allocation3 + $0x178] sm:$0xff]  ;;  %v2627_v49 = vpop.permute.xlu0 %2626 }
  0xf0   : > { %v1290_v10 = vsel %vm1222_vm6, %v7767_v21, %v1289_v42  ;;  %v1297_v52 = vor.u32 %v1295_v38, %v1294_v37  ;;  %v1311_v20 = vshll.u32 %v1216_v19, 16  ;;  %v1316_v28 = vshrl.u32 %v1217_v54, 16  ;;  %6386 = vmatmul.mubr.msk.bf16.gmra.mrb[28].mxu1 %vm253_vm0, %v2923_v16  ;;  %2668 = vst.msk [vmem:[#allocation3 + $0x98] sm:$0xff] %vm2073_vm15, %v2627_v49 }
  0xf1   : > { %1378 = vst.msk [vmem:[#allocation3 + $0xa8] sm:$0xff] %vm253_vm0, %v1290_v10  ;;  %v1305_v56 = vor.u32 %v1303_v18, %v1302_v31  ;;  %v2024_v0 = vsel %vm1222_vm6, %v7824_v53, %v2023_v36  ;;  %v1310_v14 = vrot.slane %v1308_v9, 7  ;;  %v1319_v62 = vshll.u32 %v1217_v54, 16 }
  0xf2   : > { %v1324_v21 = vshrl.u32 %v1218_v34, 16  ;;  %2318 = vrot.lane.b32.xlu0 %v2287_v63, %s6554_s28  ;;  %v1434_v6 = vpop.permute.xlu1 %1433  ;;  %v1298_v39 = vsel %vm1222_vm6, %v1286_v35, %v1297_v52  ;;  %v1318_v59 = vrot.slane %v1316_v28, 7  ;;  %v1327_v27 = vshll.u32 %v1218_v34, 16 }
  0xf3   : > { %1824 = vrot.lane.b32.xlu1 %v1793_v32, %s6558_s12  ;;  %v1306_v60 = vsel %vm1222_vm6, %v1294_v37, %v1305_v56  ;;  %1475 = vst.msk [vmem:[#allocation3 + $0xa8] sm:$0xff] %vm1467_vm11, %v1434_v6  ;;  %v1313_v53 = vor.u32 %v1311_v20, %v1310_v14  ;;  %v1219_v63 = vmul.bf16 %v7544_v55, %v7689_v48  ;;  %v2303_v15 = vpop.permute.xlu0 %2302 }
  0xf4   : > { %1379 = vst.msk [vmem:[#allocation3 + $0xc0] sm:$0xff] %vm253_vm0, %v1298_v39  ;;  %1380 = vst.msk [vmem:[#allocation3 + $0xd8] sm:$0xff] %vm253_vm0, %v1306_v60  ;;  %v1326_v17 = vrot.slane %v1324_v21, 7  ;;  %v1220_v12 = vmul.bf16 %v7621_v40, %v7804_v26  ;;  %v1321_v30 = vor.u32 %v1319_v62, %v1318_v59  ;;  %v1221_v32 = vmul.bf16 %v7717_v8, %v7826_v23 }
  0xf5   : > { %v1314_v51 = vsel %vm1222_vm6, %v1302_v31, %v1313_v53  ;;  %v1332_v45 = vshrl.u32 %v1219_v63, 16  ;;  %v1335_v41 = vshll.u32 %v1219_v63, 16  ;;  %2343 = vst.msk [vmem:[#allocation3 + $0xb0] sm:$0xff] %vm1467_vm11, %v2303_v15 }
  0xf6   : > { %v1329_v44 = vor.u32 %v1327_v27, %v1326_v17  ;;  %2548 = vrot.lane.b32.xlu0 %v2517_v25, %s6558_s12  ;;  %v1809_v55 = vpop.permute.xlu1 %1808  ;;  %1381 = vst.msk [vmem:[#allocation3 + $0xf0] sm:$0xff] %vm253_vm0, %v1314_v51  ;;  %v1322_v40 = vsel %vm1222_vm6, %v1310_v14, %v1321_v30  ;;  %v1340_v48 = vshrl.u32 %v1220_v12, 16  ;;  %v1343_v26 = vshll.u32 %v1220_v12, 16  ;;  %v2894_v24 = vld [vmem:[#allocation3 + $0x90] sm:$0xff] }
  0xf7   : > { %2055 = vrot.lane.b32.xlu1 %v2024_v0, %s6557_s29  ;;  %v1348_v8 = vshrl.u32 %v1221_v32, 16  ;;  %1850 = vst.msk [vmem:[#allocation3 + $0xa8] sm:$0xff] %vm1842_vm13, %v1809_v55  ;;  %v1334_v33 = vrot.slane %v1332_v45, 7  ;;  %v1351_v35 = vshll.u32 %v1221_v32, 16  ;;  %v2533_v18 = vpop.permute.xlu0 %2532  ;;  %v2895_v43 = vld [vmem:[#allocation3 + $0x98] sm:$0xff] }
  0xf8   : > { %1382 = vst.msk [vmem:[#allocation3 + $0x108] sm:$0xff] %vm253_vm0, %v1322_v40  ;;  %v1330_v23 = vsel %vm1222_vm6, %v1318_v59, %v1329_v44  ;;  %v1342_v38 = vrot.slane %v1340_v48, 7  ;;  %3201 = vmatprep.mubr.bf16.mxu0 %v2895_v43 }
  0xf9   : > { %1383 = vst.msk [vmem:[#allocation3 + $0x120] sm:$0xff] %vm253_vm0, %v1330_v23  ;;  %v1350_v58 = vrot.slane %v1348_v8, 7  ;;  %v1337_v13 = vor.u32 %v1335_v41, %v1334_v33  ;;  %3202 = vmatmul.mubr.bf16.gmra.mrb[24].mxu0 %v2894_v24 }
  0xfa   : > { %2644 = vrot.lane.b32.xlu0 %v7794_v47, %s6557_s29  ;;  %2573 = vst.msk [vmem:[#allocation3 + $0xb0] sm:$0xff] %vm1842_vm13, %v2533_v18  ;;  %v2040_v50 = vpop.permute.xlu1 %2039  ;;  %v1345_v22 = vor.u32 %v1343_v26, %v1342_v38 }
  0xfb   : > { %v1353_v1 = vor.u32 %v1351_v35, %v1350_v58  ;;  %2081 = vst.msk [vmem:[#allocation3 + $0xa8] sm:$0xff] %vm2073_vm15, %v2040_v50  ;;  %v1338_v42 = vsel %vm1222_vm6, %v1326_v17, %v1337_v13  ;;  %v2629_v61 = vpop.permute.xlu0 %2628 }
  0xfc   : > { %1384 = vst.msk [vmem:[#allocation3 + $0x138] sm:$0xff] %vm253_vm0, %v1338_v42  ;;  %v1346_v19 = vsel %vm1222_vm6, %v1334_v33, %v1345_v22 }
  0xfd   : > { %v1354_v57 = vsel %vm1222_vm6, %v1342_v38, %v1353_v1  ;;  %1385 = vst.msk [vmem:[#allocation3 + $0x150] sm:$0xff] %vm253_vm0, %v1346_v19 }
  0xfe   : > { %1386 = vst.msk [vmem:[#allocation3 + $0x168] sm:$0xff] %vm253_vm0, %v1354_v57  ;;  %v1436_v47 = vpop.permute.xlu1 %1435 }
  0xff   : > { %2669 = vst.msk [vmem:[#allocation3 + $0xb0] sm:$0xff] %vm2073_vm15, %v2629_v61  ;;  %v2305_v37 = vpop.permute.xlu0 %2304 }
 0x100   : > { %1476 = vst.msk [vmem:[#allocation3 + $0xc0] sm:$0xff] %vm1467_vm11, %v1436_v47  ;;  %2344 = vst.msk [vmem:[#allocation3 + $0xc8] sm:$0xff] %vm1467_vm11, %v2305_v37 }
 0x102   : > { %v1811_v31 = vpop.permute.xlu1 %1810  ;;  %v2897_v54 = vld [vmem:[#allocation3 + $0xa8] sm:$0xff] }
 0x103   : > { %1851 = vst.msk [vmem:[#allocation3 + $0xc0] sm:$0xff] %vm1842_vm13, %v1811_v31 }
 0x105   : > { %v2535_v25 = vpop.permute.xlu0 %2534 }
 0x106   : > { %v2898_v34 = vld [vmem:[#allocation3 + $0xb0] sm:$0xff]  ;;  %2574 = vst.msk [vmem:[#allocation3 + $0xc8] sm:$0xff] %vm1842_vm13, %v2535_v25  ;;  %v2042_v36 = vpop.permute.xlu1 %2041 }
 0x107   : > { %3209 = vmatprep.mubr.bf16.mxu0 %v2898_v34  ;;  %2082 = vst.msk [vmem:[#allocation3 + $0xc0] sm:$0xff] %vm2073_vm15, %v2042_v36 }
 0x108   : > { %3210 = vmatmul.mubr.bf16.gmra.mrb[28].mxu0 %v2897_v54 }
 0x109   : > { %v2631_v10 = vpop.permute.xlu0 %2630 }
 0x10a   : > { %2670 = vst.msk [vmem:[#allocation3 + $0xc8] sm:$0xff] %vm2073_vm15, %v2631_v10  ;;  %v1438_v9 = vpop.permute.xlu1 %1437 }
 0x10b   : > { %1477 = vst.msk [vmem:[#allocation3 + $0xd8] sm:$0xff] %vm1467_vm11, %v1438_v9 }
 0x10e   : > { %v2307_v16 = vpop.permute.xlu0 %2306  ;;  %v2900_v56 = vld [vmem:[#allocation3 + $0xc0] sm:$0xff] }
 0x10f   : > { %2345 = vst.msk [vmem:[#allocation3 + $0xe0] sm:$0xff] %vm1467_vm11, %v2307_v16  ;;  %v1813_v52 = vpop.permute.xlu1 %1812 }
 0x110   : > { %1852 = vst.msk [vmem:[#allocation3 + $0xd8] sm:$0xff] %vm1842_vm13, %v1813_v52 }
 0x111   : > { %v2901_v20 = vld [vmem:[#allocation3 + $0xc8] sm:$0xff] }
 0x112   : > { %3217 = vmatprep.mubr.bf16.mxu0 %v2901_v20 }
 0x113   : > { %3218 = vmatmul.mubr.bf16.gmra.mrb[32].mxu0 %v2900_v56 }
 0x114   : > { %v2537_v28 = vpop.permute.xlu0 %2536 }
 0x115   : > { %2575 = vst.msk [vmem:[#allocation3 + $0xe0] sm:$0xff] %vm1842_vm13, %v2537_v28  ;;  %v2044_v0 = vpop.permute.xlu1 %2043 }
 0x116   : > { %2083 = vst.msk [vmem:[#allocation3 + $0xd8] sm:$0xff] %vm2073_vm15, %v2044_v0 }
 0x118   : > { %v2633_v49 = vpop.permute.xlu0 %2632 }
 0x119   : > { %2671 = vst.msk [vmem:[#allocation3 + $0xe0] sm:$0xff] %vm2073_vm15, %v2633_v49  ;;  %v1440_v14 = vpop.permute.xlu1 %1439 }
 0x11a   : > { %1478 = vst.msk [vmem:[#allocation3 + $0xf0] sm:$0xff] %vm1467_vm11, %v1440_v14 }
 0x11b   : > { %v7936_v62 = vpop.f32.mrb[0].mxu1 }
 0x11c   : > { %v7938_v21 = vpop.f32.mrb[1].mxu1 }
 0x11d   : > { %v2903_v6 = vld [vmem:[#allocation3 + $0xd8] sm:$0xff]  ;;  %v7940_v39 = vpop.f32.mrb[2].mxu1 }
 0x11e   : > { %v7942_v59 = vpop.f32.mrb[3].mxu1 }
 0x120   : > { %v2904_v60 = vld [vmem:[#allocation3 + $0xe0] sm:$0xff] }
 0x121   : > { %v2309_v27 = vpop.permute.xlu0 %2308  ;;  %3225 = vmatprep.mubr.bf16.mxu0 %v2904_v60 }
 0x122   : > { %2346 = vst.msk [vmem:[#allocation3 + $0xf8] sm:$0xff] %vm1467_vm11, %v2309_v27  ;;  %v1815_v53 = vpop.permute.xlu1 %1814  ;;  %3226 = vmatmul.mubr.bf16.gmra.mrb[36].mxu0 %v2903_v6 }
 0x123   : > { %1853 = vst.msk [vmem:[#allocation3 + $0xf0] sm:$0xff] %vm1842_vm13, %v1815_v53 }
 0x127   : > { %v2539_v17 = vpop.permute.xlu0 %2538 }
 0x128   : > { %2576 = vst.msk [vmem:[#allocation3 + $0xf8] sm:$0xff] %vm1842_vm13, %v2539_v17  ;;  %v2046_v63 = vpop.permute.xlu1 %2045 }
 0x129   : > { %2084 = vst.msk [vmem:[#allocation3 + $0xf0] sm:$0xff] %vm2073_vm15, %v2046_v63 }
 0x12b   : > { %v2635_v12 = vpop.permute.xlu0 %2634  ;;  %v7949_v32 = vpop.f32.mrb[4].mxu1 }
 0x12c   : > { %2672 = vst.msk [vmem:[#allocation3 + $0xf8] sm:$0xff] %vm2073_vm15, %v2635_v12  ;;  %v1442_v30 = vpop.permute.xlu1 %1441  ;;  %v7952_v15 = vpop.f32.mrb[5].mxu1 }
 0x12d   : > { %1479 = vst.msk [vmem:[#allocation3 + $0x108] sm:$0xff] %vm1467_vm11, %v1442_v30  ;;  %v7954_v51 = vpop.f32.mrb[6].mxu1 }
 0x12e   : > { %v7956_v45 = vpop.f32.mrb[7].mxu1 }
 0x12f   : > { %v2311_v44 = vpop.permute.xlu0 %2310 }
 0x130   : > { %2347 = vst.msk [vmem:[#allocation3 + $0x110] sm:$0xff] %vm1467_vm11, %v2311_v44  ;;  %v1817_v41 = vpop.permute.xlu1 %1816  ;;  %v2906_v55 = vld [vmem:[#allocation3 + $0xf0] sm:$0xff] }
 0x131   : > { %1854 = vst.msk [vmem:[#allocation3 + $0x108] sm:$0xff] %vm1842_vm13, %v1817_v41 }
 0x133   : > { %v2541_v40 = vpop.permute.xlu0 %2540  ;;  %v2907_v48 = vld [vmem:[#allocation3 + $0xf8] sm:$0xff] }
 0x134   : > { %2577 = vst.msk [vmem:[#allocation3 + $0x110] sm:$0xff] %vm1842_vm13, %v2541_v40  ;;  %3233 = vmatprep.mubr.bf16.mxu0 %v2907_v48  ;;  %v2048_v26 = vpop.permute.xlu1 %2047 }
 0x135   : > { %3234 = vmatmul.mubr.bf16.gmra.mrb[40].mxu0 %v2906_v55  ;;  %2085 = vst.msk [vmem:[#allocation3 + $0x108] sm:$0xff] %vm2073_vm15, %v2048_v26 }
 0x137   : > { %v2637_v8 = vpop.permute.xlu0 %2636 }
 0x138   : > { %2673 = vst.msk [vmem:[#allocation3 + $0x110] sm:$0xff] %vm2073_vm15, %v2637_v8  ;;  %v1444_v23 = vpop.permute.xlu1 %1443 }
 0x139   : > { %1480 = vst.msk [vmem:[#allocation3 + $0x120] sm:$0xff] %vm1467_vm11, %v1444_v23  ;;  %v8014_v23 = vld [vmem:[%s9215_s2] ss:$0 sm:$0xff] }
 0x13b   : > { %v2313_v33 = vpop.permute.xlu0 %2312 }
 0x13c   : > { %2348 = vst.msk [vmem:[#allocation3 + $0x128] sm:$0xff] %vm1467_vm11, %v2313_v33  ;;  %v1819_v35 = vpop.permute.xlu1 %1818  ;;  %v2909_v24 = vld [vmem:[#allocation3 + $0x108] sm:$0xff] }
 0x13d   : > { %1855 = vst.msk [vmem:[#allocation3 + $0x120] sm:$0xff] %vm1842_vm13, %v1819_v35 }
 0x13f   : > { %v2543_v38 = vpop.permute.xlu0 %2542  ;;  %v2910_v58 = vld [vmem:[#allocation3 + $0x110] sm:$0xff] }
 0x140   : > { %2578 = vst.msk [vmem:[#allocation3 + $0x128] sm:$0xff] %vm1842_vm13, %v2543_v38  ;;  %3241 = vmatprep.mubr.bf16.mxu0 %v2910_v58  ;;  %v2050_v18 = vpop.permute.xlu1 %2049 }
 0x141   : > { %3242 = vmatmul.mubr.bf16.gmra.mrb[44].mxu0 %v2909_v24  ;;  %2086 = vst.msk [vmem:[#allocation3 + $0x120] sm:$0xff] %vm2073_vm15, %v2050_v18  ;;  %v7970_v50 = vpop.f32.mrb[8].mxu1 }
 0x142   : > { %v7972_v22 = vpop.f32.mrb[9].mxu1 }
 0x143   : > { %v2639_v43 = vpop.permute.xlu0 %2638  ;;  %v7974_v42 = vpop.f32.mrb[10].mxu1 }
 0x144   : > { %2674 = vst.msk [vmem:[#allocation3 + $0x128] sm:$0xff] %vm2073_vm15, %v2639_v43  ;;  %v1446_v13 = vpop.permute.xlu1 %1445  ;;  %v7977_v61 = vpop.f32.mrb[11].mxu1 }
 0x145   : > { %1481 = vst.msk [vmem:[#allocation3 + $0x138] sm:$0xff] %vm1467_vm11, %v1446_v13 }
 0x148   : > { %v2912_v57 = vld [vmem:[#allocation3 + $0x120] sm:$0xff] }
 0x149   : > { %v2315_v1 = vpop.permute.xlu0 %2314 }
 0x14a   : > { %2349 = vst.msk [vmem:[#allocation3 + $0x140] sm:$0xff] %vm1467_vm11, %v2315_v1  ;;  %v1821_v19 = vpop.permute.xlu1 %1820 }
 0x14b   : > { %1856 = vst.msk [vmem:[#allocation3 + $0x138] sm:$0xff] %vm1842_vm13, %v1821_v19  ;;  %v2913_v47 = vld [vmem:[#allocation3 + $0x128] sm:$0xff] }
 0x14c   : > { %3249 = vmatprep.mubr.bf16.mxu0 %v2913_v47 }
 0x14d   : > { %v2545_v37 = vpop.permute.xlu0 %2544  ;;  %3250 = vmatmul.mubr.bf16.gmra.mrb[48].mxu0 %v2912_v57 }
 0x14e   : > { %2579 = vst.msk [vmem:[#allocation3 + $0x140] sm:$0xff] %vm1842_vm13, %v2545_v37  ;;  %v2052_v31 = vpop.permute.xlu1 %2051 }
 0x14f   : > { %2087 = vst.msk [vmem:[#allocation3 + $0x138] sm:$0xff] %vm2073_vm15, %v2052_v31 }
 0x151   : > { %v2641_v54 = vpop.permute.xlu0 %2640 }
 0x152   : > { %2675 = vst.msk [vmem:[#allocation3 + $0x140] sm:$0xff] %vm2073_vm15, %v2641_v54  ;;  %v1448_v34 = vpop.permute.xlu1 %1447 }
 0x153   : > { %1482 = vst.msk [vmem:[#allocation3 + $0x150] sm:$0xff] %vm1467_vm11, %v1448_v34 }
 0x156   : > { %v2915_v10 = vld [vmem:[#allocation3 + $0x138] sm:$0xff] }
 0x158   : > { %v2317_v25 = vpop.permute.xlu0 %2316 }
 0x159   : > { %v1823_v36 = vpop.permute.xlu1 %1822  ;;  %2350 = vst.msk [vmem:[#allocation3 + $0x158] sm:$0xff] %vm1467_vm11, %v2317_v25  ;;  %v2916_v9 = vld [vmem:[#allocation3 + $0x140] sm:$0xff] }
 0x15a   : > { %1857 = vst.msk [vmem:[#allocation3 + $0x150] sm:$0xff] %vm1842_vm13, %v1823_v36  ;;  %3257 = vmatprep.mubr.bf16.mxu0 %v2916_v9 }
 0x15b   : > { %3258 = vmatmul.mubr.bf16.gmra.mrb[52].mxu0 %v2915_v10  ;;  %v7988_v56 = vpop.f32.mrb[12].mxu1 }
 0x15c   : > { %v2547_v16 = vpop.permute.xlu0 %2546  ;;  %v7990_v20 = vpop.f32.mrb[13].mxu1 }
 0x15d   : > { %v2054_v52 = vpop.permute.xlu1 %2053  ;;  %2580 = vst.msk [vmem:[#allocation3 + $0x158] sm:$0xff] %vm1842_vm13, %v2547_v16  ;;  %v7992_v28 = vpop.f32.mrb[14].mxu1 }
 0x15e   : > { %2088 = vst.msk [vmem:[#allocation3 + $0x150] sm:$0xff] %vm2073_vm15, %v2054_v52  ;;  %v7996_v14 = vpop.f32.mrb[15].mxu1 }
 0x160   : > { %v2643_v0 = vpop.permute.xlu0 %2642 }
 0x161   : > { %v1450_v49 = vpop.permute.xlu1 %1449  ;;  %2676 = vst.msk [vmem:[#allocation3 + $0x158] sm:$0xff] %vm2073_vm15, %v2643_v0 }
 0x162   : > { %1483 = vst.msk [vmem:[#allocation3 + $0x168] sm:$0xff] %vm1467_vm11, %v1450_v49 }
 0x164   : > { %v2319_v6 = vpop.permute.xlu0 %2318 }
 0x165   : > { %v1825_v60 = vpop.permute.xlu1 %1824  ;;  %2351 = vst.msk [vmem:[#allocation3 + $0x170] sm:$0xff] %vm1467_vm11, %v2319_v6  ;;  %v2918_v27 = vld [vmem:[#allocation3 + $0x150] sm:$0xff] }
 0x166   : > { %1858 = vst.msk [vmem:[#allocation3 + $0x168] sm:$0xff] %vm1842_vm13, %v1825_v60 }
 0x168   : > { %v2549_v53 = vpop.permute.xlu0 %2548  ;;  %v2919_v17 = vld [vmem:[#allocation3 + $0x158] sm:$0xff] }
 0x169   : > { %v2056_v63 = vpop.permute.xlu1 %2055  ;;  %2581 = vst.msk [vmem:[#allocation3 + $0x170] sm:$0xff] %vm1842_vm13, %v2549_v53  ;;  %3265 = vmatprep.mubr.bf16.mxu0 %v2919_v17 }
 0x16a   : > { %2089 = vst.msk [vmem:[#allocation3 + $0x168] sm:$0xff] %vm2073_vm15, %v2056_v63  ;;  %3266 = vmatmul.mubr.bf16.gmra.mrb[56].mxu0 %v2918_v27 }
 0x16c   : > { %v2645_v12 = vpop.permute.xlu0 %2644 }
 0x16d   : > { %2677 = vst.msk [vmem:[#allocation3 + $0x170] sm:$0xff] %vm2073_vm15, %v2645_v12 }
 0x171   : > { %v2921_v30 = vld [vmem:[#allocation3 + $0x168] sm:$0xff] }
 0x174   : > { %v2922_v44 = vld [vmem:[#allocation3 + $0x170] sm:$0xff] }
 0x175   : > { %3273 = vmatprep.mubr.bf16.mxu0 %v2922_v44 }
 0x176   : > { %3274 = vmatmul.mubr.bf16.gmra.mrb[60].mxu0 %v2921_v30 }
 0x177   : > { %v8003_v41 = vpop.f32.mrb[16].mxu1 }
 0x178   : > { %v8005_v55 = vpop.f32.mrb[17].mxu1 }
 0x179   : > { %v8007_v40 = vpop.f32.mrb[18].mxu1 }
 0x17a   : > { %v8009_v48 = vpop.f32.mrb[19].mxu1 }
 0x182   : > { %v6118_v26 = vpop.f32.mrb[0].mxu0 }
 0x183   : > { %v6119_v8 = vpop.f32.mrb[1].mxu0 }
 0x184   : > { %v6120_v33 = vadd.f32 %v6119_v8, %v6118_v26  ;;  %v6121_v35 = vpop.f32.mrb[2].mxu0 }
 0x185   : > { %v6122_v24 = vpop.f32.mrb[3].mxu0 }
 0x186   : > { %v6123_v38 = vadd.f32 %v6122_v24, %v6121_v35  ;;  %v3156_v58 = vadd.f32 %v6120_v33, %v8014_v23 }
 0x188   : > { %v8018_v18 = vadd.f32 %v7938_v21, %v3156_v58  ;;  %v3159_v43 = vadd.f32 %v6123_v38, %v8014_v23 }
 0x18a   : > { %v8022_v13 = vadd.f32 %v7942_v59, %v3159_v43 }
 0x18b   : > { %v6124_v1 = vpop.f32.mrb[4].mxu0 }
 0x18c   : > { %v6125_v19 = vpop.f32.mrb[5].mxu0 }
 0x18d   : > { %v6126_v57 = vadd.f32 %v6125_v19, %v6124_v1  ;;  %v6127_v47 = vpop.f32.mrb[6].mxu0 }
 0x18e   : > { %v6128_v37 = vpop.f32.mrb[7].mxu0 }
 0x18f   : > { %v3164_v31 = vadd.f32 %v6126_v57, %v8014_v23  ;;  %v6129_v54 = vadd.f32 %v6128_v37, %v6127_v47 }
 0x191   : > { %v8026_v34 = vadd.f32 %v7936_v62, %v3164_v31  ;;  %v3167_v25 = vadd.f32 %v6129_v54, %v8014_v23 }
 0x193   : > { %v8030_v21 = vadd.f32 %v7940_v39, %v3167_v25  ;;  %v8032_v36 = vpop.f32.mrb[20].mxu1 }
 0x194   : > { %v8034_v59 = vpop.f32.mrb[21].mxu1 }
 0x195   : > { %v8036_v10 = vpop.f32.mrb[22].mxu1 }
 0x196   : > { %v8038_v9 = vpop.f32.mrb[23].mxu1 }
 0x19b   : > { %v6130_v16 = vpop.f32.mrb[8].mxu0 }
 0x19c   : > { %v6131_v52 = vpop.f32.mrb[9].mxu0 }
 0x19d   : > { %v6132_v0 = vadd.f32 %v6131_v52, %v6130_v16  ;;  %v6133_v49 = vpop.f32.mrb[10].mxu0 }
 0x19e   : > { %v6134_v6 = vpop.f32.mrb[11].mxu0 }
 0x19f   : > { %v6135_v62 = vadd.f32 %v6134_v6, %v6133_v49  ;;  %v3172_v60 = vadd.f32 %v6132_v0, %v8014_v23 }
 0x1a1   : > { %v8042_v27 = vadd.f32 %v7952_v15, %v3172_v60  ;;  %v3175_v39 = vadd.f32 %v6135_v62, %v8014_v23 }
 0x1a3   : > { %v8046_v53 = vadd.f32 %v7956_v45, %v3175_v39 }
 0x1a8   : > { %v6136_v17 = vpop.f32.mrb[12].mxu0 }
 0x1a9   : > { %v6137_v63 = vpop.f32.mrb[13].mxu0 }
 0x1aa   : > { %v6138_v12 = vadd.f32 %v6137_v63, %v6136_v17  ;;  %v6139_v30 = vpop.f32.mrb[14].mxu0 }
 0x1ab   : > { %v6140_v44 = vpop.f32.mrb[15].mxu0 }
 0x1ac   : > { %v3180_v26 = vadd.f32 %v6138_v12, %v8014_v23  ;;  %v6141_v8 = vadd.f32 %v6140_v44, %v6139_v30 }
 0x1ae   : > { %v8050_v33 = vadd.f32 %v7949_v32, %v3180_v26  ;;  %v3183_v35 = vadd.f32 %v6141_v8, %v8014_v23 }
 0x1b0   : > { %v8054_v15 = vadd.f32 %v7954_v51, %v3183_v35 }
 0x1b2   : > { %v8056_v24 = vpop.f32.mrb[24].mxu1 }
 0x1b3   : > { %v8058_v45 = vpop.f32.mrb[25].mxu1 }
 0x1b4   : > { %v6142_v38 = vpop.f32.mrb[16].mxu0  ;;  %v8060_v58 = vpop.f32.mrb[26].mxu1 }
 0x1b5   : > { %v6143_v43 = vpop.f32.mrb[17].mxu0  ;;  %v8062_v1 = vpop.f32.mrb[27].mxu1 }
 0x1b6   : > { %v6144_v19 = vadd.f32 %v6143_v43, %v6142_v38  ;;  %v6145_v57 = vpop.f32.mrb[18].mxu0 }
 0x1b7   : > { %v6146_v47 = vpop.f32.mrb[19].mxu0 }
 0x1b8   : > { %v6147_v32 = vadd.f32 %v6146_v47, %v6145_v57  ;;  %v3188_v37 = vadd.f32 %v6144_v19, %v8014_v23 }
 0x1ba   : > { %v8066_v31 = vadd.f32 %v7972_v22, %v3188_v37  ;;  %v3191_v51 = vadd.f32 %v6147_v32, %v8014_v23 }
 0x1bc   : > { %v8070_v54 = vadd.f32 %v7977_v61, %v3191_v51 }
 0x1c0   : > { %v6148_v25 = vpop.f32.mrb[20].mxu0 }
 0x1c1   : > { %v6149_v52 = vpop.f32.mrb[21].mxu0 }
 0x1c2   : > { %v6150_v49 = vadd.f32 %v6149_v52, %v6148_v25  ;;  %v6151_v6 = vpop.f32.mrb[22].mxu0 }
 0x1c3   : > { %v8072_v16 = vpop.f32.mrb[28].mxu1  ;;  %v6152_v60 = vpop.f32.mrb[23].mxu0 }
 0x1c4   : > { %v8074_v0 = vpop.f32.mrb[29].mxu1  ;;  %v3196_v22 = vadd.f32 %v6150_v49, %v8014_v23  ;;  %v6153_v17 = vadd.f32 %v6152_v60, %v6151_v6 }
 0x1c5   : > { %v8076_v62 = vpop.f32.mrb[30].mxu1 }
 0x1c6   : > { %v8078_v39 = vpop.f32.mrb[31].mxu1  ;;  %v8082_v63 = vadd.f32 %v7970_v50, %v3196_v22  ;;  %v3199_v61 = vadd.f32 %v6153_v17, %v8014_v23 }
 0x1c8   : > { %v8086_v12 = vadd.f32 %v7974_v42, %v3199_v61  ;;  %v3444_v61 = vsel %vm253_vm0, %v8022_v13, 0.0 }
 0x1cc   : > { %v6154_v30 = vpop.f32.mrb[24].mxu0 }
 0x1cd   : > { %v6155_v44 = vpop.f32.mrb[25].mxu0 }
 0x1ce   : > { %v6156_v26 = vadd.f32 %v6155_v44, %v6154_v30  ;;  %v6157_v8 = vpop.f32.mrb[26].mxu0 }
 0x1cf   : > { %v6158_v35 = vpop.f32.mrb[27].mxu0 }
 0x1d0   : > { %v6159_v38 = vadd.f32 %v6158_v35, %v6157_v8  ;;  %v3204_v43 = vadd.f32 %v6156_v26, %v8014_v23  ;;  %v3446_v8 = vsel %vm253_vm0, %v8026_v34, 0.0 }
 0x1d2   : > { %v8090_v19 = vadd.f32 %v7990_v20, %v3204_v43  ;;  %v3207_v57 = vadd.f32 %v6159_v38, %v8014_v23 }
 0x1d4   : > { %v8094_v50 = vadd.f32 %v7996_v14, %v3207_v57 }
 0x1db   : > { %v6160_v47 = vpop.f32.mrb[28].mxu0 }
 0x1dc   : > { %v6161_v32 = vpop.f32.mrb[29].mxu0 }
 0x1dd   : > { %v6162_v42 = vadd.f32 %v6161_v32, %v6160_v47  ;;  %v6163_v37 = vpop.f32.mrb[30].mxu0  ;;  %v3448_v47 = vsel %vm253_vm0, %v8030_v21, 0.0  ;;  %v3450_v32 = vsel %vm253_vm0, %v8042_v27, 0.0 }
 0x1de   : > { %v6164_v51 = vpop.f32.mrb[31].mxu0 }
 0x1df   : > { %v3212_v25 = vadd.f32 %v6162_v42, %v8014_v23  ;;  %v6165_v52 = vadd.f32 %v6164_v51, %v6163_v37 }
 0x1e1   : > { %v8098_v49 = vadd.f32 %v7988_v56, %v3212_v25  ;;  %v3215_v6 = vadd.f32 %v6165_v52, %v8014_v23  ;;  %v3443_v56 = vsel %vm253_vm0, %v8018_v18, 0.0  ;;  %v3452_v25 = vsel %vm253_vm0, %v8046_v53, 0.0 }
 0x1e2   : > { %v3445_v35 = vadd.f32 %v3444_v61, %v3443_v56 }
 0x1e3   : > { %v8102_v20 = vadd.f32 %v7992_v28, %v3215_v6 }
 0x1e4   : > { %v3447_v43 = vadd.f32 %v3446_v8, %v3445_v35  ;;  %v3458_v8 = vsel %vm253_vm0, %v8066_v31, 0.0 }
 0x1e6   : > { %v6166_v60 = vpop.f32.mrb[32].mxu0  ;;  %v3449_v42 = vadd.f32 %v3448_v47, %v3447_v43  ;;  %v3460_v43 = vsel %vm253_vm0, %v8070_v54, 0.0 }
 0x1e7   : > { %v6167_v22 = vpop.f32.mrb[33].mxu0 }
 0x1e8   : > { %v6168_v14 = vadd.f32 %v6167_v22, %v6166_v60  ;;  %v6169_v17 = vpop.f32.mrb[34].mxu0  ;;  %v3451_v37 = vadd.f32 %v3450_v32, %v3449_v42  ;;  %v3454_v60 = vsel %vm253_vm0, %v8050_v33, 0.0  ;;  %v3464_v42 = vsel %vm253_vm0, %v8086_v12, 0.0 }
 0x1e9   : > { %v6170_v30 = vpop.f32.mrb[35].mxu0 }
 0x1ea   : > { %v6171_v44 = vadd.f32 %v6170_v30, %v6169_v17  ;;  %v3220_v26 = vadd.f32 %v6168_v14, %v8014_v23  ;;  %v3453_v22 = vadd.f32 %v3452_v25, %v3451_v37 }
 0x1ec   : > { %v8112_v28 = vadd.f32 %v8005_v55, %v3220_v26  ;;  %v3223_v38 = vadd.f32 %v6171_v44, %v8014_v23  ;;  %v3455_v61 = vadd.f32 %v3454_v60, %v3453_v22  ;;  %v3456_v26 = vsel %vm253_vm0, %v8054_v15, 0.0 }
 0x1ee   : > { %v8116_v57 = vadd.f32 %v8009_v48, %v3223_v38  ;;  %v3457_v35 = vadd.f32 %v3456_v26, %v3455_v61 }
 0x1f0   : > { %v3459_v38 = vadd.f32 %v3458_v8, %v3457_v35 }
 0x1f2   : > { %v3461_v47 = vadd.f32 %v3460_v43, %v3459_v38  ;;  %v3472_v38 = vsel %vm253_vm0, %v8102_v20, 0.0 }
 0x1f5   : > { %v6172_v51 = vpop.f32.mrb[36].mxu0 }
 0x1f6   : > { %v6173_v55 = vpop.f32.mrb[37].mxu0 }
 0x1f7   : > { %v6174_v52 = vadd.f32 %v6173_v55, %v6172_v51  ;;  %v6175_v6 = vpop.f32.mrb[38].mxu0 }
 0x1f8   : > { %v6176_v48 = vpop.f32.mrb[39].mxu0 }
 0x1f9   : > { %v3228_v14 = vadd.f32 %v6174_v52, %v8014_v23  ;;  %v6177_v17 = vadd.f32 %v6176_v48, %v6175_v6 }
 0x1fb   : > { %v8128_v30 = vadd.f32 %v8003_v41, %v3228_v14  ;;  %v3231_v44 = vadd.f32 %v6177_v17, %v8014_v23  ;;  %v3462_v41 = vsel %vm253_vm0, %v8082_v63, 0.0  ;;  %v3468_v14 = vsel %vm253_vm0, %v8094_v50, 0.0 }
 0x1fc   : > { %v3463_v32 = vadd.f32 %v3462_v41, %v3461_v47  ;;  %v3474_v47 = vsel %vm253_vm0, %v8112_v28, 0.0 }
 0x1fd   : > { %v8134_v56 = vadd.f32 %v8007_v40, %v3231_v44  ;;  %v3466_v40 = vsel %vm253_vm0, %v8090_v19, 0.0  ;;  %v3470_v44 = vsel %vm253_vm0, %v8098_v49, 0.0 }
 0x1fe   : > { %v3465_v52 = vadd.f32 %v3464_v42, %v3463_v32 }
 0x200   : > { %v3467_v22 = vadd.f32 %v3466_v40, %v3465_v52 }
 0x202   : > { %v3469_v8 = vadd.f32 %v3468_v14, %v3467_v22  ;;  %v3480_v14 = vsel %vm253_vm0, %v8134_v56, 0.0 }
 0x204   : > { %v3471_v35 = vadd.f32 %v3470_v44, %v3469_v8 }
 0x206   : > { %v3473_v42 = vadd.f32 %v3472_v38, %v3471_v35 }
 0x208   : > { %v6178_v37 = vpop.f32.mrb[40].mxu0 }
 0x209   : > { %v6179_v51 = vpop.f32.mrb[41].mxu0 }
 0x20a   : > { %v6180_v25 = vadd.f32 %v6179_v51, %v6178_v37  ;;  %v6181_v55 = vpop.f32.mrb[42].mxu0 }
 0x20b   : > { %v6182_v6 = vpop.f32.mrb[43].mxu0 }
 0x20c   : > { %v6183_v60 = vadd.f32 %v6182_v6, %v6181_v55  ;;  %v3236_v48 = vadd.f32 %v6180_v25, %v8014_v23  ;;  %v3475_v25 = vadd.f32 %v3474_v47, %v3473_v42  ;;  %v3478_v6 = vsel %vm253_vm0, %v8128_v30, 0.0 }
 0x20e   : > { %v8150_v17 = vadd.f32 %v8034_v59, %v3236_v48  ;;  %v3239_v61 = vadd.f32 %v6183_v60, %v8014_v23 }
 0x210   : > { %v8156_v26 = vadd.f32 %v8038_v9, %v3239_v61  ;;  %v3476_v9 = vsel %vm253_vm0, %v8116_v57, 0.0  ;;  %v3482_v8 = vsel %vm253_vm0, %v8150_v17, 0.0 }
 0x211   : > { %v3477_v48 = vadd.f32 %v3476_v9, %v3475_v25 }
 0x213   : > { %v3479_v22 = vadd.f32 %v3478_v6, %v3477_v48 }
 0x214   : > { %v6184_v43 = vpop.f32.mrb[44].mxu0 }
 0x215   : > { %v6185_v41 = vpop.f32.mrb[45].mxu0  ;;  %v3481_v38 = vadd.f32 %v3480_v14, %v3479_v22 }
 0x216   : > { %v6186_v59 = vadd.f32 %v6185_v41, %v6184_v43  ;;  %v6187_v32 = vpop.f32.mrb[46].mxu0 }
 0x217   : > { %v6188_v37 = vpop.f32.mrb[47].mxu0 }
 0x218   : > { %v3244_v51 = vadd.f32 %v6186_v59, %v8014_v23  ;;  %v6189_v40 = vadd.f32 %v6188_v37, %v6187_v32  ;;  %v3483_v59 = vadd.f32 %v3482_v8, %v3481_v38 }
 0x21a   : > { %v8166_v55 = vadd.f32 %v8032_v36, %v3244_v51  ;;  %v3247_v52 = vadd.f32 %v6189_v40, %v8014_v23 }
 0x21c   : > { %v8172_v60 = vadd.f32 %v8036_v10, %v3247_v52  ;;  %v3484_v10 = vsel %vm253_vm0, %v8156_v26, 0.0  ;;  %v3486_v37 = vsel %vm253_vm0, %v8166_v55, 0.0 }
 0x21d   : > { %v3485_v40 = vadd.f32 %v3484_v10, %v3483_v59 }
 0x21e   : > { %v3488_v9 = vsel %vm253_vm0, %v8172_v60, 0.0 }
 0x21f   : > { %v3487_v25 = vadd.f32 %v3486_v37, %v3485_v40 }
 0x220   : > { %v6190_v61 = vpop.f32.mrb[48].mxu0 }
 0x221   : > { %v6191_v44 = vpop.f32.mrb[49].mxu0  ;;  %v3489_v48 = vadd.f32 %v3488_v9, %v3487_v25 }
 0x222   : > { %v6192_v36 = vadd.f32 %v6191_v44, %v6190_v61  ;;  %v6193_v35 = vpop.f32.mrb[50].mxu0 }
 0x223   : > { %v6194_v43 = vpop.f32.mrb[51].mxu0 }
 0x224   : > { %v6195_v41 = vadd.f32 %v6194_v43, %v6193_v35  ;;  %v3252_v47 = vadd.f32 %v6192_v36, %v8014_v23 }
 0x226   : > { %v8182_v32 = vadd.f32 %v8058_v45, %v3252_v47  ;;  %v3255_v42 = vadd.f32 %v6195_v41, %v8014_v23 }
 0x228   : > { %v3416_v51 = vadd.f32 %v8062_v1, %v3255_v42  ;;  %v3490_v52 = vsel %vm253_vm0, %v8182_v32, 0.0 }
 0x229   : > { %v3491_v61 = vadd.f32 %v3490_v52, %v3489_v48 }
 0x22a   : > { %v3492_v8 = vsel %vm253_vm0, %v3416_v51, 0.0 }
 0x22b   : > { %v3493_v43 = vadd.f32 %v3492_v8, %v3491_v61 }
 0x22e   : > { %v6196_v6 = vpop.f32.mrb[52].mxu0 }
 0x22f   : > { %v6197_v22 = vpop.f32.mrb[53].mxu0 }
 0x230   : > { %v6198_v45 = vadd.f32 %v6197_v22, %v6196_v6  ;;  %v6199_v14 = vpop.f32.mrb[54].mxu0 }
 0x231   : > { %v6200_v44 = vpop.f32.mrb[55].mxu0 }
 0x232   : > { %v3260_v36 = vadd.f32 %v6198_v45, %v8014_v23  ;;  %v6201_v1 = vadd.f32 %v6200_v44, %v6199_v14 }
 0x234   : > { %v3421_v35 = vadd.f32 %v8056_v24, %v3260_v36  ;;  %v3263_v38 = vadd.f32 %v6201_v1, %v8014_v23 }
 0x236   : > { %v3494_v41 = vsel %vm253_vm0, %v3421_v35, 0.0  ;;  %v3424_v47 = vadd.f32 %v8060_v58, %v3263_v38 }
 0x237   : > { %v3495_v59 = vadd.f32 %v3494_v41, %v3493_v43 }
 0x238   : > { %v3496_v10 = vsel %vm253_vm0, %v3424_v47, 0.0 }
 0x239   : > { %v3497_v42 = vadd.f32 %v3496_v10, %v3495_v59 }
 0x23d   : > { %v6202_v37 = vpop.f32.mrb[56].mxu0 }
 0x23e   : > { %v6203_v40 = vpop.f32.mrb[57].mxu0 }
 0x23f   : > { %v6204_v25 = vadd.f32 %v6203_v40, %v6202_v37  ;;  %v6205_v9 = vpop.f32.mrb[58].mxu0 }
 0x240   : > { %v6206_v52 = vpop.f32.mrb[59].mxu0 }
 0x241   : > { %v6207_v6 = vadd.f32 %v6206_v52, %v6205_v9  ;;  %v3268_v48 = vadd.f32 %v6204_v25, %v8014_v23 }
 0x243   : > { %v3429_v24 = vadd.f32 %v8074_v0, %v3268_v48  ;;  %v3271_v22 = vadd.f32 %v6207_v6, %v8014_v23 }
 0x245   : > { %v3498_v45 = vsel %vm253_vm0, %v3429_v24, 0.0  ;;  %v3432_v58 = vadd.f32 %v8078_v39, %v3271_v22 }
 0x246   : > { %v3499_v14 = vadd.f32 %v3498_v45, %v3497_v42 }
 0x247   : > { %v3500_v61 = vsel %vm253_vm0, %v3432_v58, 0.0 }
 0x248   : > { %v3501_v44 = vadd.f32 %v3500_v61, %v3499_v14 }
 0x249   : > { %v6208_v8 = vpop.f32.mrb[60].mxu0 }
 0x24a   : > { %v6209_v36 = vpop.f32.mrb[61].mxu0 }
 0x24b   : > { %v6210_v1 = vadd.f32 %v6209_v36, %v6208_v8  ;;  %v6211_v38 = vpop.f32.mrb[62].mxu0 }
 0x24c   : > { %v6212_v43 = vpop.f32.mrb[63].mxu0 }
 0x24d   : > { %v3276_v41 = vadd.f32 %v6210_v1, %v8014_v23  ;;  %v6213_v59 = vadd.f32 %v6212_v43, %v6211_v38 }
 0x24f   : > { %v3437_v0 = vadd.f32 %v8072_v16, %v3276_v41  ;;  %v3279_v10 = vadd.f32 %v6213_v59, %v8014_v23 }
 0x251   : > { %v3502_v37 = vsel %vm253_vm0, %v3437_v0, 0.0  ;;  %v3440_v39 = vadd.f32 %v8076_v62, %v3279_v10 }
 0x252   : > { %v3503_v42 = vadd.f32 %v3502_v37, %v3501_v44 }
 0x253   : > { %v3504_v40 = vsel %vm253_vm0, %v3440_v39, 0.0 }
 0x254   : > { %v3505_v25 = vadd.f32 %v3504_v40, %v3503_v42 }
 0x256   : > { %v3506_v9 = vrot.slane %v3505_v25, 4 }
 0x258   : > { %v3507_v52 = vadd.f32 %v3506_v9, %v3505_v25 }
 0x25a   : > { %v3508_v6 = vrot.slane %v3507_v52, 2 }
 0x25c   : > { %v3509_v48 = vadd.f32 %v3508_v6, %v3507_v52 }
 0x25e   : > { %v3510_v22 = vrot.slane %v3509_v48, 1 }
 0x260   : > { %v3511_v45 = vadd.f32 %v3510_v22, %v3509_v48 }
 0x262   : > { %v8211_v14 = vmul.f32 0.00390625, %v3511_v45 }
 0x264   : > { %v8214_v16 = vsub.f32 %v3416_v51, %v8211_v14  ;;  %v8217_v23 = vsub.f32 %v3421_v35, %v8211_v14  ;;  %v8220_v62 = vsub.f32 %v3424_v47, %v8211_v14  ;;  %v8223_v61 = vsub.f32 %v3429_v24, %v8211_v14 }
 0x265   : > { %v8226_v44 = vsub.f32 %v3432_v58, %v8211_v14  ;;  %v8229_v8 = vsub.f32 %v3437_v0, %v8211_v14  ;;  %v8232_v36 = vsub.f32 %v3440_v39, %v8211_v14  ;;  %v8236_v51 = vsub.f32 %v8018_v18, %v8211_v14 }
 0x266   : > { %v8240_v35 = vsub.f32 %v8022_v13, %v8211_v14  ;;  %v8244_v47 = vsub.f32 %v8026_v34, %v8211_v14  ;;  %v8248_v24 = vsub.f32 %v8030_v21, %v8211_v14  ;;  %v8256_v18 = vsub.f32 %v8042_v27, %v8211_v14 }
 0x267   : > { %v3546_v58 = vmul.f32 %v8236_v51, %v8236_v51  ;;  %v8262_v34 = vsub.f32 %v8046_v53, %v8211_v14  ;;  %v8270_v59 = vsub.f32 %v8050_v33, %v8211_v14  ;;  %v8277_v53 = vsub.f32 %v8054_v15, %v8211_v14 }
 0x268   : > { %v3547_v1 = vmul.f32 %v8240_v35, %v8240_v35  ;;  %v3548_v13 = vmul.f32 %v8244_v47, %v8244_v47  ;;  %v3549_v21 = vmul.f32 %v8248_v24, %v8248_v24  ;;  %v3550_v27 = vmul.f32 %v8256_v18, %v8256_v18 }
 0x269   : > { %v3578_v38 = vsel %vm253_vm0, %v3546_v58, 0.0  ;;  %v3551_v37 = vmul.f32 %v8262_v34, %v8262_v34  ;;  %v8284_v33 = vsub.f32 %v8066_v31, %v8211_v14  ;;  %v3552_v40 = vmul.f32 %v8270_v59, %v8270_v59 }
 0x26a   : > { %v3579_v43 = vsel %vm253_vm0, %v3547_v1, 0.0  ;;  %v3581_v0 = vsel %vm253_vm0, %v3548_v13, 0.0  ;;  %v3583_v39 = vsel %vm253_vm0, %v3549_v21, 0.0  ;;  %v3585_v25 = vsel %vm253_vm0, %v3550_v27, 0.0 }
 0x26b   : > { %v3580_v41 = vadd.f32 %v3579_v43, %v3578_v38  ;;  %v8291_v15 = vsub.f32 %v8070_v54, %v8211_v14  ;;  %v3553_v52 = vmul.f32 %v8277_v53, %v8277_v53  ;;  %v3587_v6 = vsel %vm253_vm0, %v3551_v37, 0.0 }
 0x26c   : > { %v8298_v31 = vsub.f32 %v8082_v63, %v8211_v14  ;;  %v3554_v22 = vmul.f32 %v8284_v33, %v8284_v33  ;;  %v3589_v45 = vsel %vm253_vm0, %v3552_v40, 0.0  ;;  %v8305_v54 = vsub.f32 %v8086_v12, %v8211_v14  ;;  %v6490_v12 = vld [vmem:[%s9216_s3 + $0x4] ss:$8 sps:$4 sm:$0xff]  }
 0x26d   : > { %v3582_v10 = vadd.f32 %v3581_v0, %v3580_v41  ;;  %v3555_v1 = vmul.f32 %v8291_v15, %v8291_v15  ;;  %v3591_v13 = vsel %vm253_vm0, %v3553_v52, 0.0  ;;  %v8312_v63 = vsub.f32 %v8090_v19, %v8211_v14  ;;  %3884 = vmatprep.mubr.bf16.mxu1 %v6490_v12 }
 0x26e   : > { %v3556_v38 = vmul.f32 %v8298_v31, %v8298_v31  ;;  %v3593_v43 = vsel %vm253_vm0, %v3554_v22, 0.0  ;;  %v8322_v27 = vsub.f32 %v8094_v50, %v8211_v14  ;;  %v3557_v0 = vmul.f32 %v8305_v54, %v8305_v54 }
 0x26f   : > { %v3584_v42 = vadd.f32 %v3583_v39, %v3582_v10  ;;  %v3595_v19 = vsel %vm253_vm0, %v3555_v1, 0.0  ;;  %v8329_v37 = vsub.f32 %v8098_v49, %v8211_v14  ;;  %v3558_v39 = vmul.f32 %v8312_v63, %v8312_v63 }
 0x270   : > { %v8336_v50 = vsub.f32 %v8102_v20, %v8211_v14  ;;  %v8343_v49 = vsub.f32 %v8112_v28, %v8211_v14  ;;  %v8350_v20 = vsub.f32 %v8116_v57, %v8211_v14  ;;  %v8357_v28 = vsub.f32 %v8128_v30, %v8211_v14 }
 0x271   : > { %v3586_v9 = vadd.f32 %v3585_v25, %v3584_v42  ;;  %v3597_v42 = vsel %vm253_vm0, %v3556_v38, 0.0  ;;  %v3559_v25 = vmul.f32 %v8322_v27, %v8322_v27  ;;  %v8364_v57 = vsub.f32 %v8134_v56, %v8211_v14 }
 0x272   : > { %v8371_v30 = vsub.f32 %v8150_v17, %v8211_v14  ;;  %v8378_v56 = vsub.f32 %v8156_v26, %v8211_v14  ;;  %v3536_v17 = vsub.f32 %v8166_v55, %v8211_v14 }
 0x273   : > { %v3588_v48 = vadd.f32 %v3587_v6, %v3586_v9  ;;  %v3599_v9 = vsel %vm253_vm0, %v3557_v0, 0.0  ;;  %v3560_v6 = vmul.f32 %v8329_v37, %v8329_v37  ;;  %v3564_v0 = vmul.f32 %v8357_v28, %v8357_v28 }
 0x274   : > { %v3567_v26 = vmul.f32 %v8378_v56, %v8378_v56 }
 0x275   : > { %v3590_v58 = vadd.f32 %v3589_v45, %v3588_v48  ;;  %v3601_v48 = vsel %vm253_vm0, %v3558_v39, 0.0  ;;  %v3561_v45 = vmul.f32 %v8336_v50, %v8336_v50  ;;  %v3565_v39 = vmul.f32 %v8364_v57, %v8364_v57 }
 0x277   : > { %v3592_v21 = vadd.f32 %v3591_v13, %v3590_v58  ;;  %v3603_v58 = vsel %vm253_vm0, %v3559_v25, 0.0  ;;  %v3562_v13 = vmul.f32 %v8343_v49, %v8343_v49  ;;  %v3607_v12 = vsel %vm253_vm0, %v3561_v45, 0.0 }
 0x278   : > { %v3566_v25 = vmul.f32 %v8371_v30, %v8371_v30  ;;  %v3538_v45 = vsub.f32 %v8182_v32, %v8211_v14  ;;  %v3572_v32 = vmul.f32 %v8217_v23, %v8217_v23 }
 0x279   : > { %v3594_v41 = vadd.f32 %v3593_v43, %v3592_v21  ;;  %v3605_v21 = vsel %vm253_vm0, %v3560_v6, 0.0  ;;  %v3563_v43 = vmul.f32 %v8350_v20, %v8350_v20  ;;  %v3537_v6 = vsub.f32 %v8172_v60, %v8211_v14 }
 0x27a   : > { %v3617_v55 = vsel %vm253_vm0, %v3566_v25, 0.0  ;;  %v3574_v25 = vmul.f32 %v8223_v61, %v8223_v61 }
 0x27b   : > { %v3596_v10 = vadd.f32 %v3595_v19, %v3594_v41  ;;  %v3609_v19 = vsel %vm253_vm0, %v3562_v13, 0.0  ;;  %v3569_v13 = vmul.f32 %v3537_v6, %v3537_v6 }
 0x27d   : > { %v3598_v40 = vadd.f32 %v3597_v42, %v3596_v10  ;;  %v3611_v42 = vsel %vm253_vm0, %v3563_v43, 0.0  ;;  %v3570_v43 = vmul.f32 %v3538_v45, %v3538_v45 }
 0x27f   : > { %v3600_v52 = vadd.f32 %v3599_v9, %v3598_v40  ;;  %v3613_v9 = vsel %vm253_vm0, %v3564_v0, 0.0  ;;  %v3623_v0 = vsel %vm253_vm0, %v3569_v13, 0.0  ;;  %v3625_v14 = vsel %vm253_vm0, %v3570_v43, 0.0 }
 0x280   : > { %v3577_v13 = vmul.f32 %v8232_v36, %v8232_v36 }
 0x281   : > { %v3602_v22 = vadd.f32 %v3601_v48, %v3600_v52  ;;  %v3615_v48 = vsel %vm253_vm0, %v3565_v39, 0.0  ;;  %v3573_v39 = vmul.f32 %v8220_v62, %v8220_v62 }
 0x283   : > { %v3604_v1 = vadd.f32 %v3603_v58, %v3602_v22  ;;  %v3568_v58 = vmul.f32 %v3536_v17, %v3536_v17 }
 0x285   : > { %v3606_v38 = vadd.f32 %v3605_v21, %v3604_v1  ;;  %v3619_v21 = vsel %vm253_vm0, %v3567_v26, 0.0  ;;  %v3621_v60 = vsel %vm253_vm0, %v3568_v58, 0.0  ;;  %v3575_v26 = vmul.f32 %v8226_v44, %v8226_v44 }
 0x286   : > { %v3576_v58 = vmul.f32 %v8229_v8, %v8229_v8 }
 0x287   : > { %v3608_v41 = vadd.f32 %v3607_v12, %v3606_v38 }
 0x288   : > { %v3637_v43 = vsel %vm253_vm0, %v3576_v58, 0.0 }
 0x289   : > { %v3610_v10 = vadd.f32 %v3609_v19, %v3608_v41  ;;  %v3571_v41 = vmul.f32 %v8214_v16, %v8214_v16 }
 0x28b   : > { %v3612_v40 = vadd.f32 %v3611_v42, %v3610_v10  ;;  %v3627_v42 = vsel %vm253_vm0, %v3571_v41, 0.0 }
 0x28d   : > { %v3614_v52 = vadd.f32 %v3613_v9, %v3612_v40  ;;  %v3629_v9 = vsel %vm253_vm0, %v3572_v32, 0.0 }
 0x28f   : > { %v3616_v22 = vadd.f32 %v3615_v48, %v3614_v52  ;;  %v3631_v48 = vsel %vm253_vm0, %v3573_v39, 0.0 }
 0x291   : > { %v3618_v1 = vadd.f32 %v3617_v55, %v3616_v22  ;;  %v3633_v55 = vsel %vm253_vm0, %v3574_v25, 0.0 }
 0x293   : > { %v3620_v38 = vadd.f32 %v3619_v21, %v3618_v1  ;;  %v3635_v21 = vsel %vm253_vm0, %v3575_v26, 0.0 }
 0x295   : > { %v3622_v12 = vadd.f32 %v3621_v60, %v3620_v38 }
 0x297   : > { %v3624_v19 = vadd.f32 %v3623_v0, %v3622_v12  ;;  %v3639_v12 = vsel %vm253_vm0, %v3577_v13, 0.0 }
 0x299   : > { %v3626_v10 = vadd.f32 %v3625_v14, %v3624_v19 }
 0x29b   : > { %v3628_v40 = vadd.f32 %v3627_v42, %v3626_v10 }
 0x29d   : > { %v3630_v52 = vadd.f32 %v3629_v9, %v3628_v40 }
 0x29f   : > { %v3632_v22 = vadd.f32 %v3631_v48, %v3630_v52 }
 0x2a1   : > { %v3634_v1 = vadd.f32 %v3633_v55, %v3632_v22 }
 0x2a3   : > { %v3636_v38 = vadd.f32 %v3635_v21, %v3634_v1 }
 0x2a5   : > { %v3638_v60 = vadd.f32 %v3637_v43, %v3636_v38 }
 0x2a7   : > { %v3640_v41 = vadd.f32 %v3639_v12, %v3638_v60 }
 0x2a9   : > { %v3641_v0 = vrot.slane %v3640_v41, 4 }
 0x2ab   : > { %v3642_v19 = vadd.f32 %v3641_v0, %v3640_v41 }
 0x2ad   : > { %v3643_v32 = vrot.slane %v3642_v19, 2 }
 0x2af   : > { %v3644_v14 = vadd.f32 %v3643_v32, %v3642_v19 }
 0x2b1   : > { %v3645_v10 = vrot.slane %v3644_v14, 1 }
 0x2b3   : > { %v3646_v39 = vadd.f32 %v3645_v10, %v3644_v14 }
 0x2b5   : > { %v3647_v42 = vmul.f32 0.00390625, %v3646_v39 }
 0x2b7   : > { %v3648_v40 = vadd.f32 1e-05, %v3647_v42 }
 0x2b9   : > { %6539 = vrsqrt.f32 %v3648_v40 }
 0x2c3   : > { %v6540_v25 = vpop.eup %6539 }
 0x2c4   : > { %v8422_v9 = vmul.f32 %v6540_v25, %v8232_v36  ;;  %v3650_v52 = vmul.f32 %v6540_v25, %v8236_v51  ;;  %v3651_v26 = vmul.f32 %v6540_v25, %v8240_v35  ;;  %v3666_v48 = vmul.f32 %v6540_v25, %v8343_v49  ;;  %v8443_v49 = vld [vmem:[%s9215_s2 + $0x1] ss:$0 sm:$0xff] }
 0x2c5   : > { %v3667_v22 = vmul.f32 %v6540_v25, %v8350_v20  ;;  %v3668_v58 = vmul.f32 %v6540_v25, %v8357_v28  ;;  %v3669_v55 = vmul.f32 %v6540_v25, %v8364_v57  ;;  %v3670_v1 = vmul.f32 %v6540_v25, %v8371_v30 }
 0x2c6   : > { %v3671_v13 = vmul.f32 %v6540_v25, %v8378_v56  ;;  %v8432_v21 = vmul.f32 %v6540_v25, %v3536_v17  ;;  %v8434_v36 = vmul.f32 %v6540_v25, %v3537_v6  ;;  %v3674_v38 = vmul.f32 %v6540_v25, %v3538_v45 }
 0x2c7   : > { %v3675_v51 = vmul.f32 %v6540_v25, %v8214_v16  ;;  %v8438_v35 = vmul.f32 %v6540_v25, %v8217_v23  ;;  %v8446_v20 = vmul.f32 %v6540_v25, %v8220_v62  ;;  %v3678_v28 = vmul.f32 %v6540_v25, %v8223_v61 }
 0x2c8   : > { %v3679_v57 = vmul.f32 %v6540_v25, %v8226_v44  ;;  %v8451_v30 = vmul.f32 %v6540_v25, %v8229_v8  ;;  %v3652_v16 = vmul.f32 %v6540_v25, %v8244_v47  ;;  %v3653_v23 = vmul.f32 %v6540_v25, %v8248_v24  ;;  %v8467_v24 = vld [vmem:[%s9215_s2 + $0x2] ss:$0 sm:$0xff] }
 0x2c9   : > { %v3654_v56 = vmul.f32 %v6540_v25, %v8256_v18  ;;  %v3655_v17 = vmul.f32 %v6540_v25, %v8262_v34  ;;  %v3656_v6 = vmul.f32 %v6540_v25, %v8270_v59  ;;  %v3657_v62 = vmul.f32 %v6540_v25, %v8277_v53 }
 0x2ca   : > { %v3658_v45 = vmul.f32 %v6540_v25, %v8284_v33  ;;  %v3659_v61 = vmul.f32 %v6540_v25, %v8291_v15  ;;  %v3660_v44 = vmul.f32 %v6540_v25, %v8298_v31  ;;  %v3687_v8 = vmul.f32 %v8443_v49, %v3650_v52 }
 0x2cb   : > { %v3688_v47 = vmul.f32 %v8443_v49, %v3651_v26  ;;  %v3661_v18 = vmul.f32 %v6540_v25, %v8305_v54  ;;  %v8471_v34 = vmul.f32 %v6540_v25, %v8312_v63  ;;  %v8474_v59 = vmul.f32 %v6540_v25, %v8322_v27 }
 0x2cc   : > { %v8477_v53 = vmul.f32 %v6540_v25, %v8329_v37  ;;  %v8480_v33 = vmul.f32 %v6540_v25, %v8336_v50  ;;  %v3689_v15 = vmul.f32 %v8443_v49, %v3652_v16  ;;  %v3703_v31 = vmul.f32 %v8443_v49, %v3666_v48 }
 0x2cd   : > { %v3704_v43 = vmul.f32 %v8443_v49, %v3667_v22  ;;  %v3690_v54 = vmul.f32 %v8443_v49, %v3653_v23  ;;  %v3691_v63 = vmul.f32 %v8443_v49, %v3654_v56  ;;  %v3692_v60 = vmul.f32 %v8443_v49, %v3655_v17 }
 0x2ce   : > { %v3693_v27 = vmul.f32 %v8443_v49, %v3656_v6  ;;  %v3694_v37 = vmul.f32 %v8443_v49, %v3657_v62  ;;  %v3695_v12 = vmul.f32 %v8443_v49, %v3658_v45  ;;  %v3724_v50 = vadd.f32 %v8467_v24, %v3687_v8 }
 0x2cf   : > { %v3725_v41 = vadd.f32 %v8467_v24, %v3688_v47  ;;  %v3696_v0 = vmul.f32 %v8443_v49, %v3659_v61  ;;  %v8495_v19 = vmul.f32 %v8443_v49, %v3660_v44  ;;  %v3707_v32 = vmul.f32 %v8443_v49, %v3670_v1 }
 0x2d0   : > { %v3708_v14 = vmul.f32 %v8443_v49, %v3671_v13  ;;  %v3740_v10 = vadd.f32 %v8467_v24, %v3703_v31  ;;  %v3741_v39 = vadd.f32 %v8467_v24, %v3704_v43  ;;  %v3756_v42 = vmax.f32 %v3724_v50, 0.0 }
 0x2d1   : > { %v3757_v40 = vmax.f32 %v3725_v41, 0.0  ;;  %v8502_v25 = vmul.f32 %v8443_v49, %v3661_v18  ;;  %v3711_v52 = vmul.f32 %v8443_v49, %v3674_v38  ;;  %v3712_v26 = vmul.f32 %v8443_v49, %v3675_v51 }
 0x2d2   : > { %v3715_v48 = vmul.f32 %v8443_v49, %v3678_v28  ;;  %v3716_v22 = vmul.f32 %v8443_v49, %v3679_v57  ;;  %v3728_v1 = vadd.f32 %v8467_v24, %v3691_v63  ;;  %v3772_v13 = vmax.f32 %v3740_v10, 0.0 }
 0x2d3   : > { %v3773_v16 = vmax.f32 %v3741_v39, 0.0  ;;  %v3796_v23 = vpack.c.bf16 %v3757_v40, %v3756_v42  ;;  %v3705_v56 = vmul.f32 %v8443_v49, %v3668_v58  ;;  %v3706_v17 = vmul.f32 %v8443_v49, %v3669_v55 }
 0x2d4   : > { %v3726_v6 = vadd.f32 %v8467_v24, %v3689_v15  ;;  %v3727_v38 = vadd.f32 %v8467_v24, %v3690_v54  ;;  %v3744_v51 = vadd.f32 %v8467_v24, %v3707_v32  ;;  %v3745_v28 = vadd.f32 %v8467_v24, %v3708_v14 }
 0x2d5   : > { %v3804_v62 = vpack.c.bf16 %v3773_v16, %v3772_v13  ;;  %v3729_v57 = vadd.f32 %v8467_v24, %v3692_v60  ;;  %v3742_v45 = vadd.f32 %v8467_v24, %v3705_v56  ;;  %v3743_v61 = vadd.f32 %v8467_v24, %v3706_v17 }
 0x2d6   : > { %v3758_v44 = vmax.f32 %v3726_v6, 0.0  ;;  %v3759_v58 = vmax.f32 %v3727_v38, 0.0  ;;  %v3776_v8 = vmax.f32 %v3744_v51, 0.0  ;;  %v3777_v55 = vmax.f32 %v3745_v28, 0.0 }
 0x2d7   : > { %6232 = vmatprep.subr.bf16.mxu1 %v3804_v62  ;;  %v3709_v47 = vmul.f32 %v8443_v49, %v8432_v21  ;;  %v8521_v18 = vadd.f32 %v8467_v24, %v3695_v12  ;;  %v3774_v15 = vmax.f32 %v3742_v45, 0.0  ;;  %v3775_v31 = vmax.f32 %v3743_v61, 0.0 }
 0x2d8   : > { %6233 = vmatpush3.bf16.msra.mxu1 %v3796_v23  ;;  %v3710_v43 = vmul.f32 %v8443_v49, %v8434_v36  ;;  %v3806_v54 = vpack.c.bf16 %v3777_v55, %v3776_v8  ;;  %v3730_v60 = vadd.f32 %v8467_v24, %v3693_v27  ;;  %v3731_v50 = vadd.f32 %v8467_v24, %v3694_v37 }
 0x2d9   : > { %v3746_v63 = vadd.f32 %v8467_v24, %v3709_v47  ;;  %v3760_v41 = vmax.f32 %v3728_v1, 0.0  ;;  %v3805_v32 = vpack.c.bf16 %v3775_v31, %v3774_v15  ;;  %v3748_v12 = vadd.f32 %v8467_v24, %v3711_v52 }
 0x2da   : > { %v3747_v21 = vadd.f32 %v8467_v24, %v3710_v43  ;;  %v3761_v14 = vmax.f32 %v3729_v57, 0.0  ;;  %v3797_v10 = vpack.c.bf16 %v3759_v58, %v3758_v44  ;;  %v3749_v42 = vadd.f32 %v8467_v24, %v3712_v26 }
 0x2db   : > { %v3778_v39 = vmax.f32 %v3746_v63, 0.0  ;;  %6234 = vmatprep.subr.bf16.mxu1 %v3805_v32  ;;  %v3780_v40 = vmax.f32 %v3748_v12, 0.0  ;;  %v3713_v13 = vmul.f32 %v8443_v49, %v8438_v35  ;;  %v3714_v27 = vmul.f32 %v8443_v49, %v8446_v20 }
 0x2dc   : > { %v3779_v36 = vmax.f32 %v3747_v21, 0.0  ;;  %v3733_v37 = vadd.f32 %v8467_v24, %v3696_v0  ;;  %6235 = vmatpush3.bf16.msra.mxu1 %v3797_v10  ;;  %v3762_v1 = vmax.f32 %v3730_v60, 0.0  ;;  %v3763_v16 = vmax.f32 %v3731_v50, 0.0  ;;  %v6491_v10 = vld [vmem:[%s9216_s3 + $0x14] ss:$8 sps:$4 sm:$0xff]  }
 0x2dd   : > { %v3781_v52 = vmax.f32 %v3749_v42, 0.0  ;;  %6236 = vmatprep.subr.bf16.mxu1 %v3806_v54  ;;  %v3750_v56 = vadd.f32 %v8467_v24, %v3713_v13  ;;  %v3751_v26 = vadd.f32 %v8467_v24, %v3714_v27  ;;  %v3752_v17 = vadd.f32 %v8467_v24, %v3715_v48  ;;  %v6496_v42 = vld [vmem:[%s9216_s3 + $0x20] ss:$8 sps:$4 sm:$0xff]  }
 0x2de   : > { %v3807_v23 = vpack.c.bf16 %v3779_v36, %v3778_v39  ;;  %v3699_v35 = vmul.f32 %v8443_v49, %v8471_v34  ;;  %v3798_v6 = vpack.c.bf16 %v3761_v14, %v3760_v41  ;;  %v3753_v20 = vadd.f32 %v8467_v24, %v3716_v22  ;;  %v6488_v14 = vld [vmem:[%s9216_s3] ss:$8 sps:$4 sm:$0xff]   ;;  %v6494_v39 = vld [vmem:[%s9216_s3 + $0x24] ss:$8 sps:$4 sm:$0xff]   ;;  %v6497_v36 = vld [vmem:[%s9216_s3 + $0x34] ss:$8 sps:$4 sm:$0xff]  }
 0x2df   : > { %v3808_v62 = vpack.c.bf16 %v3781_v52, %v3780_v40  ;;  %v3700_v0 = vmul.f32 %v8443_v49, %v8474_v59  ;;  %v3782_v38 = vmax.f32 %v3750_v56, 0.0  ;;  %v3783_v51 = vmax.f32 %v3751_v26, 0.0  ;;  %v6499_v40 = vld [vmem:[%s9216_s3 + $0x30] ss:$8 sps:$4 sm:$0xff]  }
 0x2e0   : > { %v3784_v28 = vmax.f32 %v3752_v17, 0.0  ;;  %v3764_v57 = vmax.f32 %v8521_v18, 0.0  ;;  %6237 = vmatpush3.bf16.msra.mxu1 %v3798_v6  ;;  %v3785_v45 = vmax.f32 %v3753_v20, 0.0  ;;  %v3717_v48 = vmul.f32 %v8443_v49, %v8451_v30 }
 0x2e1   : > { %v3718_v34 = vmul.f32 %v8443_v49, %v8422_v9  ;;  %v3765_v61 = vmax.f32 %v3733_v37, 0.0  ;;  %6238 = vmatprep.subr.bf16.mxu1 %v3807_v23  ;;  %v3799_v44 = vpack.c.bf16 %v3763_v16, %v3762_v1  ;;  %v3809_v22 = vpack.c.bf16 %v3783_v51, %v3782_v38 }
 0x2e2   : > { %v3734_v59 = vadd.f32 %v8467_v24, %v8495_v19  ;;  %v3735_v58 = vadd.f32 %v8467_v24, %v8502_v25  ;;  %v3810_v8 = vpack.c.bf16 %v3785_v45, %v3784_v28  ;;  %v3754_v55 = vadd.f32 %v8467_v24, %v3717_v48 }
 0x2e3   : > { %v3755_v47 = vadd.f32 %v8467_v24, %v3718_v34  ;;  %v3701_v9 = vmul.f32 %v8443_v49, %v8477_v53  ;;  %v3702_v15 = vmul.f32 %v8443_v49, %v8480_v33  ;;  %v3736_v31 = vadd.f32 %v8467_v24, %v3699_v35 }
 0x2e4   : > { %6239 = vmatpush3.bf16.msra.mxu1 %v3799_v44  ;;  %v3786_v30 = vmax.f32 %v3754_v55, 0.0  ;;  %v3737_v19 = vadd.f32 %v8467_v24, %v3700_v0  ;;  %v3800_v25 = vpack.c.bf16 %v3765_v61, %v3764_v57  ;;  %v3766_v43 = vmax.f32 %v3734_v59, 0.0 }
 0x2e5   : > { %v3787_v18 = vmax.f32 %v3755_v47, 0.0  ;;  %6240 = vmatprep.subr.bf16.mxu1 %v3808_v62  ;;  %v3767_v54 = vmax.f32 %v3735_v58, 0.0  ;;  %v3768_v60 = vmax.f32 %v3736_v31, 0.0  ;;  %v3738_v32 = vadd.f32 %v8467_v24, %v3701_v9 }
 0x2e6   : > { %v3769_v50 = vmax.f32 %v3737_v19, 0.0  ;;  %v3739_v53 = vadd.f32 %v8467_v24, %v3702_v15  ;;  %v6493_v24 = vld [vmem:[%s9216_s3 + $0x10] ss:$8 sps:$4 sm:$0xff]   ;;  %v3951_v13 = vand.u32 7, %v6624_v4  ;;  %v3944_v27 = vand.u32 7, %v6627_v5 }
 0x2e7   : > { %v3811_v63 = vpack.c.bf16 %v3787_v18, %v3786_v30  ;;  %v3801_v41 = vpack.c.bf16 %v3767_v54, %v3766_v43  ;;  %v3770_v33 = vmax.f32 %v3738_v32, 0.0  ;;  %v3958_v52 = vand.u32 7, %v6642_v11 }
 0x2e8   : > { %6241 = vmatpush3.bf16.msra.mxu1 %v3800_v25  ;;  %v3802_v49 = vpack.c.bf16 %v3769_v50, %v3768_v60  ;;  %v3771_v21 = vmax.f32 %v3739_v53, 0.0  ;;  %vm4052_vm14 = vcmp.lt.s32.totalorder %v3944_v27, 7  ;;  %vm4053_vm1 = vcmp.lt.s32.totalorder %v3951_v13, 7 }
 0x2e9   : > { %6242 = vmatprep.subr.bf16.mxu1 %v3809_v22  ;;  %v5965_v37 = vsel %vm4052_vm14, 1.0, %v9235_v3  ;;  %v5966_v1 = vsel %vm4053_vm1, 1.0, %v9235_v3  ;;  %vm4024_vm2 = vcmp.gt.s32.totalorder %v3944_v27, 0  ;;  %vm4025_vm3 = vcmp.gt.s32.totalorder %v3951_v13, 0 }
 0x2ea   : > { %v3803_v12 = vpack.c.bf16 %v3771_v21, %v3770_v33  ;;  %v8588_v16 = vpack.c.bf16 %v5966_v1, %v5965_v37  ;;  %v5957_v23 = vsel %vm4024_vm2, 1.0, %v9235_v3  ;;  %v3965_v56 = vand.u32 7, %v6631_v7 }
 0x2eb   : > { %v5958_v4 = vsel %vm4025_vm3, 1.0, %v9235_v3  ;;  %vm4054_vm5 = vcmp.lt.s32.totalorder %v3958_v52, 7  ;;  %v3972_v0 = vand.u32 7, %v6685_v46  ;;  %v3979_v28 = vand.u32 7, %v6669_v29 }
 0x2ec   : > { %6243 = vmatpush3.bf16.msra.mxu1 %v3801_v41  ;;  %v4232_v5 = vshrl.u32 %v8588_v16, 16  ;;  %v4235_v26 = vshll.u32 %v8588_v16, 16  ;;  %v4047_v17 = vpack.c.bf16 %v5958_v4, %v5957_v23  ;;  %vm4055_vm7 = vcmp.lt.s32.totalorder %v3965_v56, 7 }
 0x2ed   : > { %6244 = vmatprep.subr.bf16.mxu1 %v3810_v8  ;;  %v5967_v11 = vsel %vm4054_vm5, 1.0, %v9235_v3  ;;  %v5968_v51 = vsel %vm4055_vm7, 1.0, %v9235_v3  ;;  %vm4026_vm9 = vcmp.gt.s32.totalorder %v3958_v52, 0  ;;  %vm4027_vm10 = vcmp.gt.s32.totalorder %v3965_v56, 0 }
 0x2ee   : > { %v4096_v35 = vshll.u32 %v4047_v17, 16  ;;  %v4093_v6 = vshrl.u32 %v4047_v17, 16  ;;  %v4234_v62 = vrot.slane %v4232_v5, 3  ;;  %v4237_v20 = vrot.slane %v4235_v26, 4 }
 0x2ef   : > { %v4076_v57 = vpack.c.bf16 %v5968_v51, %v5967_v11  ;;  %v5959_v34 = vsel %vm4026_vm9, 1.0, %v9235_v3  ;;  %v8607_v61 = vrot.slane %v4232_v5, 7  ;;  %v5960_v22 = vsel %vm4027_vm10, 1.0, %v9235_v3 }
 0x2f0   : > { %6245 = vmatpush3.bf16.msra.mxu1 %v3802_v49  ;;  %v4095_v7 = vrot.slane %v4093_v6, 4  ;;  %v4098_v38 = vrot.slane %v4096_v35, 5  ;;  %v8602_v45 = vor.u32 %v4237_v20, %v4234_v62  ;;  %v8604_v48 = vrot.slane %v4096_v35, 1  ;;  %v6500_v35 = vld [vmem:[%s9214_s1 + $0xd0] sm:$0xff]   ;;  %v6502_v62 = vld [vmem:[%s9214_s1 + $0xd8] sm:$0xff]  }
 0x2f1   : > { %6246 = vmatprep.subr.bf16.mxu1 %v3811_v63  ;;  %v4241_v44 = vshrl.u32 %v4076_v57, 16  ;;  %v4244_v46 = vshll.u32 %v4076_v57, 16  ;;  %v4048_v58 = vpack.c.bf16 %v5960_v22, %v5959_v34  ;;  %vm4056_vm12 = vcmp.lt.s32.totalorder %v3972_v0, 7  ;;  %v6503_v20 = vld [vmem:[%s9214_s1 + $0x98] sm:$0xff]  }
 0x2f2   : > { %v8610_v59 = vor.u32 %v4098_v38, %v4095_v7  ;;  %v4337_v29 = vor.u32 %v8604_v48, %v4093_v6  ;;  %vm4057_vm14 = vcmp.lt.s32.totalorder %v3979_v28, 7  ;;  %v5969_v9 = vsel %vm4056_vm12, 1.0, %v9235_v3  ;;  %v6501_v6 = vld [vmem:[%s9214_s1 + $0x90] sm:$0xff]  }
 0x2f3   : > { %v4243_v8 = vrot.slane %v4241_v44, 3  ;;  %v4246_v55 = vrot.slane %v4244_v46, 4  ;;  %v4424_v47 = vrot.slane %v4241_v44, 7  ;;  %v4105_v30 = vshll.u32 %v4048_v58, 16 }
 0x2f4   : > { %6247 = vmatpush3.bf16.msra.mxu1 %v3803_v12  ;;  %v4102_v18 = vshrl.u32 %v4048_v58, 16  ;;  %v5970_v15 = vsel %vm4057_vm14, 1.0, %v9235_v3  ;;  %vm4028_vm1 = vcmp.gt.s32.totalorder %v3972_v0, 0  ;;  %vm4029_vm2 = vcmp.gt.s32.totalorder %v3979_v28, 0  ;;  %v9245_v0 = vld [vmem:[#allocation4_spill] sm:$0xff] }
 0x2f5   : > { %v4247_v31 = vor.u32 %v4246_v55, %v4243_v8  ;;  %v4425_v19 = vor.u32 %v4424_v47, %v4244_v46  ;;  %v4077_v25 = vpack.c.bf16 %v5970_v15, %v5969_v9  ;;  %v4338_v43 = vrot.slane %v4105_v30, 1  ;;  %6272 = vmatprep.subr.bf16.mxu1 %v6500_v35  ;;  %v4218_v9 = vld [vmem:[#allocation2 + $0x8] sm:$0xf0] }
 0x2f6   : > { %v4104_v54 = vrot.slane %v4102_v18, 4  ;;  %v4107_v63 = vrot.slane %v4105_v30, 5  ;;  %v5961_v33 = vsel %vm4028_vm1, 1.0, %v9235_v3  ;;  %v5962_v21 = vsel %vm4029_vm2, 1.0, %v9235_v3 }
 0x2f7   : > { %3885 = vmatmul.mubr.bf16.vlgmr.msra.gmra.mrb[32].mxu1 %v6488_v14  ;;  %v8617_v60 = vsel %vm4129_vm8, %v8602_v45, %v4247_v31  ;;  %v8621_v50 = vsel %vm1222_vm6, %v8607_v61, %v4425_v19  ;;  %v4250_v41 = vshrl.u32 %v4077_v25, 16  ;;  %v4253_v32 = vshll.u32 %v4077_v25, 16  ;;  %v4078_v19 = vld [vmem:[#allocation2 + $0x8] sm:$0xf8] }
 0x2f8   : > { %3892 = vmatprep.mubr.bf16.mxu1 %v6491_v10  ;;  %v8624_v53 = vsel %vm1060_vm4, %v4337_v29, %v4338_v43  ;;  %v4108_v49 = vor.u32 %v4107_v63, %v4104_v54  ;;  %vm4083_vm3 = vsmask.f32 3328  ;;  %v8628_v10 = vpack.c.bf16 %v5962_v21, %v5961_v33  ;;  %6273 = vmatpush3.bf16.msra.mxu1 %v6501_v6 }
 0x2f9   : > { %v4252_v12 = vrot.slane %v4250_v41, 3  ;;  %v4255_v14 = vrot.slane %v4253_v32, 4  ;;  %v8642_v27 = vrot.slane %v4250_v41, 7  ;;  %6274 = vmatprep.subr.bf16.mxu1 %v6502_v62  ;;  %v3930_v11 = vand.u32 7, %v6618_v2  ;;  %v6504_v62 = vld [vmem:[%s9214_s1 + $0xe0] sm:$0xff]  }
 0x2fa   : > { %v3937_v7 = vand.u32 7, %v9245_v0  ;;  %vm4192_vm12 = vcmask 1043456   ;;  %vm5079_vm14 = vcmask 523264  }
 0x2fb   : > { %v4428_v23 = vor.u32 %v8642_v27, %v4253_v32  ;;  %vm4050_vm5 = vcmp.lt.s32.totalorder %v3930_v11, 7  ;;  %vm4022_vm9 = vcmp.gt.s32.totalorder %v3930_v11, 0  ;;  %v4496_v32 = vld [vmem:[#allocation2 + $0x30] sm:$0xf] }
 0x2fc   : > { %6275 = vmatpush3.bf16.msra.mxu1 %v6503_v20  ;;  %vm4051_vm7 = vcmp.lt.s32.totalorder %v3937_v7, 7  ;;  %vm4023_vm10 = vcmp.gt.s32.totalorder %v3937_v7, 0  ;;  %v5963_v38 = vsel %vm4050_vm5, 1.0, %v9235_v3  ;;  %v5955_v28 = vsel %vm4022_vm9, 1.0, %v9235_v3  ;;  %v6505_v20 = vld [vmem:[%s9214_s1 + $0xa0] sm:$0xff]  }
 0x2fd   : > { %v8656_v5 = vsel %vm1222_vm6, %v4424_v47, %v4428_v23  ;;  %v5964_v51 = vsel %vm4051_vm7, 1.0, %v9235_v3  ;;  %v5956_v57 = vsel %vm4023_vm10, 1.0, %v9235_v3  ;;  %v8692_v23 = vld [vmem:[#allocation2 + $0x8] sm:$0xf0]  ;;  %6276 = vmatprep.subr.bf16.mxu1 %v6504_v62  ;;  %vm5345_vm7 = vsmask.f32 5376 }
 0x2fe   : > { %v8680_v34 = vpack.c.bf16 %v5964_v51, %v5963_v38  ;;  %v4046_v44 = vpack.c.bf16 %v5956_v57, %v5955_v28  ;;  %vm5202_vm9 = vcmask 1041408   ;;  %vm5223_vm10 = vsmask.f32 1280 }
 0x2ff   : > { %3893 = vmatmul.mubr.bf16.gmra.mrb[36].mxu1 %v6493_v24  ;;  %v8632_v24 = vsel %vm4083_vm3, %v8610_v59, %v4108_v49 }
 0x300   : > { %3900 = vmatprep.mubr.bf16.mxu1 %v6494_v39  ;;  %v8634_v39 = vor.u32 %v4255_v14, %v4252_v12  ;;  %v4224_v46 = vshrl.u32 %v8680_v34, 16  ;;  %v4227_v22 = vshll.u32 %v8680_v34, 16  ;;  %v4085_v58 = vshrl.u32 %v4046_v44, 16  ;;  %v4328_v12 = vld [vmem:[#allocation2 + $0x8] sm:$0x80]  ;;  %6277 = vmatpush3.bf16.msra.mxu1 %v6505_v20 }
 0x301   : > { %v4088_v29 = vshll.u32 %v4046_v44, 16 }
 0x302   : > { %v8640_v13 = vsel %vm4129_vm8, %v4247_v31, %v8634_v39  ;;  %v4226_v8 = vrot.slane %v4224_v46, 3  ;;  %v4229_v55 = vrot.slane %v4227_v22, 4  ;;  %v4087_v47 = vrot.slane %v4085_v58, 4 }
 0x303   : > { %v4090_v30 = vrot.slane %v4088_v29, 5  ;;  %v4419_v57 = vrot.slane %v4224_v46, 7 }
 0x305   : > { %v8686_v15 = vor.u32 %v4090_v30, %v4087_v47 }
 0x307   : > { %3901 = vmatmul.mubr.bf16.gmra.mrb[40].mxu1 %v6496_v42  ;;  %v4114_v42 = vshll.u32 %v8628_v10, 16  ;;  %v4124_v33 = vmul.bf16 %v8686_v15, %v4078_v19 }
 0x308   : > { %3908 = vmatprep.mubr.bf16.mxu1 %v6497_v36  ;;  %v4340_v36 = vor.u32 %v4338_v43, %v4102_v18  ;;  %v8684_v18 = vor.u32 %v4229_v55, %v4226_v8  ;;  %v4601_v43 = vld [vmem:[#allocation2 + $0x30] sm:$0x1f]  ;;  %v4193_v8 = vrot.slane %v8692_v23, 4  ;;  %v4422_v55 = vor.u32 %v8607_v61, %v4235_v26 }
 0x309   : > { %v8644_v37 = vrot.slane %v4114_v42, 1  ;;  %v4116_v52 = vrot.slane %v4114_v42, 5  ;;  %v4606_v14 = vmul.bf16 %v4601_v43, %v8634_v39  ;;  %v4418_v42 = vld [vmem:[#allocation2 + $0x30] sm:$0x1]  ;;  %v4131_v38 = vshrl.u32 %v4124_v33, 16 }
 0x30a   : > { %v4263_v41 = vmul.bf16 %v8684_v18, %v4218_v9  ;;  %v4439_v7 = vmul.bf16 %v8642_v27, %v4418_v42  ;;  %v4134_v51 = vshll.u32 %v4124_v33, 16  ;;  %v4420_v61 = vor.u32 %v4419_v57, %v4227_v22  ;;  %v6506_v22 = vld [vmem:[%s9214_s1 + $0xe8] sm:$0xff]  }
 0x30b   : > { %v8651_v56 = vsel %vm1060_vm4, %v4340_v36, %v8644_v37  ;;  %v4333_v36 = vrot.slane %v4088_v29, 1  ;;  %v4643_v34 = vshrl.u32 %v4606_v14, 16  ;;  %v4646_v44 = vshll.u32 %v4606_v14, 16  ;;  %6278 = vmatprep.subr.bf16.mxu1 %v6506_v22 }
 0x30c   : > { %v4269_v35 = vshrl.u32 %v4263_v41, 16  ;;  %v4272_v6 = vshll.u32 %v4263_v41, 16  ;;  %v8716_v16 = vrot.slane %v4134_v51, 4 }
 0x30d   : > { %v4349_v11 = vmul.bf16 %v4333_v36, %v4328_v12  ;;  %v4334_v46 = vor.u32 %v4333_v36, %v4085_v58  ;;  %v8718_v41 = vrot.slane %v4643_v34, 4  ;;  %v8728_v58 = vsel %vm1222_vm6, %v4419_v57, %v4422_v55  ;;  %v6507_v12 = vld [vmem:[%s9214_s1 + $0xa8] sm:$0xff]  }
 0x30e   : > { %v8708_v19 = vrot.slane %v4272_v6, 5  ;;  %v8747_v36 = vsel %vm4083_vm3, %v8686_v15, %v8610_v59  ;;  %6279 = vmatpush3.bf16.msra.mxu1 %v6507_v12 }
 0x30f   : > { %3909 = vmatmul.mubr.bf16.gmra.mrb[44].mxu1 %v6499_v40  ;;  %v4111_v40 = vshrl.u32 %v8628_v10, 16  ;;  %v8710_v43 = vshrl.u32 %v4349_v11, 16  ;;  %v4336_v42 = vsel %vm1060_vm4, %v4334_v46, %v8604_v48 }
 0x311   : > { %v4113_v1 = vrot.slane %v4111_v40, 4  ;;  %v4357_v23 = vrot.slane %v8710_v43, 7  ;;  %v8756_v6 = vor.u32 %v8644_v37, %v4111_v40 }
 0x313   : > { %v8653_v4 = vor.u32 %v4116_v52, %v4113_v1 }
 0x315   : > { %v8660_v17 = vsel %vm4083_vm3, %v4108_v49, %v8653_v4  ;;  %v4501_v1 = vmul.bf16 %v4496_v32, %v8653_v4  ;;  %v8720_v32 = vrot.slane %v4646_v44, 5 }
 0x317   : > { %v4538_v47 = vshrl.u32 %v4501_v1, 16  ;;  %v4541_v30 = vshll.u32 %v4501_v1, 16  ;;  %v4649_v10 = vor.u32 %v8720_v32, %v8718_v41 }
 0x319   : > { %v8730_v33 = vrot.slane %v4538_v47, 3  ;;  %v6508_v47 = vld [vmem:[%s9214_s1 + $0xf0] sm:$0xff]  }
 0x31a   : > { %6280 = vmatprep.subr.bf16.mxu1 %v6508_v47 }
 0x3ca   : > { %v6248_v31 = vpop.f32.mrb[32].mxu1 }
 0x3cb   : > { %v6249_v25 = vpop.f32.mrb[33].mxu1 }
 0x3cc   : > { %v6250_v54 = vadd.f32 %v6249_v25, %v6248_v31  ;;  %v6251_v63 = vpop.f32.mrb[34].mxu1  ;;  %v8706_v31 = vrot.slane %v4269_v35, 4 }
 0x3cd   : > { %v6252_v49 = vpop.f32.mrb[35].mxu1 }
 0x3ce   : > { %v6253_v21 = vadd.f32 %v6252_v49, %v6251_v63  ;;  %v8714_v63 = vrot.slane %v4131_v38, 3  ;;  %v8725_v49 = vsel %vm4129_vm8, %v8684_v18, %v8602_v45  ;;  %v4275_v45 = vor.u32 %v8708_v19, %v8706_v31 }
 0x3d0   : > { %v3917_v52 = vpack.c.bf16 %v6253_v21, %v6250_v54  ;;  %v8712_v54 = vshll.u32 %v4439_v7, 16  ;;  %v8732_v21 = vrot.slane %v4541_v30, 4  ;;  %v4137_v48 = vor.u32 %v8716_v16, %v8714_v63  ;;  %v6509_v30 = vld [vmem:[%s9214_s1 + $0xb0] sm:$0xff]  }
 0x3d1   : > { %6281 = vmatpush3.bf16.msra.mxu1 %v6509_v30 }
 0x3d2   : > { %3921 = vst.msk [vmem:[#allocation2 + $0x10] sm:$0xff] %vm253_vm0, %v3917_v52  ;;  %v6254_v28 = vpop.f32.mrb[36].mxu1  ;;  %v4474_v35 = vrot.slane %v8712_v54, 1  ;;  %v4544_v57 = vor.u32 %v8732_v21, %v8730_v33 }
 0x3d3   : > { %v6255_v29 = vpop.f32.mrb[37].mxu1 }
 0x3d4   : > { %v6256_v27 = vadd.f32 %v6255_v29, %v6254_v28  ;;  %v6257_v9 = vpop.f32.mrb[38].mxu1 }
 0x3d5   : > { %v6258_v25 = vpop.f32.mrb[39].mxu1 }
 0x3d6   : > { %v6259_v26 = vadd.f32 %v6258_v25, %v6257_v9 }
 0x3d8   : > { %v3918_v14 = vpack.c.bf16 %v6259_v26, %v6256_v27 }
 0x3d9   : > { %v8749_v1 = vld [vmem:[#allocation2 + $0x10] sm:$0xff] }
 0x3da   : > { %v4597_v52 = vld [vmem:[#allocation2 + $0x10] sm:$0xf0]  ;;  %3922 = vst.msk [vmem:[#allocation2 + $0x18] sm:$0xff] %vm253_vm0, %v3918_v14  ;;  %v6260_v59 = vpop.f32.mrb[40].mxu1  ;;  %v4194_v62 = vrot.slane %v8749_v1, 4  ;;  %v4264_v11 = vmul.bf16 %v8725_v49, %v8749_v1  ;;  %4410 = vst.msk [vmem:[#allocation3 + $0x8] sm:$0xff] %vm253_vm0, %v8749_v1  ;;  %v4435_v37 = vmul.bf16 %v4420_v61, %v8749_v1  ;;  %v4350_v51 = vmul.bf16 %v4336_v42, %v8749_v1 }
 0x3db   : > { %v4562_v20 = vld [vmem:[#allocation2 + $0x10] sm:$0xf0]  ;;  %v4602_v7 = vmul.bf16 %v4597_v52, %v8684_v18  ;;  %v6261_v40 = vpop.f32.mrb[41].mxu1  ;;  %v8790_v14 = vmul.bf16 %v8749_v1, %v8747_v36 }
 0x3dc   : > { %v4492_v38 = vld [vmem:[#allocation2 + $0x10] sm:$0xf8]  ;;  %v6262_v34 = vadd.f32 %v6261_v40, %v6260_v59  ;;  %v6263_v18 = vpop.f32.mrb[42].mxu1  ;;  %v4195_v44 = vsel %vm4192_vm12, %v4193_v8, %v4194_v62  ;;  %v4277_v29 = vshrl.u32 %v4264_v11, 16  ;;  %v4280_v55 = vshll.u32 %v4264_v11, 16 }
 0x3dd   : > { %v4497_v28 = vmul.bf16 %v4492_v38, %v8686_v15  ;;  %v6264_v15 = vpop.f32.mrb[43].mxu1  ;;  %4202 = vrot.lane.b32.xlu1 %v4195_v44, %s6554_s28  ;;  %v4572_v27 = vrot.slane %v4562_v20, 4  ;;  %v4608_v9 = vshrl.u32 %v4602_v7, 16  ;;  %v4611_v31 = vshll.u32 %v4602_v7, 16 }
 0x3de   : > { %v4443_v19 = vshll.u32 %v4435_v37, 16  ;;  %v6265_v46 = vadd.f32 %v6264_v15, %v6263_v18  ;;  %v4279_v25 = vrot.slane %v4277_v29, 4  ;;  %v4282_v8 = vrot.slane %v4280_v55, 5 }
 0x3df   : > { %v4359_v26 = vshrl.u32 %v4350_v51, 16  ;;  %v8784_v61 = vrot.slane %v4608_v9, 4  ;;  %v8786_v22 = vrot.slane %v4611_v31, 5  ;;  %v4441_v12 = vshrl.u32 %v4435_v37, 16 }
 0x3e0   : > { %v3919_v42 = vpack.c.bf16 %v6265_v46, %v6262_v34  ;;  %v8792_v52 = vor.u32 %v4282_v8, %v4279_v25  ;;  %v4503_v20 = vshrl.u32 %v4497_v28, 16  ;;  %v4445_v38 = vrot.slane %v4443_v19, 1  ;;  %v6512_v8 = vld [vmem:[%s9214_s1 + $0x100] sm:$0xff]  }
 0x3e1   : > { %v8794_v59 = vrot.slane %v4359_v26, 7  ;;  %v8796_v11 = vld [vmem:[#allocation2 + $0x18] sm:$0xff]  ;;  %v4614_v7 = vor.u32 %v8786_v22, %v8784_v61  ;;  %v4362_v40 = vshll.u32 %v4350_v51, 16  ;;  %v4506_v18 = vshll.u32 %v4497_v28, 16 }
 0x3e2   : > { %3923 = vst.msk [vmem:[#allocation2 + $0x20] sm:$0xff] %vm253_vm0, %v3919_v42  ;;  %v8802_v37 = vrot.slane %v8796_v11, 4  ;;  %v4284_v34 = vsel %vm4083_vm3, %v4275_v45, %v8792_v52  ;;  %v4603_v44 = vmul.bf16 %v8796_v11, %v8725_v49  ;;  %v8810_v29 = vmul.bf16 %v8796_v11, %v8728_v58  ;;  %v6266_v55 = vpop.f32.mrb[44].mxu1  ;;  %v6510_v51 = vld [vmem:[%s9214_s1 + $0xf8] sm:$0xff]   ;;  %4411 = vst.msk [vmem:[#allocation3 + $0x20] sm:$0xff] %vm253_vm0, %v8796_v11  ;;  %v6513_v42 = vld [vmem:[%s9214_s1 + $0xc0] sm:$0xff]  }
 0x3e3   : > { %v6511_v28 = vld [vmem:[%s9214_s1 + $0xb8] sm:$0xff]   ;;  %v9246_v45 = vmov 0   ;;  %4312 = vrot.lane.b32.xlu1 %v4284_v34, %s6558_s12  ;;  %v4364_v49 = vor.u32 %v4362_v40, %v8794_v59  ;;  %v6267_v58 = vpop.f32.mrb[45].mxu1  ;;  %v4498_v47 = vmul.bf16 %v8796_v11, %v8747_v36  ;;  %v4505_v30 = vrot.slane %v4503_v20, 3  ;;  %6282 = vmatprep.subr.bf16.mxu1 %v6510_v51 }
 0x3e4   : > { %5126 = vst.msk [vmem:[#allocation2 + $0x18] sm:$0xff] %vm253_vm0, %v9246_v45  ;;  %v4508_v15 = vrot.slane %v4506_v18, 4  ;;  %v4574_v9 = vsel %vm4192_vm12, %v4572_v27, %v8802_v37  ;;  %v4616_v31 = vshrl.u32 %v4603_v44, 16  ;;  %v4619_v19 = vshll.u32 %v4603_v44, 16  ;;  %v6269_v25 = vpop.f32.mrb[46].mxu1  ;;  %6283 = vmatpush3.bf16.msra.mxu1 %v6511_v28 }
 0x3e5   : > { %v4448_v46 = vshll.u32 %v8810_v29, 16  ;;  %4581 = vrot.lane.b32.xlu0 %v4574_v9, %s6557_s29  ;;  %v4446_v26 = vor.u32 %v4445_v38, %v4441_v12  ;;  %v4365_v36 = vsel %vm1222_vm6, %v4357_v23, %v4364_v49  ;;  %v6268_v61 = vadd.f32 %v6267_v58, %v6266_v55  ;;  %v6270_v22 = vpop.f32.mrb[47].mxu1  ;;  %6284 = vmatprep.subr.bf16.mxu1 %v6512_v8 }
 0x3e6   : > { %v4511_v27 = vshrl.u32 %v4498_v47, 16  ;;  %v4618_v20 = vrot.slane %v4616_v31, 4  ;;  %v4621_v40 = vrot.slane %v4619_v19, 5  ;;  %v6271_v34 = vadd.f32 %v6270_v22, %v6269_v25  ;;  %v6514_v31 = vld [vmem:[%s9214_s1 + $0x108] sm:$0xff]  }
 0x3e7   : > { %v4450_v18 = vrot.slane %v4448_v46, 1  ;;  %4390 = vrot.lane.b32.xlu1 %v4365_v36, %s6557_s29  ;;  %v4514_v38 = vshll.u32 %v4498_v47, 16  ;;  %v4265_v43 = vmul.bf16 %v8796_v11, %v8617_v60  ;;  %v4139_v23 = vshrl.u32 %v8790_v14, 16  ;;  %v6515_v19 = vld [vmem:[%s9214_s1 + $0xc8] sm:$0xff]  }
 0x3e8   : > { %v4513_v12 = vrot.slane %v4511_v27, 3  ;;  %v4622_v44 = vor.u32 %v4621_v40, %v4618_v20  ;;  %v3920_v51 = vpack.c.bf16 %v6271_v34, %v6268_v61  ;;  %v4509_v28 = vor.u32 %v4508_v15, %v4505_v30  ;;  %6285 = vmatpush3.bf16.msra.mxu1 %v6513_v42 }
 0x3e9   : > { %v4451_v55 = vsel %vm1060_vm4, %v4446_v26, %v4450_v18  ;;  %v4516_v45 = vrot.slane %v4514_v38, 4  ;;  %v8845_v49 = vld [vmem:[#allocation2 + $0x20] sm:$0xff]  ;;  %v4286_v58 = vshrl.u32 %v4265_v43, 16  ;;  %v4289_v9 = vshll.u32 %v4265_v43, 16  ;;  %6286 = vmatprep.subr.bf16.mxu1 %v6514_v31 }
 0x3ea   : > { %4476 = vrot.lane.b32.xlu0 %v4451_v55, %s6554_s28  ;;  %v4351_v47 = vmul.bf16 %v8796_v11, %v8624_v53  ;;  %v4623_v30 = vsel %vm4083_vm3, %v4614_v7, %v4622_v44  ;;  %3924 = vst.msk [vmem:[#allocation2 + $0x28] sm:$0xff] %vm253_vm0, %v3920_v51  ;;  %v4197_v15 = vsel %vm4192_vm12, %v4194_v62, %v8802_v37  ;;  %4412 = vst.msk [vmem:[#allocation3 + $0x38] sm:$0xff] %vm253_vm0, %v8845_v49 }
 0x3eb   : > { %v4604_v53 = vmul.bf16 %v8845_v49, %v8617_v60  ;;  %v8865_v46 = vmul.bf16 %v8845_v49, %v8621_v50  ;;  %4655 = vst.msk [vmem:[#allocation3 + $0x10] sm:$0xff] %vm253_vm0, %v4623_v30  ;;  %v4517_v7 = vor.u32 %v4516_v45, %v4513_v12  ;;  %4204 = vrot.lane.b32.xlu1 %v4197_v15, %s6554_s28  ;;  %v4288_v25 = vrot.slane %v4286_v58, 4 }
 0x3ec   : > { %v4291_v8 = vrot.slane %v4289_v9, 5  ;;  %v4452_v1 = vshrl.u32 %v8810_v29, 16  ;;  %v8873_v62 = vrot.slane %v8845_v49, 4  ;;  %v4367_v27 = vshrl.u32 %v4351_v47, 16  ;;  %6287 = vmatpush3.bf16.msra.mxu1 %v6515_v19 }
 0x3ed   : > { %v4625_v60 = vshrl.u32 %v4604_v53, 16  ;;  %v4628_v26 = vshll.u32 %v4604_v53, 16  ;;  %v4456_v50 = vshll.u32 %v8865_v46, 16  ;;  %v4518_v36 = vsel %vm4129_vm8, %v4509_v28, %v4517_v7 }
 0x3ee   : > { %v4292_v61 = vor.u32 %v4291_v8, %v4288_v25  ;;  %v4454_v22 = vor.u32 %v4452_v1, %v4450_v18  ;;  %4546 = vrot.lane.b32.xlu0 %v4518_v36, %s6558_s12  ;;  %v4370_v29 = vshll.u32 %v4351_v47, 16  ;;  %v4369_v12 = vrot.slane %v4367_v27, 7 }
 0x3ef   : > { %v4627_v42 = vrot.slane %v4625_v60, 4  ;;  %v4630_v20 = vrot.slane %v4628_v26, 5  ;;  %v4458_v40 = vrot.slane %v4456_v50, 1  ;;  %v4499_v38 = vmul.bf16 %v8845_v49, %v8632_v24 }
 0x3f0   : > { %v4293_v34 = vsel %vm4083_vm3, %v8792_v52, %v4292_v61  ;;  %v4266_v43 = vmul.bf16 %v8845_v49, %v8640_v13  ;;  %v4576_v18 = vsel %vm4192_vm12, %v8802_v37, %v8873_v62  ;;  %v4352_v28 = vmul.bf16 %v8845_v49, %v8651_v56 }
 0x3f1   : > { %v4631_v55 = vor.u32 %v4630_v20, %v4627_v42  ;;  %4314 = vrot.lane.b32.xlu1 %v4293_v34, %s6558_s12  ;;  %v4459_v51 = vsel %vm1060_vm4, %v4454_v22, %v4458_v40  ;;  %v4372_v52 = vor.u32 %v4370_v29, %v4369_v12  ;;  %v4520_v45 = vshrl.u32 %v4499_v38, 16  ;;  %v8891_v9 = vld [vmem:[#allocation2 + $0x28] sm:$0xff] }
 0x3f2   : > { %v4523_v58 = vshll.u32 %v4499_v38, 16  ;;  %v4295_v47 = vshrl.u32 %v4266_v43, 16  ;;  %4583 = vrot.lane.b32.xlu0 %v4576_v18, %s6557_s29  ;;  %v4577_v37 = vrot.slane %v8891_v9, 4  ;;  %v4298_v19 = vshll.u32 %v4266_v43, 16  ;;  %4413 = vst.msk [vmem:[#allocation3 + $0x50] sm:$0xff] %vm253_vm0, %v8891_v9 }
 0x3f3   : > { %v4632_v31 = vsel %vm4083_vm3, %v4622_v44, %v4631_v55  ;;  %v4605_v30 = vmul.bf16 %v8891_v9, %v8640_v13  ;;  %v4373_v56 = vsel %vm1222_vm6, %v8794_v59, %v4372_v52  ;;  %v4522_v15 = vrot.slane %v4520_v45, 3  ;;  %v4222_v20 = vld [vmem:[#allocation2 + $0x28] sm:$0x1f] }
 0x3f4   : > { %4656 = vst.msk [vmem:[#allocation3 + $0x28] sm:$0xff] %vm253_vm0, %v4632_v31  ;;  %v4525_v53 = vrot.slane %v4523_v58, 4  ;;  %v4297_v25 = vrot.slane %v4295_v47, 4  ;;  %v4300_v44 = vrot.slane %v4298_v19, 5  ;;  %v4460_v60 = vshrl.u32 %v8865_v46, 16 }
 0x3f5   : > { %4392 = vrot.lane.b32.xlu1 %v4373_v56, %s6557_s29  ;;  %v4634_v8 = vshrl.u32 %v4605_v30, 16  ;;  %v4637_v1 = vshll.u32 %v4605_v30, 16  ;;  %v4126_v13 = vmul.bf16 %v8796_v11, %v8632_v24  ;;  %v4438_v50 = vmul.bf16 %v8891_v9, %v8656_v5  ;;  %v4186_v58 = vld [vmem:[#allocation2 + $0x28] sm:$0xf] }
 0x3f6   : > { %v4526_v26 = vor.u32 %v4525_v53, %v4522_v15  ;;  %v4375_v36 = vshrl.u32 %v4352_v28, 16  ;;  %4478 = vrot.lane.b32.xlu0 %v4459_v51, %s6554_s28  ;;  %v4301_v59 = vor.u32 %v4300_v44, %v4297_v25  ;;  %v4378_v42 = vshll.u32 %v4352_v28, 16  ;;  %v4082_v54 = vld [vmem:[#allocation2 + $0x28] sm:$0xf] }
 0x3f7   : > { %v4636_v22 = vrot.slane %v4634_v8, 4  ;;  %v4639_v27 = vrot.slane %v4637_v1, 5  ;;  %v4578_v46 = vsel %vm4192_vm12, %v8873_v62, %v4577_v37  ;;  %v4464_v24 = vshll.u32 %v4438_v50, 16 }
 0x3f8   : > { %v4527_v29 = vsel %vm4129_vm8, %v4517_v7, %v4526_v26  ;;  %v8915_v11 = vrot.slane %v4375_v36, 7  ;;  %v4302_v5 = vsel %vm4083_vm3, %v4292_v61, %v4301_v59  ;;  %v4462_v38 = vor.u32 %v4460_v60, %v4458_v40 }
 0x3f9   : > { %4206 = vrot.lane.b32.xlu1 %v4576_v18, %s6554_s28  ;;  %v4640_v34 = vor.u32 %v4639_v27, %v4636_v22  ;;  %v4500_v43 = vmul.bf16 %v8891_v9, %v8660_v17  ;;  %v4466_v51 = vrot.slane %v4464_v24, 1  ;;  %v4468_v28 = vshrl.u32 %v4438_v50, 16 }
 0x3fa   : > { %v4380_v7 = vor.u32 %v4378_v42, %v8915_v11  ;;  %v4267_v52 = vmul.bf16 %v8634_v39, %v4222_v20  ;;  %4548 = vrot.lane.b32.xlu0 %v4527_v29, %s6558_s12  ;;  %v4127_v31 = vmul.bf16 %v8845_v49, %v8660_v17  ;;  %v4200_v30 = vrot.slane %v4186_v58, 4 }
 0x3fb   : > { %v4641_v45 = vsel %vm4083_vm3, %v4631_v55, %v4640_v34  ;;  %v4650_v61 = vsel %vm4083_vm3, %v4640_v34, %v4649_v10  ;;  %v4529_v18 = vshrl.u32 %v4500_v43, 16  ;;  %v4532_v40 = vshll.u32 %v4500_v43, 16 }
 0x3fc   : > { %4657 = vst.msk [vmem:[#allocation3 + $0x40] sm:$0xff] %vm253_vm0, %v4641_v45  ;;  %4658 = vst.msk [vmem:[#allocation3 + $0x58] sm:$0xff] %vm253_vm0, %v4650_v61  ;;  %v4467_v47 = vsel %vm1060_vm4, %v4462_v38, %v4466_v51  ;;  %v4381_v39 = vsel %vm1222_vm6, %v4369_v12, %v4380_v7  ;;  %v4470_v55 = vor.u32 %v4468_v28, %v4466_v51  ;;  %v4304_v10 = vshrl.u32 %v4267_v52, 16  ;;  %v6516_v7 = vld [vmem:[%s9214_s1 + $0x110] sm:$0xff]  }
 0x3fd   : > { %4316 = vrot.lane.b32.xlu1 %v4302_v5, %s6558_s12  ;;  %v4531_v41 = vrot.slane %v4529_v18, 3  ;;  %v4534_v32 = vrot.slane %v4532_v40, 4  ;;  %v4307_v19 = vshll.u32 %v4267_v52, 16  ;;  %v4353_v15 = vmul.bf16 %v8891_v9, %v8756_v6  ;;  %6389 = vmatprep.subr.bf16.mxu1 %v6516_v7 }
 0x3fe   : > { %v4475_v56 = vsel %vm1060_vm4, %v4470_v55, %v4474_v35  ;;  %v4141_v12 = vrot.slane %v4139_v23, 3  ;;  %4585 = vrot.lane.b32.xlu0 %v4578_v46, %s6557_s29  ;;  %v4306_v49 = vrot.slane %v4304_v10, 4  ;;  %v4142_v25 = vshll.u32 %v8790_v14, 16 }
 0x3ff   : > { %v4535_v17 = vor.u32 %v4534_v32, %v4531_v41  ;;  %v4309_v53 = vrot.slane %v4307_v19, 5  ;;  %v4383_v44 = vshrl.u32 %v4353_v15, 16  ;;  %v4386_v8 = vshll.u32 %v4353_v15, 16  ;;  %v6517_v41 = vld [vmem:[%s9214_s1 + $0x118] sm:$0xff]  }
 0x400   : > { %v4148_v1 = vshrl.u32 %v4126_v13, 16  ;;  %v4151_v60 = vshll.u32 %v4126_v13, 16  ;;  %v4144_v50 = vrot.slane %v4142_v25, 4  ;;  %v4157_v14 = vshrl.u32 %v4127_v31, 16 }
 0x401   : > { %4394 = vrot.lane.b32.xlu1 %v4381_v39, %s6557_s29  ;;  %v4536_v35 = vsel %vm4129_vm8, %v4526_v26, %v4535_v17  ;;  %v4310_v6 = vor.u32 %v4309_v53, %v4306_v49  ;;  %v4545_v23 = vsel %vm4129_vm8, %v4535_v17, %v4544_v57  ;;  %v4385_v36 = vrot.slane %v4383_v44, 7 }
 0x402   : > { %v4150_v22 = vrot.slane %v4148_v1, 3  ;;  %v4153_v27 = vrot.slane %v4151_v60, 4  ;;  %4480 = vrot.lane.b32.xlu0 %v4467_v47, %s6554_s28  ;;  %v4145_v42 = vor.u32 %v4144_v50, %v4141_v12  ;;  %v4160_v20 = vshll.u32 %v4127_v31, 16 }
 0x403   : > { %v4311_v13 = vsel %vm4083_vm3, %v4301_v59, %v4310_v6  ;;  %v4128_v29 = vmul.bf16 %v8653_v4, %v4082_v54  ;;  %v4201_v26 = vsel %vm4192_vm12, %v8873_v62, %v4200_v30  ;;  %v4388_v46 = vor.u32 %v4386_v8, %v4385_v36  ;;  %v4661_v36 = vld [vmem:[#allocation3 + $0x10] sm:$0xff] }
 0x404   : > { %v4154_v33 = vor.u32 %v4153_v27, %v4150_v22  ;;  %v4159_v21 = vrot.slane %v4157_v14, 3  ;;  %v4146_v57 = vsel %vm4129_vm8, %v4137_v48, %v4145_v42  ;;  %v4162_v24 = vrot.slane %v4160_v20, 4  ;;  %v4566_v48 = vld [vmem:[#allocation2 + $0x30] sm:$0xf]  ;;  %v4664_v22 = vld [vmem:[#allocation3 + $0x28] sm:$0xff]  ;;  %v4667_v27 = vld [vmem:[#allocation3 + $0x40] sm:$0xff] }
 0x405   : > { %4208 = vrot.lane.b32.xlu1 %v4201_v26, %s6554_s28  ;;  %v4166_v5 = vshrl.u32 %v4128_v29, 16  ;;  %v4169_v59 = vshll.u32 %v4128_v29, 16  ;;  %v4389_v34 = vsel %vm1222_vm6, %v8915_v11, %v4388_v46  ;;  %4178 = vst.msk [vmem:[#allocation3] sm:$0xff] %vm253_vm0, %v4146_v57  ;;  %v4579_v51 = vrot.slane %v4566_v48, 4  ;;  %v4670_v14 = vld [vmem:[#allocation3 + $0x58] sm:$0xff] }
 0x406   : > { %v4155_v4 = vsel %vm4129_vm8, %v4145_v42, %v4154_v33  ;;  %4550 = vrot.lane.b32.xlu0 %v4536_v35, %s6558_s12  ;;  %v4163_v62 = vor.u32 %v4162_v24, %v4159_v21 }
 0x407   : > { %4179 = vst.msk [vmem:[#allocation3 + $0x18] sm:$0xff] %vm253_vm0, %v4155_v4  ;;  %v4168_v38 = vrot.slane %v4166_v5, 3  ;;  %v4171_v43 = vrot.slane %v4169_v59, 4  ;;  %v4580_v28 = vsel %vm4192_vm12, %v4577_v37, %v4579_v51  ;;  %vm5303_vm12 = vsmask.f32 6400 }
 0x408   : > { %v4164_v63 = vsel %vm4129_vm8, %v4154_v33, %v4163_v62 }
 0x409   : > { %4318 = vrot.lane.b32.xlu1 %v4311_v13, %s6558_s12  ;;  %v4172_v16 = vor.u32 %v4171_v43, %v4168_v38  ;;  %4180 = vst.msk [vmem:[#allocation3 + $0x30] sm:$0xff] %vm253_vm0, %v4164_v63 }
 0x40a   : > { %4482 = vrot.lane.b32.xlu0 %v4475_v56, %s6554_s28 }
 0x40b   : > { %v4173_v11 = vsel %vm4129_vm8, %v4163_v62, %v4172_v16  ;;  %vm6559_vm8 = vmmov 0  }
 0x40c   : > { %4181 = vst.msk [vmem:[#allocation3 + $0x48] sm:$0xff] %vm253_vm0, %v4173_v11 }
 0x40d   : > { %4396 = vrot.lane.b32.xlu1 %v4389_v34, %s6557_s29 }
 0x40e   : > { %4552 = vrot.lane.b32.xlu0 %v4545_v23, %s6558_s12 }
 0x412   : > { %4587 = vrot.lane.b32.xlu0 %v4580_v28, %s6557_s29 }
 0x44f   : > { %v4203_v52 = vpop.permute.xlu1 %4202 }
 0x450   : > { %4214 = vst.msk [vmem:[#allocation3] sm:$0xff] %vm1467_vm11, %v4203_v52  ;;  %v6007_v52 = vld [vmem:[%s9215_s2 + $0x3] ss:$0 sm:$0xff] }
 0x455   : > { %v4313_v45 = vpop.permute.xlu1 %4312 }
 0x456   : > { %4324 = vst.msk [vmem:[#allocation3] sm:$0xff] %vm1842_vm13, %v4313_v45 }
 0x457   : > { %v4582_v61 = vpop.permute.xlu0 %4581 }
 0x459   : > { %v4391_v18 = vpop.permute.xlu1 %4390 }
 0x45a   : > { %4402 = vst.msk [vmem:[#allocation3] sm:$0xff] %vm2073_vm15, %v4391_v18 }
 0x45c   : > { %v4477_v40 = vpop.permute.xlu0 %4476 }
 0x45d   : > { %4488 = vst.msk [vmem:[#allocation3 + $0x8] sm:$0xff] %vm1467_vm11, %v4477_v40  ;;  %v4205_v58 = vpop.permute.xlu1 %4204 }
 0x45e   : > { %4215 = vst.msk [vmem:[#allocation3 + $0x18] sm:$0xff] %vm1467_vm11, %v4205_v58 }
 0x460   : > { %v4547_v9 = vpop.permute.xlu0 %4546 }
 0x461   : > { %4558 = vst.msk [vmem:[#allocation3 + $0x8] sm:$0xff] %vm1842_vm13, %v4547_v9  ;;  %v4659_v10 = vld [vmem:[#allocation3] sm:$0xff] }
 0x462   : > { %4593 = vst.msk [vmem:[#allocation3 + $0x8] sm:$0xff] %vm2073_vm15, %v4582_v61 }
 0x463   : > { %v4315_v37 = vpop.permute.xlu1 %4314 }
 0x464   : > { %4325 = vst.msk [vmem:[#allocation3 + $0x18] sm:$0xff] %vm1842_vm13, %v4315_v37  ;;  %v4584_v47 = vpop.permute.xlu0 %4583 }
 0x467   : > { %v4393_v39 = vpop.permute.xlu1 %4392 }
 0x468   : > { %4403 = vst.msk [vmem:[#allocation3 + $0x18] sm:$0xff] %vm2073_vm15, %v4393_v39  ;;  %v4479_v31 = vpop.permute.xlu0 %4478 }
 0x469   : > { %4489 = vst.msk [vmem:[#allocation3 + $0x20] sm:$0xff] %vm1467_vm11, %v4479_v31  ;;  %v4660_v55 = vld [vmem:[#allocation3 + $0x8] sm:$0xff] }
 0x46a   : > { %4865 = vmatprep.mubr.bf16.mxu1 %v4660_v55 }
 0x46b   : > { %v4207_v32 = vpop.permute.xlu1 %4206  ;;  %4866 = vmatmul.mubr.bf16.vlgmr.msra.gmra.mrb[48].mxu1 %v4659_v10 }
 0x46c   : > { %4216 = vst.msk [vmem:[#allocation3 + $0x30] sm:$0xff] %vm1467_vm11, %v4207_v32  ;;  %v4549_v19 = vpop.permute.xlu0 %4548  ;;  %6390 = vmatpush3.bf16.msra.mxu1 %v6516_v7 }
 0x46d   : > { %4559 = vst.msk [vmem:[#allocation3 + $0x20] sm:$0xff] %vm1842_vm13, %v4549_v19  ;;  %6391 = vmatprep.subr.bf16.mxu1 %v6517_v41 }
 0x46e   : > { %4594 = vst.msk [vmem:[#allocation3 + $0x20] sm:$0xff] %vm2073_vm15, %v4584_v47 }
 0x46f   : > { %v4317_v30 = vpop.permute.xlu1 %4316  ;;  %v4662_v49 = vld [vmem:[#allocation3 + $0x18] sm:$0xff] }
 0x470   : > { %4326 = vst.msk [vmem:[#allocation3 + $0x30] sm:$0xff] %vm1842_vm13, %v4317_v30  ;;  %v4586_v56 = vpop.permute.xlu0 %4585  ;;  %6392 = vmatpush3.bf16.msra.mxu1 %v6517_v41 }
 0x471   : > { %6401 = vmatprep.subr.bf16.mxu1 %v9235_v3 }
 0x473   : > { %v4395_v15 = vpop.permute.xlu1 %4394 }
 0x474   : > { %4404 = vst.msk [vmem:[#allocation3 + $0x30] sm:$0xff] %vm2073_vm15, %v4395_v15  ;;  %v4481_v12 = vpop.permute.xlu0 %4480 }
 0x475   : > { %4490 = vst.msk [vmem:[#allocation3 + $0x38] sm:$0xff] %vm1467_vm11, %v4481_v12  ;;  %v4663_v17 = vld [vmem:[#allocation3 + $0x20] sm:$0xff] }
 0x476   : > { %4873 = vmatprep.mubr.bf16.mxu1 %v4663_v17 }
 0x477   : > { %v4209_v53 = vpop.permute.xlu1 %4208  ;;  %4874 = vmatmul.mubr.bf16.gmra.mrb[52].mxu1 %v4662_v49 }
 0x478   : > { %4217 = vst.msk [vmem:[#allocation3 + $0x48] sm:$0xff] %vm1467_vm11, %v4209_v53  ;;  %v4551_v25 = vpop.permute.xlu0 %4550 }
 0x479   : > { %4560 = vst.msk [vmem:[#allocation3 + $0x38] sm:$0xff] %vm1842_vm13, %v4551_v25 }
 0x47a   : > { %4595 = vst.msk [vmem:[#allocation3 + $0x38] sm:$0xff] %vm2073_vm15, %v4586_v56 }
 0x47b   : > { %v4319_v44 = vpop.permute.xlu1 %4318  ;;  %v4665_v35 = vld [vmem:[#allocation3 + $0x30] sm:$0xff] }
 0x47c   : > { %4327 = vst.msk [vmem:[#allocation3 + $0x48] sm:$0xff] %vm1842_vm13, %v4319_v44  ;;  %v4483_v8 = vpop.permute.xlu0 %4482 }
 0x47d   : > { %4491 = vst.msk [vmem:[#allocation3 + $0x50] sm:$0xff] %vm1467_vm11, %v4483_v8 }
 0x47f   : > { %v4397_v1 = vpop.permute.xlu1 %4396 }
 0x480   : > { %4405 = vst.msk [vmem:[#allocation3 + $0x48] sm:$0xff] %vm2073_vm15, %v4397_v1  ;;  %v4553_v60 = vpop.permute.xlu0 %4552 }
 0x481   : > { %4561 = vst.msk [vmem:[#allocation3 + $0x50] sm:$0xff] %vm1842_vm13, %v4553_v60  ;;  %v4666_v54 = vld [vmem:[#allocation3 + $0x38] sm:$0xff] }
 0x482   : > { %4881 = vmatprep.mubr.bf16.mxu1 %v4666_v54 }
 0x483   : > { %4882 = vmatmul.mubr.bf16.gmra.mrb[56].mxu1 %v4665_v35 }
 0x484   : > { %v4588_v6 = vpop.permute.xlu0 %4587 }
 0x485   : > { %4596 = vst.msk [vmem:[#allocation3 + $0x50] sm:$0xff] %vm2073_vm15, %v4588_v6 }
 0x487   : > { %v4668_v50 = vld [vmem:[#allocation3 + $0x48] sm:$0xff] }
 0x48c   : > { %v4669_v23 = vld [vmem:[#allocation3 + $0x50] sm:$0xff] }
 0x48d   : > { %4889 = vmatprep.mubr.bf16.mxu1 %v4669_v23 }
 0x48e   : > { %4890 = vmatmul.mubr.bf16.gmra.mrb[60].mxu1 %v4668_v50 }
 0x48f   : > { %6393 = vmatprep.mubr.msk.bf16.mxu1 %vm253_vm0, %v4661_v36 }
 0x496   : > { %6394 = vmatmul.mubr.msk.bf16.vlgmr.msra.gmra.mrb[64].mxu1 %vm253_vm0, %v4664_v22 }
 0x497   : > { %6397 = vmatprep.mubr.msk.bf16.mxu1 %vm253_vm0, %v4667_v27 }
 0x49e   : > { %6398 = vmatmul.mubr.msk.bf16.gmra.mrb[68].mxu1 %vm253_vm0, %v4670_v14 }
 0x49f   : > { %6409 = vmatprep.mubr.msk.bf16.mxu1 %vm6559_vm8, %v9235_v3 }
 0x53e   : > { %v6288_v13 = vpop.f32.mrb[48].mxu1 }
 0x53f   : > { %v6289_v42 = vpop.f32.mrb[49].mxu1 }
 0x540   : > { %v6290_v20 = vadd.f32 %v6289_v42, %v6288_v13  ;;  %v6291_v29 = vpop.f32.mrb[50].mxu1 }
 0x541   : > { %v6292_v26 = vpop.f32.mrb[51].mxu1 }
 0x542   : > { %v6293_v46 = vadd.f32 %v6292_v26, %v6291_v29  ;;  %v4868_v18 = vadd.f32 %v6290_v20, %v6007_v52 }
 0x544   : > { %v4871_v39 = vadd.f32 %v6293_v46, %v6007_v52 }
 0x54a   : > { %v6294_v33 = vpop.f32.mrb[52].mxu1 }
 0x54b   : > { %v6295_v21 = vpop.f32.mrb[53].mxu1 }
 0x54c   : > { %v6296_v57 = vadd.f32 %v6295_v21, %v6294_v33  ;;  %v6297_v24 = vpop.f32.mrb[54].mxu1 }
 0x54d   : > { %v6298_v5 = vpop.f32.mrb[55].mxu1 }
 0x54e   : > { %v6299_v59 = vadd.f32 %v6298_v5, %v6297_v24  ;;  %v4876_v45 = vadd.f32 %v6296_v57, %v6007_v52 }
 0x550   : > { %v4879_v9 = vadd.f32 %v6299_v59, %v6007_v52 }
 0x556   : > { %v6300_v34 = vpop.f32.mrb[56].mxu1 }
 0x557   : > { %v6301_v4 = vpop.f32.mrb[57].mxu1 }
 0x558   : > { %v6302_v62 = vadd.f32 %v6301_v4, %v6300_v34  ;;  %v6303_v38 = vpop.f32.mrb[58].mxu1 }
 0x559   : > { %v6304_v43 = vpop.f32.mrb[59].mxu1 }
 0x55a   : > { %v6305_v63 = vadd.f32 %v6304_v43, %v6303_v38  ;;  %v4884_v12 = vadd.f32 %v6302_v62, %v6007_v52 }
 0x55c   : > { %v4887_v60 = vadd.f32 %v6305_v63, %v6007_v52 }
 0x561   : > { %v6306_v16 = vpop.f32.mrb[60].mxu1 }
 0x562   : > { %v6307_v48 = vpop.f32.mrb[61].mxu1 }
 0x563   : > { %v6308_v11 = vadd.f32 %v6307_v48, %v6306_v16  ;;  %v6309_v51 = vpop.f32.mrb[62].mxu1 }
 0x564   : > { %v6310_v7 = vpop.f32.mrb[63].mxu1 }
 0x565   : > { %v6311_v28 = vadd.f32 %v6310_v7, %v6309_v51  ;;  %v4892_v30 = vadd.f32 %v6308_v11, %v6007_v52 }
 0x567   : > { %v4895_v25 = vadd.f32 %v6311_v28, %v6007_v52 }
 0x569   : > { %v6395_v61 = vpop.f32.mrb[64].mxu1 }
 0x56a   : > { %v4941_v40 = vadd.f32 %v6395_v61, %v4876_v45  ;;  %v4932_v58 = vpop.f32.mrb[65].mxu1 }
 0x56b   : > { %v4933_v37 = vadd.f32 %v4932_v58, %v4868_v18  ;;  %v6396_v47 = vpop.f32.mrb[66].mxu1 }
 0x56c   : > { %v4944_v31 = vadd.f32 %v6396_v47, %v4879_v9  ;;  %v4935_v55 = vpop.f32.mrb[67].mxu1  ;;  %v4966_v56 = vsel %vm253_vm0, %v4941_v40, 0.0 }
 0x56d   : > { %v4936_v41 = vadd.f32 %v4935_v55, %v4871_v39  ;;  %v4963_v32 = vsel %vm253_vm0, %v4933_v37, 0.0 }
 0x56e   : > { %v4968_v44 = vsel %vm253_vm0, %v4944_v31, 0.0 }
 0x56f   : > { %v4964_v10 = vsel %vm253_vm0, %v4936_v41, 0.0 }
 0x570   : > { %v4965_v19 = vadd.f32 %v4964_v10, %v4963_v32 }
 0x571   : > { %v6399_v15 = vpop.f32.mrb[68].mxu1 }
 0x572   : > { %v4967_v17 = vadd.f32 %v4966_v56, %v4965_v19  ;;  %v4957_v49 = vadd.f32 %v6399_v15, %v4892_v30  ;;  %v4948_v53 = vpop.f32.mrb[69].mxu1 }
 0x573   : > { %v4949_v8 = vadd.f32 %v4948_v53, %v4884_v12  ;;  %v6400_v1 = vpop.f32.mrb[70].mxu1 }
 0x574   : > { %v4969_v54 = vadd.f32 %v4968_v44, %v4967_v17  ;;  %v4960_v35 = vadd.f32 %v6400_v1, %v4895_v25  ;;  %v4951_v6 = vpop.f32.mrb[71].mxu1  ;;  %v4974_v14 = vsel %vm253_vm0, %v4957_v49, 0.0  ;;  %v6030_v1 = vld [vmem:[%s9215_s2 + $0x4] ss:$0 sm:$0xff] }
 0x575   : > { %v4970_v23 = vsel %vm253_vm0, %v4949_v8, 0.0  ;;  %v4952_v50 = vadd.f32 %v4951_v6, %v4887_v60 }
 0x576   : > { %v4971_v36 = vadd.f32 %v4970_v23, %v4969_v54  ;;  %v4976_v42 = vsel %vm253_vm0, %v4960_v35, 0.0  ;;  %v6031_v23 = vld [vmem:[%s9215_s2 + $0x5] ss:$0 sm:$0xff] }
 0x577   : > { %v4972_v22 = vsel %vm253_vm0, %v4952_v50, 0.0 }
 0x578   : > { %v4973_v27 = vadd.f32 %v4972_v22, %v4971_v36 }
 0x57a   : > { %v4975_v13 = vadd.f32 %v4974_v14, %v4973_v27 }
 0x57c   : > { %v4977_v20 = vadd.f32 %v4976_v42, %v4975_v13 }
 0x57e   : > { %v4978_v29 = vrot.slane %v4977_v20, 4 }
 0x580   : > { %v4979_v26 = vadd.f32 %v4978_v29, %v4977_v20 }
 0x582   : > { %v4980_v46 = vrot.slane %v4979_v26, 2 }
 0x584   : > { %v4981_v33 = vadd.f32 %v4980_v46, %v4979_v26 }
 0x586   : > { %v4982_v21 = vrot.slane %v4981_v33, 1 }
 0x588   : > { %v4983_v57 = vadd.f32 %v4982_v21, %v4981_v33 }
 0x58a   : > { %v4985_v24 = vmul.f32 0.015625, %v4983_v57 }
 0x58c   : > { %v4986_v5 = vsub.f32 %v4933_v37, %v4985_v24  ;;  %v4987_v59 = vsub.f32 %v4936_v41, %v4985_v24  ;;  %v4988_v34 = vsub.f32 %v4941_v40, %v4985_v24  ;;  %v4989_v4 = vsub.f32 %v4944_v31, %v4985_v24 }
 0x58d   : > { %v4990_v62 = vsub.f32 %v4949_v8, %v4985_v24  ;;  %v4991_v38 = vsub.f32 %v4952_v50, %v4985_v24  ;;  %v4992_v43 = vsub.f32 %v4957_v49, %v4985_v24  ;;  %v4993_v63 = vsub.f32 %v4960_v35, %v4985_v24 }
 0x58e   : > { %v4994_v16 = vmul.f32 %v4986_v5, %v4986_v5  ;;  %v4995_v48 = vmul.f32 %v4987_v59, %v4987_v59  ;;  %v4996_v11 = vmul.f32 %v4988_v34, %v4988_v34  ;;  %v4997_v51 = vmul.f32 %v4989_v4, %v4989_v4 }
 0x58f   : > { %v4998_v45 = vmul.f32 %v4990_v62, %v4990_v62  ;;  %v4999_v58 = vmul.f32 %v4991_v38, %v4991_v38  ;;  %v5000_v37 = vmul.f32 %v4992_v43, %v4992_v43  ;;  %v5001_v31 = vmul.f32 %v4993_v63, %v4993_v63 }
 0x590   : > { %v5002_v7 = vsel %vm253_vm0, %v4994_v16, 0.0  ;;  %v5003_v28 = vsel %vm253_vm0, %v4995_v48, 0.0  ;;  %v5005_v61 = vsel %vm253_vm0, %v4996_v11, 0.0  ;;  %v5007_v40 = vsel %vm253_vm0, %v4997_v51, 0.0 }
 0x591   : > { %v5004_v52 = vadd.f32 %v5003_v28, %v5002_v7  ;;  %v5009_v47 = vsel %vm253_vm0, %v4998_v45, 0.0  ;;  %v5011_v55 = vsel %vm253_vm0, %v4999_v58, 0.0  ;;  %v5013_v32 = vsel %vm253_vm0, %v5000_v37, 0.0  ;;  %v6519_v58 = vld [vmem:[%s9214_s1 + $0x1a0] sm:$0xff]   ;;  %v6523_v37 = vld [vmem:[%s9214_s1 + $0x168] sm:$0xff]  }
 0x592   : > { %v5015_v19 = vsel %vm253_vm0, %v5001_v31, 0.0  ;;  %v6525_v31 = vld [vmem:[%s9214_s1 + $0x170] sm:$0xff]  }
 0x593   : > { %v5006_v18 = vadd.f32 %v5005_v61, %v5004_v52 }
 0x595   : > { %v5008_v9 = vadd.f32 %v5007_v40, %v5006_v18  ;;  %v6518_v18 = vld [vmem:[%s9216_s3 + $0x40] ss:$8 sps:$4 sm:$0xff]  }
 0x596   : > { %v6521_v40 = vld [vmem:[%s9214_s1 + $0x160] sm:$0xff]  }
 0x597   : > { %v5010_v39 = vadd.f32 %v5009_v47, %v5008_v9  ;;  %v6522_v9 = vld [vmem:[%s9214_s1 + $0x120] sm:$0xff]   ;;  %v6520_v47 = vld [vmem:[%s9214_s1 + $0x1a8] sm:$0xff]   ;;  %6323 = vmatprep.subr.bf16.mxu0 %v6521_v40 }
 0x598   : > { %6324 = vmatpush3.bf16.msra.mxu0 %v6522_v9  ;;  %v5198_v40 = vld [vmem:[#allocation2 + $0x8] sm:$0xc0] }
 0x599   : > { %v5012_v41 = vadd.f32 %v5011_v55, %v5010_v39  ;;  %v6524_v39 = vld [vmem:[%s9214_s1 + $0x128] sm:$0xff]   ;;  %6325 = vmatprep.subr.bf16.mxu0 %v6523_v37  ;;  %v6526_v55 = vld [vmem:[%s9214_s1 + $0x130] sm:$0xff]  }
 0x59b   : > { %v5014_v10 = vadd.f32 %v5013_v32, %v5012_v41  ;;  %v6527_v41 = vld [vmem:[%s9214_s1 + $0x178] sm:$0xff]  }
 0x59c   : > { %6326 = vmatpush3.bf16.msra.mxu0 %v6524_v39  ;;  %v6528_v32 = vld [vmem:[%s9214_s1 + $0x138] sm:$0xff]  }
 0x59d   : > { %v5016_v30 = vadd.f32 %v5015_v19, %v5014_v10  ;;  %6327 = vmatprep.subr.bf16.mxu0 %v6525_v31  ;;  %v6529_v10 = vld [vmem:[%s9214_s1 + $0x180] sm:$0xff]  }
 0x59e   : > { %v6530_v19 = vld [vmem:[%s9214_s1 + $0x140] sm:$0xff]  }
 0x59f   : > { %v5017_v56 = vrot.slane %v5016_v30, 4 }
 0x5a0   : > { %6328 = vmatpush3.bf16.msra.mxu0 %v6526_v55 }
 0x5a1   : > { %v5018_v15 = vadd.f32 %v5017_v56, %v5016_v30  ;;  %6329 = vmatprep.subr.bf16.mxu0 %v6527_v41  ;;  %v5131_v30 = vand.u32 3, %v6618_v2  ;;  %v5138_v56 = vand.u32 3, %v9245_v0  ;;  %v6531_v41 = vld [vmem:[%s9214_s1 + $0x188] sm:$0xff]  }
 0x5a3   : > { %v5019_v12 = vrot.slane %v5018_v15, 2  ;;  %vm5158_vm1 = vcmp.lt.s32.totalorder %v5131_v30, 3  ;;  %vm5159_vm2 = vcmp.lt.s32.totalorder %v5138_v56, 3  ;;  %vm5151_vm3 = vcmp.gt.s32.totalorder %v5131_v30, 0 }
 0x5a4   : > { %6330 = vmatpush3.bf16.msra.mxu0 %v6528_v32  ;;  %vm5152_vm5 = vcmp.gt.s32.totalorder %v5138_v56, 0  ;;  %v6532_v32 = vld [vmem:[%s9214_s1 + $0x148] sm:$0xff]   ;;  %v5203_v30 = vrot.slane %v5198_v40, 6 }
 0x5a5   : > { %v5020_v17 = vadd.f32 %v5019_v12, %v5018_v15  ;;  %6331 = vmatprep.subr.bf16.mxu0 %v6529_v10  ;;  %v6036_v15 = vsel %vm5158_vm1, 1.0, %v9235_v3  ;;  %v6037_v12 = vsel %vm5159_vm2, 1.0, %v9235_v3 }
 0x5a7   : > { %v5021_v49 = vrot.slane %v5020_v17, 1 }
 0x5a8   : > { %6332 = vmatpush3.bf16.msra.mxu0 %v6530_v19 }
 0x5a9   : > { %v5022_v53 = vadd.f32 %v5021_v49, %v5020_v17  ;;  %v6034_v17 = vsel %vm5151_vm3, 1.0, %v9235_v3  ;;  %v6035_v49 = vsel %vm5152_vm5, 1.0, %v9235_v3  ;;  %6333 = vmatprep.subr.bf16.mxu0 %v6531_v41 }
 0x5ab   : > { %v5023_v25 = vmul.f32 0.015625, %v5022_v53  ;;  %v5164_v53 = vpack.c.bf16 %v6037_v12, %v6036_v15 }
 0x5ac   : > { %6334 = vmatpush3.bf16.msra.mxu0 %v6532_v32 }
 0x5ad   : > { %v5024_v44 = vadd.f32 1e-05, %v5023_v25  ;;  %v5157_v25 = vpack.c.bf16 %v6035_v49, %v6034_v17 }
 0x5af   : > { %6541 = vrsqrt.f32 %v5024_v44  ;;  %v5213_v44 = vshrl.u32 %v5164_v53, 16 }
 0x5b9   : > { %v6542_v8 = vpop.eup %6541 }
 0x5ba   : > { %v5031_v60 = vmul.f32 %v6542_v8, %v4991_v38  ;;  %v5026_v54 = vmul.f32 %v6542_v8, %v4986_v5  ;;  %v5027_v35 = vmul.f32 %v6542_v8, %v4987_v59  ;;  %v5028_v6 = vmul.f32 %v6542_v8, %v4988_v34 }
 0x5bb   : > { %v5029_v50 = vmul.f32 %v6542_v8, %v4989_v4  ;;  %v5030_v36 = vmul.f32 %v6542_v8, %v4990_v62  ;;  %v5032_v22 = vmul.f32 %v6542_v8, %v4992_v43  ;;  %v5033_v27 = vmul.f32 %v6542_v8, %v4993_v63 }
 0x5bc   : > { %v5044_v14 = vmul.f32 %v6030_v1, %v5031_v60  ;;  %v5039_v13 = vmul.f32 %v6030_v1, %v5026_v54  ;;  %v5040_v42 = vmul.f32 %v6030_v1, %v5027_v35  ;;  %v5041_v20 = vmul.f32 %v6030_v1, %v5028_v6 }
 0x5bd   : > { %v5042_v29 = vmul.f32 %v6030_v1, %v5029_v50  ;;  %v5043_v26 = vmul.f32 %v6030_v1, %v5030_v36  ;;  %v5045_v46 = vmul.f32 %v6030_v1, %v5032_v22  ;;  %v5046_v33 = vmul.f32 %v6030_v1, %v5033_v27  ;;  %v5338_v22 = vld [vmem:[#allocation2 + $0x18] sm:$0x7] }
 0x5be   : > { %v5057_v21 = vadd.f32 %v6031_v23, %v5044_v14  ;;  %v5052_v57 = vadd.f32 %v6031_v23, %v5039_v13  ;;  %v5053_v24 = vadd.f32 %v6031_v23, %v5040_v42  ;;  %v5054_v5 = vadd.f32 %v6031_v23, %v5041_v20  ;;  %v5296_v13 = vld [vmem:[#allocation2 + $0x18] sm:$0x3]  ;;  %v5210_v42 = vld [vmem:[#allocation2 + $0x8] sm:$0xc0] }
 0x5bf   : > { %v5055_v59 = vadd.f32 %v6031_v23, %v5042_v29  ;;  %v5056_v34 = vadd.f32 %v6031_v23, %v5043_v26  ;;  %v5058_v38 = vadd.f32 %v6031_v23, %v5045_v46  ;;  %v5059_v16 = vadd.f32 %v6031_v23, %v5046_v33  ;;  %v5272_v26 = vld [vmem:[#allocation2 + $0x18] sm:$0x1] }
 0x5c0   : > { %v5065_v4 = vmax.f32 %v5057_v21, 0.0  ;;  %v5060_v62 = vmax.f32 %v5052_v57, 0.0  ;;  %v5061_v43 = vmax.f32 %v5053_v24, 0.0  ;;  %v5062_v63 = vmax.f32 %v5054_v5, 0.0 }
 0x5c1   : > { %v5063_v48 = vmax.f32 %v5055_v59, 0.0  ;;  %v5064_v11 = vmax.f32 %v5056_v34, 0.0  ;;  %v5066_v51 = vmax.f32 %v5058_v38, 0.0  ;;  %v5067_v7 = vmax.f32 %v5059_v16, 0.0 }
 0x5c2   : > { %v5070_v28 = vpack.c.bf16 %v5061_v43, %v5060_v62  ;;  %v5216_v8 = vshll.u32 %v5164_v53, 16  ;;  %v5168_v1 = vshrl.u32 %v5157_v25, 16  ;;  %v5171_v60 = vshll.u32 %v5157_v25, 16 }
 0x5c3   : > { %v5071_v52 = vpack.c.bf16 %v5063_v48, %v5062_v63  ;;  %v5072_v45 = vpack.c.bf16 %v5065_v4, %v5064_v11  ;;  %v5073_v61 = vpack.c.bf16 %v5067_v7, %v5066_v51  ;;  %v5339_v54 = vrot.slane %v5213_v44, 5  ;;  %v5245_v51 = vld [vmem:[#allocation2 + $0x8] sm:$0x80] }
 0x5c4   : > { %6402 = vmatpush3.bf16.msra.mxu1 %v5070_v28  ;;  %v5340_v0 = vrot.slane %v5216_v8, 6  ;;  %v5297_v35 = vrot.slane %v5168_v1, 6  ;;  %v5298_v6 = vrot.slane %v5171_v60, 7  ;;  %v5215_v23 = vrot.slane %v5213_v44, 1 }
 0x5c5   : > { %6403 = vmatprep.subr.bf16.mxu1 %v9235_v3  ;;  %v5218_v50 = vrot.slane %v5216_v8, 2  ;;  %v5273_v57 = vrot.slane %v5213_v44, 7  ;;  %v5170_v24 = vrot.slane %v5168_v1, 2  ;;  %v5173_v5 = vrot.slane %v5171_v60, 3 }
 0x5c6   : > { %v5341_v36 = vor.u32 %v5340_v0, %v5339_v54  ;;  %v9094_v27 = vor.u32 %v5298_v6, %v5297_v35  ;;  %v5247_v7 = vrot.slane %v5171_v60, 1 }
 0x5c7   : > { %v9096_v14 = vor.u32 %v5218_v50, %v5215_v23  ;;  %v5278_v38 = vmul.bf16 %v5273_v57, %v5272_v26  ;;  %v9101_v28 = vor.u32 %v5173_v5, %v5170_v24  ;;  %v5274_v31 = vor.u32 %v5273_v57, %v5216_v8  ;;  %v6534_v5 = vld [vmem:[%s9214_s1 + $0x150] sm:$0xff]  }
 0x5c8   : > { %6404 = vmatpush3.bf16.msra.mxu1 %v5071_v52  ;;  %v5344_v20 = vmul.bf16 %v5341_v36, %v5338_v22  ;;  %v5302_v46 = vmul.bf16 %v9094_v27, %v5296_v13  ;;  %v5165_v52 = vld [vmem:[#allocation2 + $0x8] sm:$0xe0]  ;;  %v5248_v10 = vor.u32 %v5247_v7, %v5168_v1 }
 0x5c9   : > { %6405 = vmatprep.subr.bf16.mxu1 %v9235_v3  ;;  %v5221_v33 = vmul.bf16 %v9096_v14, %v5210_v42  ;;  %v5176_v55 = vmul.bf16 %v9101_v28, %v5165_v52 }
 0x5ca   : > { %v5355_v16 = vshrl.u32 %v5344_v20, 16  ;;  %v5358_v4 = vshll.u32 %v5344_v20, 16  ;;  %v5313_v43 = vshrl.u32 %v5302_v46, 16  ;;  %v5316_v63 = vshll.u32 %v5302_v46, 16 }
 0x5cb   : > { %v5225_v48 = vshrl.u32 %v5221_v33, 16  ;;  %v5228_v11 = vshll.u32 %v5221_v33, 16  ;;  %v5180_v0 = vshrl.u32 %v5176_v55, 16  ;;  %v5183_v50 = vshll.u32 %v5176_v55, 16 }
 0x5cc   : > { %6406 = vmatpush3.bf16.msra.mxu1 %v5072_v45  ;;  %v5287_v45 = vshll.u32 %v5278_v38, 16  ;;  %v9109_v9 = vrot.slane %v5313_v43, 1  ;;  %v9111_v37 = vrot.slane %v5316_v63, 2 }
 0x5cd   : > { %6407 = vmatprep.subr.bf16.mxu1 %v9235_v3  ;;  %v9115_v39 = vrot.slane %v5228_v11, 7 }
 0x5ce   : > { %v5289_v19 = vrot.slane %v5287_v45, 1  ;;  %v5319_v49 = vor.u32 %v9111_v37, %v9109_v9  ;;  %v6536_v45 = vld [vmem:[%s9214_s1 + $0x158] sm:$0xff]  }
 0x5d0   : > { %6408 = vmatpush3.bf16.msra.mxu1 %v5073_v61  ;;  %v9103_v61 = vrot.slane %v5355_v16, 2  ;;  %v5182_v16 = vrot.slane %v5180_v0, 5 }
 0x5d1   : > { %6413 = vmatprep.subr.bf16.mxu1 %v9235_v3 }
 0x5d3   : > { %6410 = vmatmul.mubr.msk.bf16.vlgmr.msra.gmra.mrb[72].mxu1 %vm5079_vm14, %v6518_v18  ;;  %v9105_v18 = vrot.slane %v5358_v4, 3  ;;  %v6535_v4 = vld [vmem:[%s9214_s1 + $0x198] sm:$0xff]   ;;  %vm5329_vm14 = vcmask 1045504  }
 0x5d4   : > { %6417 = vmatprep.mubr.msk.bf16.mxu1 %vm6559_vm8, %v9235_v3  ;;  %6414 = vmatpush3.bf16.msra.mxu1 %v6519_v58  ;;  %v9107_v58 = vmul.bf16 %v5247_v7, %v5245_v51  ;;  %v5185_v7 = vrot.slane %v5183_v50, 6 }
 0x5d5   : > { %6415 = vmatprep.subr.bf16.mxu1 %v9235_v3  ;;  %v5361_v12 = vor.u32 %v9105_v18, %v9103_v61 }
 0x5d6   : > { %v5254_v25 = vshrl.u32 %v9107_v58, 16 }
 0x5d8   : > { %6416 = vmatpush3.bf16.msra.mxu1 %v6520_v47  ;;  %v9113_v47 = vrot.slane %v5225_v48, 6  ;;  %v5256_v41 = vrot.slane %v5254_v25, 7 }
 0x5d9   : > { %6427 = vmatprep.subr.bf16.mxu1 %v9235_v3 }
 0x5da   : > { %v5231_v53 = vor.u32 %v9115_v39, %v9113_v47  ;;  %v5326_v39 = vld [vmem:[#allocation2 + $0x18] sm:$0x3] }
 0x6a6   : > { %v5117_v29 = vpop.f32.mrb[72].mxu1 }
 0x6a7   : > { %v6411_v21 = vpop.f32.mrb[73].mxu1 }
 0x6a8   : > { %v5120_v59 = vpop.f32.mrb[74].mxu1 }
 0x6a9   : > { %v5124_v34 = vpack.c.bf16 %v5120_v59, %v5117_v29  ;;  %v6412_v62 = vpop.f32.mrb[75].mxu1 }
 0x6ab   : > { %5125 = vst.msk [vmem:[#allocation2 + $0x10] sm:$0xff] %vm253_vm0, %v5124_v34 }
 0x6b2   : > { %v5271_v56 = vld [vmem:[#allocation2 + $0x10] sm:$0xff] }
 0x6b3   : > { %v5337_v15 = vld [vmem:[#allocation2 + $0x10] sm:$0xfc]  ;;  %v5277_v44 = vmul.bf16 %v5274_v31, %v5271_v56  ;;  %5270 = vst.msk [vmem:[#allocation3 + $0x8] sm:$0xff] %vm253_vm0, %v5271_v56  ;;  %v5252_v23 = vmul.bf16 %v5271_v56, %v5248_v10  ;;  %v5186_v10 = vor.u32 %v5185_v7, %v5182_v16 }
 0x6b4   : > { %v5199_v17 = vld [vmem:[#allocation2 + $0x10] sm:$0x3f]  ;;  %v5343_v8 = vmul.bf16 %v5341_v36, %v5337_v15 }
 0x6b5   : > { %v5204_v1 = vrot.slane %v5199_v17, 6  ;;  %v5295_v60 = vld [vmem:[#allocation2 + $0x10] sm:$0xfe]  ;;  %v5280_v22 = vshrl.u32 %v5277_v44, 16  ;;  %v5282_v13 = vshll.u32 %v5277_v44, 16  ;;  %v5258_v48 = vshrl.u32 %v5252_v23, 16 }
 0x6b6   : > { %v5211_v54 = vld [vmem:[#allocation2 + $0x10] sm:$0x7f]  ;;  %v5301_v35 = vmul.bf16 %v9094_v27, %v5295_v60  ;;  %v5347_v42 = vshrl.u32 %v5343_v8, 16  ;;  %v5350_v20 = vshll.u32 %v5343_v8, 16  ;;  %v5261_v51 = vshll.u32 %v5252_v23, 16 }
 0x6b7   : > { %v5222_v6 = vmul.bf16 %v9096_v14, %v5211_v54  ;;  %v5205_v29 = vsel %vm5202_vm9, %v5203_v30, %v5204_v1  ;;  %v5166_v33 = vld [vmem:[#allocation2 + $0x10] sm:$0x3f]  ;;  %v5284_v21 = vrot.slane %v5282_v13, 1  ;;  %v5260_v40 = vrot.slane %v5258_v48, 7  ;;  %v6537_v13 = vld [vmem:[%s9217_s4] sm:$0xff]  }
 0x6b8   : > { %v5305_v36 = vshrl.u32 %v5301_v35, 16  ;;  %v5308_v26 = vshll.u32 %v5301_v35, 16  ;;  %v5349_v57 = vrot.slane %v5347_v42, 2  ;;  %v5352_v24 = vrot.slane %v5350_v20, 3  ;;  %5206 = vrot.lane.b32.xlu1 %v5205_v29, %s6554_s28  ;;  %v6533_v14 = vld [vmem:[%s9214_s1 + $0x190] sm:$0xff]  }
 0x6b9   : > { %v5233_v46 = vshrl.u32 %v5222_v6, 16  ;;  %v5236_v27 = vshll.u32 %v5222_v6, 16  ;;  %v5285_v62 = vor.u32 %v5284_v21, %v5280_v22  ;;  %6335 = vmatprep.subr.bf16.mxu0 %v6533_v14  ;;  %v5177_v52 = vmul.bf16 %v9101_v28, %v5166_v33  ;;  %v5325_v47 = vld [vmem:[#allocation2 + $0x10] sm:$0xfc]  ;;  %v6074_v20 = vld [vmem:[%s9215_s2 + $0x6] ss:$0 sm:$0xff] }
 0x6ba   : > { %v5307_v59 = vrot.slane %v5305_v36, 1  ;;  %v5310_v34 = vrot.slane %v5308_v26, 2  ;;  %v5353_v43 = vor.u32 %v5352_v24, %v5349_v57  ;;  %6336 = vmatpush3.bf16.msra.mxu0 %v6534_v5  ;;  %v5263_v32 = vor.u32 %v5261_v51, %v5260_v40 }
 0x6bb   : > { %v5235_v38 = vrot.slane %v5233_v46, 6  ;;  %v5238_v63 = vrot.slane %v5236_v27, 7  ;;  %v5290_v61 = vsel %vm1060_vm4, %v5285_v62, %v5289_v19  ;;  %6337 = vmatprep.subr.bf16.mxu0 %v6535_v4  ;;  %v5188_v31 = vshrl.u32 %v5177_v52, 16 }
 0x6bc   : > { %v5311_v11 = vor.u32 %v5310_v34, %v5307_v59  ;;  %v5362_v18 = vsel %vm5345_vm7, %v5353_v43, %v5361_v12  ;;  %5291 = vrot.lane.b32.xlu0 %v5290_v61, %s6554_s28  ;;  %v5191_v28 = vshll.u32 %v5177_v52, 16  ;;  %v5330_v15 = vrot.slane %v5325_v47, 2 }
 0x6bd   : > { %v5239_v58 = vor.u32 %v5238_v63, %v5235_v38  ;;  %5364 = vst.msk [vmem:[#allocation3 + $0x10] sm:$0xff] %vm253_vm0, %v5362_v18  ;;  %v5190_v19 = vrot.slane %v5188_v31, 5  ;;  %v5331_v12 = vrot.slane %v5326_v39, 2  ;;  %vm5178_vm4 = vsmask.f32 2304 }
 0x6be   : > { %v5193_v30 = vrot.slane %v5191_v28, 6  ;;  %6338 = vmatpush3.bf16.msra.mxu0 %v6536_v45  ;;  %v5320_v56 = vsel %vm5303_vm12, %v5311_v11, %v5319_v49 }
 0x6bf   : > { %v5240_v55 = vsel %vm5223_vm10, %v5231_v53, %v5239_v58  ;;  %6421 = vmatprep.subr.bf16.mxu0 %v9235_v3  ;;  %v5264_v53 = vsel %vm1222_vm6, %v5256_v41, %v5263_v32  ;;  %v5332_v44 = vsel %vm5329_vm14, %v5330_v15, %v5331_v12  ;;  %v6094_v41 = vld [vmem:[%s9215_s2 + $0x7] ss:$0 sm:$0xff]  ;;  %vm5650_vm6 = vcmask 130048  }
 0x6c0   : > { %5241 = vrot.lane.b32.xlu1 %v5240_v55, %s6558_s12  ;;  %5321 = vrot.lane.b32.xlu0 %v5320_v56, %s6558_s12  ;;  %v5194_v17 = vor.u32 %v5193_v30, %v5190_v19  ;;  %v6095_v19 = vld [vmem:[%s9215_s2 + $0x8] ss:$0 sm:$0xff] }
 0x6c2   : > { %v5195_v25 = vsel %vm5178_vm4, %v5186_v10, %v5194_v17 }
 0x6c3   : > { %5197 = vst.msk [vmem:[#allocation3] sm:$0xff] %vm253_vm0, %v5195_v25 }
 0x6c4   : > { %5265 = vrot.lane.b32.xlu1 %v5264_v53, %s6557_s29  ;;  %v5367_v8 = vld [vmem:[#allocation3 + $0x10] sm:$0xff]  ;;  %5333 = vrot.lane.b32.xlu0 %v5332_v44, %s6557_s29 }
 0x6c5   : > { %6418 = vmatmul.mubr.msk.bf16.vlgmr.msra.gmra.mrb[76].mxu1 %vm253_vm0, %v5367_v8  ;;  %v5648_v44 = vld [vmem:[%s9216_s3 + $0x50] sm:$0x3]  ;;  %v6538_v8 = vld [vmem:[%s9217_s4 + $0x8] sm:$0xff]  }
 0x6c6   : > { %6431 = vmatprep.mubr.msk.bf16.mxu1 %vm6559_vm8, %v9235_v3  ;;  %6428 = vmatpush3.bf16.msra.mxu1 %v6537_v13 }
 0x6c7   : > { %6429 = vmatprep.subr.bf16.mxu1 %v9235_v3 }
 0x6ca   : > { %6430 = vmatpush3.bf16.msra.mxu1 %v6538_v8 }
 0x72a   : > { %v5207_v9 = vpop.permute.xlu1 %5206 }
 0x72b   : > { %5209 = vst.msk [vmem:[#allocation3] sm:$0xff] %vm1467_vm11, %v5207_v9 }
 0x72e   : > { %v5292_v37 = vpop.permute.xlu0 %5291 }
 0x72f   : > { %5294 = vst.msk [vmem:[#allocation3 + $0x8] sm:$0xff] %vm1467_vm11, %v5292_v37 }
 0x732   : > { %v5242_v49 = vpop.permute.xlu1 %5241  ;;  %v5322_v1 = vpop.permute.xlu0 %5321 }
 0x733   : > { %5244 = vst.msk [vmem:[#allocation3] sm:$0xff] %vm1842_vm13, %v5242_v49  ;;  %5324 = vst.msk [vmem:[#allocation3 + $0x8] sm:$0xff] %vm1842_vm13, %v5322_v1 }
 0x736   : > { %v5266_v60 = vpop.permute.xlu1 %5265  ;;  %v5334_v54 = vpop.permute.xlu0 %5333 }
 0x737   : > { %5268 = vst.msk [vmem:[#allocation3] sm:$0xff] %vm2073_vm15, %v5266_v60  ;;  %5336 = vst.msk [vmem:[#allocation3 + $0x8] sm:$0xff] %vm2073_vm15, %v5334_v54  ;;  %v6560_v54 = vmov 1966171168  }
 0x73e   : > { %v5366_v0 = vld [vmem:[#allocation3 + $0x8] sm:$0xff]  ;;  %v5365_v35 = vld [vmem:[#allocation3] sm:$0xff] }
 0x73f   : > { %5553 = vmatprep.mubr.bf16.mxu0 %v5366_v0  ;;  %v5758_v0 = vunpack.c.l.s4 %v6560_v54 }
 0x740   : > { %5554 = vmatmul.mubr.bf16.vlgmr.msra.gmra.mrb[64].mxu0 %v5365_v35 }
 0x741   : > { %6423 = vmatprep.mubr.msk.bf16.mxu0 %vm6559_vm8, %v9235_v3  ;;  %v5759_v35 = vunpack.c.0.s8 %v5758_v0 }
 0x798   : > { %v5596_v6 = vpop.f32.mrb[76].mxu1 }
 0x799   : > { %v6419_v23 = vpop.f32.mrb[77].mxu1 }
 0x79a   : > { %v5599_v50 = vpop.f32.mrb[78].mxu1 }
 0x79b   : > { %v6420_v22 = vpop.f32.mrb[79].mxu1 }
 0x813   : > { %v6339_v42 = vpop.f32.mrb[64].mxu0 }
 0x814   : > { %v6340_v29 = vpop.f32.mrb[65].mxu0 }
 0x815   : > { %v6341_v36 = vadd.f32 %v6340_v29, %v6339_v42  ;;  %v6342_v26 = vpop.f32.mrb[66].mxu0 }
 0x816   : > { %v6343_v46 = vpop.f32.mrb[67].mxu0 }
 0x817   : > { %v5556_v33 = vadd.f32 %v6341_v36, %v6074_v20  ;;  %v6344_v21 = vadd.f32 %v6343_v46, %v6342_v26 }
 0x819   : > { %v5597_v57 = vadd.f32 %v5596_v6, %v5556_v33  ;;  %v5559_v24 = vadd.f32 %v6344_v21, %v6074_v20  ;;  %v5762_v6 = vsub.s32 %v5759_v35, %v6618_v2  ;;  %v5754_v33 = vld [vmem:[%s9218_s5] sm:$0x1] }
 0x81b   : > { %v5600_v27 = vadd.f32 %v5599_v50, %v5559_v24  ;;  %v5603_v14 = vsel %vm253_vm0, %v5597_v57, 0.0 }
 0x81d   : > { %v5604_v5 = vsel %vm253_vm0, %v5600_v27, 0.0 }
 0x81e   : > { %v5605_v59 = vadd.f32 %v5604_v5, %v5603_v14  ;;  %v5796_v5 = vsub.s32 0, %v6618_v2 }
 0x820   : > { %v5606_v3 = vrot.slane %v5605_v59, 4 }
 0x822   : > { %v5607_v34 = vadd.f32 %v5606_v3, %v5605_v59 }
 0x824   : > { %v5608_v38 = vrot.slane %v5607_v34, 2 }
 0x826   : > { %v5609_v16 = vadd.f32 %v5608_v38, %v5607_v34 }
 0x828   : > { %v5610_v4 = vrot.slane %v5609_v16, 1 }
 0x82a   : > { %v5611_v62 = vadd.f32 %v5610_v4, %v5609_v16 }
 0x82c   : > { %v5613_v43 = vmul.f32 0.0625, %v5611_v62 }
 0x82e   : > { %v5614_v63 = vsub.f32 %v5597_v57, %v5613_v43  ;;  %v5615_v48 = vsub.f32 %v5600_v27, %v5613_v43 }
 0x830   : > { %v5616_v11 = vmul.f32 %v5614_v63, %v5614_v63  ;;  %v5617_v51 = vmul.f32 %v5615_v48, %v5615_v48 }
 0x832   : > { %v5618_v7 = vsel %vm253_vm0, %v5616_v11, 0.0  ;;  %v5619_v52 = vsel %vm253_vm0, %v5617_v51, 0.0 }
 0x833   : > { %v5620_v45 = vadd.f32 %v5619_v52, %v5618_v7 }
 0x835   : > { %v5621_v61 = vrot.slane %v5620_v45, 4 }
 0x837   : > { %v5622_v18 = vadd.f32 %v5621_v61, %v5620_v45 }
 0x839   : > { %v5623_v58 = vrot.slane %v5622_v18, 2 }
 0x83b   : > { %v5624_v40 = vadd.f32 %v5623_v58, %v5622_v18 }
 0x83d   : > { %v5625_v47 = vrot.slane %v5624_v40, 1 }
 0x83f   : > { %v5626_v39 = vadd.f32 %v5625_v47, %v5624_v40 }
 0x841   : > { %v5627_v31 = vmul.f32 0.0625, %v5626_v39 }
 0x843   : > { %v5628_v28 = vadd.f32 1e-05, %v5627_v31 }
 0x845   : > { %6543 = vrsqrt.f32 %v5628_v28 }
 0x84f   : > { %v6544_v55 = vpop.eup %6543 }
 0x850   : > { %v5630_v32 = vmul.f32 %v6544_v55, %v5614_v63  ;;  %v5631_v10 = vmul.f32 %v6544_v55, %v5615_v48 }
 0x852   : > { %v5638_v30 = vmul.f32 %v6094_v41, %v5631_v10  ;;  %v5637_v56 = vmul.f32 %v6094_v41, %v5630_v32 }
 0x854   : > { %v5644_v15 = vadd.f32 %v6095_v19, %v5637_v56  ;;  %v5645_v12 = vadd.f32 %v6095_v19, %v5638_v30 }
 0x856   : > { %v5646_v17 = vmax.f32 %v5644_v15, 0.0  ;;  %v5647_v53 = vmax.f32 %v5645_v12, 0.0 }
 0x858   : > { %v5649_v25 = vpack.c.bf16 %v5647_v53, %v5646_v17 }
 0x85a   : > { %6422 = vmatpush3.bf16.msra.mxu0 %v5649_v25 }
 0x85d   : > { %6424 = vmatmul.mubr.msk.bf16.vlgmr.msra.gmra.mrb[68].mxu0 %vm5650_vm6, %v5648_v44 }
 0x930   : > { %v5688_v9 = vpop.f32.mrb[68].mxu0 }
 0x931   : > { %v5694_v37 = vpack.c.bf16 %v5688_v9, %v5688_v9  ;;  %v6425_v49 = vpop.f32.mrb[69].mxu0 }
 0x932   : > { %v5691_v1 = vpop.f32.mrb[70].mxu0 }
 0x933   : > { %6432 = vmatmul.mubr.msk.bf16.vlgmr.msra.gmra.mrb[80].mxu1 %vm253_vm0, %v5694_v37  ;;  %v6426_v60 = vpop.f32.mrb[71].mxu0  ;;  %vm5799_vm0 = vcmask 80896  }
 0xa06   : > { %v5748_v23 = vpop.f32.mrb[80].mxu1 }
 0xa07   : > { %v5763_v50 = vrot.slane %v5748_v23, %v5762_v6  ;;  %v6433_v22 = vpop.f32.mrb[81].mxu1  ;;  %v5755_v21 = vadd.f32 %v5754_v33, %v5748_v23 }
 0xa08   : > { %v5751_v13 = vpop.f32.mrb[82].mxu1 }
 0xa09   : > { %v5764_v42 = vcombine.high %v5763_v50, %v5763_v50  ;;  %v5771_v20 = vrot.slane %v5763_v50, %v5762_v6  ;;  %v6434_v29 = vpop.f32.mrb[83].mxu1 }
 0xa0b   : > { %v5778_v36 = vrot.slane %v5764_v42, %v5762_v6  ;;  %v5783_v26 = vcombine.high %v5771_v20, %v5771_v20 }
 0xa0d   : > { %5779 = vrot.lane.b32.xlu0 %v5778_v36, %s6561_s24  ;;  %5784 = vrot.lane.b32.xlu1 %v5783_v26, %s6562_s25  ;;  %v5788_v46 = vcombine.high %v5778_v36, %v5778_v36 }
 0xa11   : > { %5789 = vrot.lane.b32.xlu0 %v5788_v46, %s6563_s26 }
 0xa7f   : > { %v5780_v57 = vpop.permute.xlu0 %5779  ;;  %v5785_v27 = vpop.permute.xlu1 %5784 }
 0xa80   : > { %v5782_v24 = vadd.f32 %v5780_v57, %v5755_v21 }
 0xa82   : > { %v5787_v14 = vadd.f32 %v5785_v27, %v5782_v24 }
 0xa83   : > { %v5790_v59 = vpop.permute.xlu0 %5789 }
 0xa84   : > { %v5792_v3 = vadd.f32 %v5790_v59, %v5787_v14 }
 0xa86   : > { %v5797_v34 = vrot.slane %v5792_v3, %v5796_v5 }
 0xa88   : > { %5800 = vst.msk [vmem:[%s251_s10] sm:$0xff] %vm5799_vm0, %v5797_v34 }
 0xa89 PF: > { %s16_s21 = sadd.s32 1, %s6551_s21  }
 0xa8a   : > { %p13_p5 = scmp.ge.s32.totalorder %s16_s21, 4  }
 0xa8c   :  { %15 = sbr.rel (!%p13_p5) target bundleno = 1 (0x1), region = 76 }

</bundles_post_ra>
